<compile_context>
chip_gen: v7x
topology: tpu7x:2x2x1
jax: 0.10.0
libtpu: 0.0.40
codegen_flags: <defaults>
</compile_context>

<pallas_src>
import jax
import jax.numpy as jnp
from jax import lax
from jax.experimental import pallas as pl
from jax.experimental.pallas import tpu as pltpu

BN_EPS = 1e-5
PADDED_CLASSES = 128  # lane-dense output width


# ---------------------------------------------------------------------------
# Pallas kernel: pooled mean + 3 fused (matmul + bias [+ ReLU]) stages
# ---------------------------------------------------------------------------
def _classifier_kernel(feat_ref, w1_ref, b1_ref, w2_ref, b2_ref,
                       w3_ref, b3_ref, out_ref):
    # temporal mean pooling: (BM, T, 1024) -> (BM, 1024), f32 accumulation
    pooled = jnp.mean(feat_ref[...], axis=1)

    # layer 1: Linear(1024,512) with BN folded in, ReLU.  (Dropout = identity.)
    h = jnp.dot(pooled.astype(jnp.bfloat16), w1_ref[...],
                preferred_element_type=jnp.float32)
    h = jnp.maximum(h + b1_ref[...], 0.0)

    # layer 2: Linear(512,256) with BN folded in, ReLU.  (Dropout = identity.)
    h = jnp.dot(h.astype(jnp.bfloat16), w2_ref[...],
                preferred_element_type=jnp.float32)
    h = jnp.maximum(h + b2_ref[...], 0.0)

    # layer 3: Linear(256, padded_num_classes)
    out = jnp.dot(h.astype(jnp.bfloat16), w3_ref[...],
                  preferred_element_type=jnp.float32)
    out_ref[...] = (out + b3_ref[...]).astype(out_ref.dtype)


def yamnet_finetuner_classifier(features, packed, num_classes, *, block_batch=16):
    """features: (B, T, 1024) f32; packed: BN-folded bf16 weights.
    Returns (B, num_classes) f32 logits."""
    B, T, D = features.shape
    NP = packed["w3"].shape[1]

    BM = block_batch
    assert BM % 8 == 0, "batch tile must be a multiple of 8 (sublane tiling)"
    Bp = pl.cdiv(B, BM) * BM
    if Bp != B:  # pad batch so the grid divides evenly; padded rows are dropped
        features = jnp.pad(features, ((0, Bp - B), (0, 0), (0, 0)))

    def const_spec(shape):  # weights/biases stay VMEM-resident across the grid
        return pl.BlockSpec(shape, lambda i: (0,) * len(shape))

    logits_padded = pl.pallas_call(
        _classifier_kernel,
        out_shape=jax.ShapeDtypeStruct((Bp, NP), jnp.float32),
        grid=(Bp // BM,),
        in_specs=[
            pl.BlockSpec((BM, T, D), lambda i: (i, 0, 0)),
            const_spec(packed["w1"].shape), const_spec(packed["b1"].shape),
            const_spec(packed["w2"].shape), const_spec(packed["b2"].shape),
            const_spec(packed["w3"].shape), const_spec(packed["b3"].shape),
        ],
        out_specs=pl.BlockSpec((BM, NP), lambda i: (i, 0)),
        compiler_params=pltpu.CompilerParams(
            dimension_semantics=("parallel",)),
    )(features, packed["w1"], packed["b1"], packed["w2"], packed["b2"],
      packed["w3"], packed["b3"])

    return logits_padded[:B, :num_classes]


# ---------------------------------------------------------------------------
# Parameters: PyTorch-style raw params + eval-mode BN folding / bf16 packing
# ---------------------------------------------------------------------------
def xavier_uniform(key, fan_in, fan_out):
    limit = (6.0 / (fan_in + fan_out)) ** 0.5
    # stored (in_features, out_features) so the kernel computes x @ W
    return jax.random.uniform(key, (fan_in, fan_out), jnp.float32, -limit, limit)


def make_raw_params(key, num_classes):
    """Raw (unfolded) parameters, with non-trivial BN stats so that BN folding
    is actually exercised by the reference check."""
    ks = jax.random.split(key, 11)

    def bn(kg, kb, km, kv, h):
        return dict(
            gamma=jax.random.uniform(kg, (h,), jnp.float32, 0.5, 1.5),
            beta=jax.random.normal(kb, (h,), jnp.float32) * 0.1,
            mean=jax.random.normal(km, (h,), jnp.float32) * 0.1,
            var=jax.random.uniform(kv, (h,), jnp.float32, 0.5, 1.5),
        )

    return {
        "w1": xavier_uniform(ks[0], 1024, 512), "b1": jnp.zeros((512,), jnp.float32),
        "bn1": bn(ks[1], ks[2], ks[3], ks[4], 512),
        "w2": xavier_uniform(ks[5], 512, 256), "b2": jnp.zeros((256,), jnp.float32),
        "bn2": bn(ks[6], ks[7], ks[8], ks[9], 256),
        "w3": xavier_uniform(ks[10], 256, num_classes),
        "b3": jnp.zeros((num_classes,), jnp.float32),
    }


def fold_and_pack_params(raw, num_classes, padded_classes=PADDED_CLASSES):
    """Fold eval-mode BN into the preceding Linear, cast weights to bf16, and
    zero-pad the final layer to a lane-dense 128-wide output."""
    def fold(w, b, bn):
        scale = bn["gamma"] * lax.rsqrt(bn["var"] + BN_EPS)
        w_f = w * scale[None, :]
        b_f = (b - bn["mean"]) * scale + bn["beta"]
        return w_f.astype(jnp.bfloat16), b_f.reshape(1, -1).astype(jnp.float32)

    w1, b1 = fold(raw["w1"], raw["b1"], raw["bn1"])
    w2, b2 = fold(raw["w2"], raw["b2"], raw["bn2"])

    w3 = jnp.zeros((256, padded_classes), jnp.float32)
    w3 = w3.at[:, :num_classes].set(raw["w3"]).astype(jnp.bfloat16)
    b3 = jnp.zeros((1, padded_classes), jnp.float32)
    b3 = b3.at[0, :num_classes].set(raw["b3"])

    return {"w1": w1, "b1": b1, "w2": w2, "b2": b2, "w3": w3, "b3": b3}


# ---------------------------------------------------------------------------
# Stand-in for the TF-Hub YAMNet extractor (external pretrained model)
# ---------------------------------------------------------------------------
def synthetic_yamnet_features(waveform, key):
    # TODO(synk): real YAMNet embedding extraction (tfhub model) has no Pallas equivalent.
    B, F, S = waveform.shape
    proj = jax.random.normal(key, (S, 1024), jnp.float32) * (1.0 / S ** 0.5)
    return jnp.tanh(jnp.einsum("bfs,sd->bfd", waveform, proj))


# ---------------------------------------------------------------------------
# Pure-JAX references
# ---------------------------------------------------------------------------
def reference_f32(features, raw):
    """Full-precision forward with explicit eval-mode BatchNorm."""
    def bn(x, p):
        return (x - p["mean"]) * (p["gamma"] * lax.rsqrt(p["var"] + BN_EPS)) + p["beta"]
    pooled = jnp.mean(features, axis=1)
    h = jnp.maximum(bn(pooled @ raw["w1"] + raw["b1"], raw["bn1"]), 0.0)
    h = jnp.maximum(bn(h @ raw["w2"] + raw["b2"], raw["bn2"]), 0.0)
    return h @ raw["w3"] + raw["b3"]


def reference_bf16(features, packed, num_classes):
    """Same folded/bf16 math as the kernel, in plain JAX."""
    pooled = jnp.mean(features, axis=1)
    h = jnp.dot(pooled.astype(jnp.bfloat16), packed["w1"],
                preferred_element_type=jnp.float32) + packed["b1"]
    h = jnp.maximum(h, 0.0)
    h = jnp.dot(h.astype(jnp.bfloat16), packed["w2"],
                preferred_element_type=jnp.float32) + packed["b2"]
    h = jnp.maximum(h, 0.0)
    out = jnp.dot(h.astype(jnp.bfloat16), packed["w3"],
                  preferred_element_type=jnp.float32) + packed["b3"]
    return out[:, :num_classes]


if __name__ == "__main__":
    key = jax.random.PRNGKey(0)
    k_wave, k_proj, k_params = jax.random.split(key, 3)

    batch, frames, samples = 32, 4, 64      # 3-D waveform input (B, frames, samples)
    num_classes = 10

    waveform = jax.random.normal(k_wave, (batch, frames, samples), jnp.float32)
    features = synthetic_yamnet_features(waveform, k_proj)   # (B, frames, 1024)

    raw = make_raw_params(k_params, num_classes)
    packed = fold_and_pack_params(raw, num_classes)

    logits = yamnet_finetuner_classifier(features, packed, num_classes,
                                         block_batch=16)
    jax.block_until_ready(logits)
    assert logits.shape == (batch, num_classes)

    # Tight check vs. identical folded/bf16 math done in plain JAX.
    ref_b = reference_bf16(features, packed, num_classes)
    assert jnp.allclose(logits, ref_b, atol=5e-3, rtol=5e-3), \
        "kernel != bf16-folded reference"

    # Looser check vs. the full-precision, un-folded BN reference
    # (validates the BN folding; difference is only bf16 weight rounding).
    ref_f = reference_f32(features, raw)
    assert jnp.allclose(logits, ref_f, atol=0.1, rtol=0.05), \
        "kernel != f32 BatchNorm reference"

    print("KERNEL_OK")
</pallas_src>

<mosaic_0001>
module attributes {stable_mosaic.version = 11 : i64} {
  func.func @_classifier_kernel(%arg0: i32, %arg1: memref<16x4x1024xf32, #tpu.memory_space<vmem>>, %arg2: memref<1024x512xbf16, #tpu.memory_space<vmem>>, %arg3: memref<1x512xf32, #tpu.memory_space<vmem>>, %arg4: memref<512x256xbf16, #tpu.memory_space<vmem>>, %arg5: memref<1x256xf32, #tpu.memory_space<vmem>>, %arg6: memref<256x128xbf16, #tpu.memory_space<vmem>>, %arg7: memref<1x128xf32, #tpu.memory_space<vmem>>, %arg8: memref<16x128xf32, #tpu.memory_space<vmem>>) attributes {dimension_semantics = [#tpu.dimension_semantics<parallel>], iteration_bounds = array<i64: 2>, scalar_prefetch = 0 : i64, scratch_operands = 0 : i64, tpu.core_type = #tpu.core_type<tc>, window_params = [{transform_indices = @transform_0, window_bounds = array<i64: 16, 4, 1024>}, {pipeline_mode = #tpu.pipeline_mode<synchronous>, transform_indices = @transform_1, window_bounds = array<i64: 1024, 512>}, {pipeline_mode = #tpu.pipeline_mode<synchronous>, transform_indices = @transform_2, window_bounds = array<i64: 1, 512>}, {pipeline_mode = #tpu.pipeline_mode<synchronous>, transform_indices = @transform_3, window_bounds = array<i64: 512, 256>}, {pipeline_mode = #tpu.pipeline_mode<synchronous>, transform_indices = @transform_4, window_bounds = array<i64: 1, 256>}, {pipeline_mode = #tpu.pipeline_mode<synchronous>, transform_indices = @transform_5, window_bounds = array<i64: 256, 128>}, {pipeline_mode = #tpu.pipeline_mode<synchronous>, transform_indices = @transform_6, window_bounds = array<i64: 1, 128>}, {transform_indices = @transform_7, window_bounds = array<i64: 16, 128>}]} {
    %c0 = arith.constant 0 : index
    %c0_0 = arith.constant 0 : index
    %c0_1 = arith.constant 0 : index
    %0 = vector.load %arg1[%c0, %c0_0, %c0_1] : memref<16x4x1024xf32, #tpu.memory_space<vmem>>, vector<16x4x1024xf32>
    %cst = arith.constant dense<0.000000e+00> : vector<16x1024xf32>
    %1 = vector.multi_reduction <add>, %0, %cst [1] : vector<16x4x1024xf32> to vector<16x1024xf32>
    %cst_2 = arith.constant 4.000000e+00 : f32
    %2 = vector.broadcast %cst_2 : f32 to vector<16x1024xf32>
    %3 = arith.divf %1, %2 : vector<16x1024xf32>
    %4 = arith.truncf %3 : vector<16x1024xf32> to vector<16x1024xbf16>
    %c0_3 = arith.constant 0 : index
    %c0_4 = arith.constant 0 : index
    %5 = vector.load %arg2[%c0_3, %c0_4] : memref<1024x512xbf16, #tpu.memory_space<vmem>>, vector<1024x512xbf16>
    %cst_5 = arith.constant dense<0.000000e+00> : vector<16x512xf32>
    %6 = tpu.matmul %4, %5, %cst_5 {dimension_numbers = #tpu.dot_dimension_numbers<[1], [0], [0], [1], [0, 0, 1, 1], [], []>} : vector<16x1024xbf16>, vector<1024x512xbf16>, vector<16x512xf32> -> vector<16x512xf32>
    %c0_6 = arith.constant 0 : index
    %c0_7 = arith.constant 0 : index
    %7 = vector.load %arg3[%c0_6, %c0_7] : memref<1x512xf32, #tpu.memory_space<vmem>>, vector<1x512xf32>
    %8 = vector.broadcast %7 : vector<1x512xf32> to vector<16x512xf32>
    %9 = arith.addf %6, %8 : vector<16x512xf32>
    %cst_8 = arith.constant 0.000000e+00 : f32
    %10 = vector.broadcast %cst_8 : f32 to vector<16x512xf32>
    %11 = arith.maximumf %9, %10 : vector<16x512xf32>
    %12 = arith.truncf %11 : vector<16x512xf32> to vector<16x512xbf16>
    %c0_9 = arith.constant 0 : index
    %c0_10 = arith.constant 0 : index
    %13 = vector.load %arg4[%c0_9, %c0_10] : memref<512x256xbf16, #tpu.memory_space<vmem>>, vector<512x256xbf16>
    %cst_11 = arith.constant dense<0.000000e+00> : vector<16x256xf32>
    %14 = tpu.matmul %12, %13, %cst_11 {dimension_numbers = #tpu.dot_dimension_numbers<[1], [0], [0], [1], [0, 0, 1, 1], [], []>} : vector<16x512xbf16>, vector<512x256xbf16>, vector<16x256xf32> -> vector<16x256xf32>
    %c0_12 = arith.constant 0 : index
    %c0_13 = arith.constant 0 : index
    %15 = vector.load %arg5[%c0_12, %c0_13] : memref<1x256xf32, #tpu.memory_space<vmem>>, vector<1x256xf32>
    %16 = vector.broadcast %15 : vector<1x256xf32> to vector<16x256xf32>
    %17 = arith.addf %14, %16 : vector<16x256xf32>
    %cst_14 = arith.constant 0.000000e+00 : f32
    %18 = vector.broadcast %cst_14 : f32 to vector<16x256xf32>
    %19 = arith.maximumf %17, %18 : vector<16x256xf32>
    %20 = arith.truncf %19 : vector<16x256xf32> to vector<16x256xbf16>
    %c0_15 = arith.constant 0 : index
    %c0_16 = arith.constant 0 : index
    %21 = vector.load %arg6[%c0_15, %c0_16] : memref<256x128xbf16, #tpu.memory_space<vmem>>, vector<256x128xbf16>
    %cst_17 = arith.constant dense<0.000000e+00> : vector<16x128xf32>
    %22 = tpu.matmul %20, %21, %cst_17 {dimension_numbers = #tpu.dot_dimension_numbers<[1], [0], [0], [1], [0, 0, 1, 1], [], []>} : vector<16x256xbf16>, vector<256x128xbf16>, vector<16x128xf32> -> vector<16x128xf32>
    %c0_18 = arith.constant 0 : index
    %c0_19 = arith.constant 0 : index
    %23 = vector.load %arg7[%c0_18, %c0_19] : memref<1x128xf32, #tpu.memory_space<vmem>>, vector<1x128xf32>
    %24 = vector.broadcast %23 : vector<1x128xf32> to vector<16x128xf32>
    %25 = arith.addf %22, %24 : vector<16x128xf32>
    %c0_20 = arith.constant 0 : index
    %c0_21 = arith.constant 0 : index
    %26 = vector.load %arg8[%c0_20, %c0_21] : memref<16x128xf32, #tpu.memory_space<vmem>>, vector<16x128xf32>
    tpu.vector_store %arg8[%c0_20, %c0_21], %25 {strides = array<i32>} : memref<16x128xf32, #tpu.memory_space<vmem>>, vector<16x128xf32>,
    return
  }
  func.func @transform_0(%arg0: i32) -> (i32, i32, i32) {
    %c0_i32 = arith.constant 0 : i32
    %c0_i32_0 = arith.constant 0 : i32
    %c0_i32_1 = arith.constant 0 : i32
    return %arg0, %c0_i32, %c0_i32_0 : i32, i32, i32
  }
  func.func @transform_1(%arg0: i32) -> (i32, i32) {
    %c0_i32 = arith.constant 0 : i32
    %c0_i32_0 = arith.constant 0 : i32
    %c0_i32_1 = arith.constant 0 : i32
    return %c0_i32, %c0_i32_0 : i32, i32
  }
  func.func @transform_2(%arg0: i32) -> (i32, i32) {
    %c0_i32 = arith.constant 0 : i32
    %c0_i32_0 = arith.constant 0 : i32
    %c0_i32_1 = arith.constant 0 : i32
    return %c0_i32, %c0_i32_0 : i32, i32
  }
  func.func @transform_3(%arg0: i32) -> (i32, i32) {
    %c0_i32 = arith.constant 0 : i32
    %c0_i32_0 = arith.constant 0 : i32
    %c0_i32_1 = arith.constant 0 : i32
    return %c0_i32, %c0_i32_0 : i32, i32
  }
  func.func @transform_4(%arg0: i32) -> (i32, i32) {
    %c0_i32 = arith.constant 0 : i32
    %c0_i32_0 = arith.constant 0 : i32
    %c0_i32_1 = arith.constant 0 : i32
    return %c0_i32, %c0_i32_0 : i32, i32
  }
  func.func @transform_5(%arg0: i32) -> (i32, i32) {
    %c0_i32 = arith.constant 0 : i32
    %c0_i32_0 = arith.constant 0 : i32
    %c0_i32_1 = arith.constant 0 : i32
    return %c0_i32, %c0_i32_0 : i32, i32
  }
  func.func @transform_6(%arg0: i32) -> (i32, i32) {
    %c0_i32 = arith.constant 0 : i32
    %c0_i32_0 = arith.constant 0 : i32
    %c0_i32_1 = arith.constant 0 : i32
    return %c0_i32, %c0_i32_0 : i32, i32
  }
  func.func @transform_7(%arg0: i32) -> (i32, i32) {
    %c0_i32 = arith.constant 0 : i32
    %c0_i32_0 = arith.constant 0 : i32
    return %arg0, %c0_i32 : i32, i32
  }
}

</mosaic_0001>

<bundles_post_ra>
// kernel: tpu_custom_call.1
= control target key start
LH: loop header
LB: loop body
LE: loop exit
PB: predicated region body
PF: predicated region fallthrough
CT: control target
= control target key end

     0   :  { %s7339_s0 = inlined_call_operand.hbm [shape: f32[32,4,1024], index: 0, kind: input, shape index: {}]   ;;  %s7340_s1 = inlined_call_operand.hbm [shape: bf16[1024,512], index: 1, kind: input, shape index: {}]   ;;  %s7341_s2 = inlined_call_operand.vmem [shape: f32[1,512], index: 2, kind: input, shape index: {}]   ;;  %s7342_s3 = inlined_call_operand.hbm [shape: bf16[512,256], index: 3, kind: input, shape index: {}]   ;;  %s7343_s4 = inlined_call_operand.vmem [shape: f32[1,256], index: 4, kind: input, shape index: {}]   ;;  %s7344_s5 = inlined_call_operand.hbm [shape: bf16[256,128], index: 5, kind: input, shape index: {}]   ;;  %s7345_s6 = inlined_call_operand.vmem [shape: f32[1,128], index: 6, kind: input, shape index: {}]   ;;  %s7346_s7 = inlined_call_operand.hbm [shape: f32[32,128], index: 7, kind: output, shape index: {}]  }
   0x1   :  { %7350 = sst [smem:[#allocation15_spill]] %s7340_s1 }
   0x2   :  { %12 = vsyncpa [#allocation3], 0 }
   0x3   :  { %14 = vsyncpa [#allocation3 + $0x1], 0 }
   0x4   :  { %15 = vsyncpa [#allocation6], 0 }
   0x5   :  { %16 = vsyncpa [#allocation9], 0 }
   0x6   :  { %17 = vsyncpa [#allocation4], 0 }
   0x7   :  { %19 = vsyncpa [#allocation4 + $0x1], 0  ;;  %s6157_s24 = smov 0   ;;  %s6159_s25 = smov 0  }
   0x8   :  { %s6161_s26 = smov 0   ;;  %s6163_s27 = smov 0  }
   0x9 LB: > { %s6178_s28 = sadd.s32 4294967295, %s6100_s27   ;;  %s4842_s29 = sadd.s32 4294967294, %s6100_s27   ;;  %s6100_s27 = sphi %s6163_s27, %s7371_s27   ;;  %s6096_s26 = sphi %s6161_s26, %s7370_s26   ;;  %s6092_s25 = sphi %s6159_s25, %s7369_s25   ;;  %s6088_s24 = sphi %s6157_s24, %s7368_s24  }
   0xa   : > { %p45_p0 = scmp.ne.s32.totalorder %s6092_s25, %s6088_s24  ;;  %p7347_p1 = scmp.eq.s32.totalorder %s6178_s28, 0 }
   0xb   : > { %p201_p3 = scmp.eq.s32.totalorder %s4842_s29, 1  ;;  %p4843_p5 = scmp.ge.s32.totalorder %s6100_s27, 1 }
   0xc   : > { %p6187_p4 = por %p7347_p1, %p45_p0  ;;  %p208_p7 = scmp.lt.s32.totalorder %s6100_s27, 3 }
   0xd   : > { %p6192_p6 = por %p201_p3, %p45_p0  ;;  %s6102_s10 = smov [#allocation5]  }
   0xe   : > { %s7351_s30 = scalar_select %p6187_p4, 1, 0 }
   0xf   : > { %s7352_s8 = scalar_select %p6192_p6, 1, 0 }
  0x10   : > { %p6197_p8 = pnand %p4843_p5, %p208_p7  ;;  %s220_s11 = sshll.u32 %s6102_s10, 4  ;;  %s6201_s11 = int_to_ptr.vmem [resolvable:$true] %s220_s11 }
  0x11   : > { %s6103_s13 = smov [#allocation7]   ;;  %s7355_s1 = sld [smem:[#allocation15_spill]] }
  0x12   : > { %s7353_s9 = scalar_select %p6197_p8, 1, 0 }
  0x13   : > { %p5281_p9 = pneg %p6197_p8  ;;  %s236_s14 = sshll.u32 %s6103_s13, 4  ;;  %s6212_s14 = int_to_ptr.vmem [resolvable:$true] %s236_s14 }
  0x15   : > { %p6208_p11 = pnand %p5281_p9, %p7347_p1 }
  0x17   : > { %s5912_s17 = scalar_lea.hbm %s7355_s1, 32768  ;;  %p6222_p13 = pneg %p6208_p11 }
  0x18   : > { %p5913_p12 = scmp.ne.s32.totalorder %s7355_s1, %s5912_s17  ;;  %p5919_p5 = scmp.lt.u32.totalorder %s5912_s17, %s7355_s1 }
  0x1a   : > { %p5915_p0 = pnand %p6222_p13, %p5913_p12 }
  0x1c   : > { %p5916_p3 = pneg %p5915_p0 }
  0x1e   : > { %p5921_p7 = pnand %p5919_p5, %p5916_p3 }
  0x20   : > { %5924 = shalt.err (!%p5921_p7)
}
  0x21   : > { %s5925_s23 = scalar_lea.vmem %s6201_s11, 32768  ;;  %p5933_p2 = scmp.lt.s32.totalorder %s6201_s11, %s6201_s11 }
  0x22   : > { %p5926_p9 = scmp.ne.s32.totalorder %s6201_s11, %s5925_s23  ;;  %p5934_p6 = scmp.lt.s32.totalorder %s5925_s23, %s5925_s23 }
  0x24   : > { %p5928_p10 = pnand %p5926_p9, %p6222_p13  ;;  %p5935_p12 = por %p5934_p6, %p5933_p2 }
  0x26   : > { %p5929_p1 = pneg %p5928_p10 }
  0x28   : > { %p5936_p0 = pnand %p5935_p12, %p5929_p1 }
  0x2a   : > { %5939 = shalt.err (!%p5936_p0)
}
  0x2b   : > { %s6104_s29 = smov 256   ;;  %s6105_s10 = smov 16  }
  0x2c   : > { %5284 = dma.hbm_to_vmem [thread:$0]  (!%p6208_p11), %s7355_s1, 32768, %s6201_s11, [#allocation6], %s6104_s29, %s6104_s29, %s6105_s10  }
  0x2d   : > { %s5940_s18 = scalar_lea.hbm %s7342_s3, 8192 }
  0x2e   : > { %p5941_p2 = scmp.ne.s32.totalorder %s7342_s3, %s5940_s18  ;;  %p5947_p10 = scmp.lt.u32.totalorder %s5940_s18, %s7342_s3 }
  0x30   : > { %p5943_p1 = pnand %p5941_p2, %p6222_p13 }
  0x32   : > { %p5944_p6 = pneg %p5943_p1 }
  0x34   : > { %p5949_p3 = pnand %p5947_p10, %p5944_p6 }
  0x36   : > { %5952 = shalt.err (!%p5949_p3)
}
  0x37   : > { %s5953_s11 = scalar_lea.vmem %s6212_s14, 8192  ;;  %p5961_p12 = scmp.lt.s32.totalorder %s6212_s14, %s6212_s14 }
  0x38   : > { %p5954_p5 = scmp.ne.s32.totalorder %s6212_s14, %s5953_s11  ;;  %p5962_p0 = scmp.lt.s32.totalorder %s5953_s11, %s5953_s11 }
  0x3a   : > { %p5956_p7 = pnand %p5954_p5, %p6222_p13  ;;  %p5963_p2 = por %p5962_p0, %p5961_p12 }
  0x3c   : > { %p5957_p9 = pneg %p5956_p7 }
  0x3e   : > { %p5964_p1 = pnand %p5963_p2, %p5957_p9 }
  0x40   : > { %5967 = shalt.err (!%p5964_p1)
}
  0x41   : > { %s6106_s29 = smov 128   ;;  %s6107_s10 = smov 8  }
  0x42   : > { %5287 = dma.hbm_to_vmem [thread:$0]  (!%p6208_p11), %s7342_s3, 8192, %s6212_s14, [#allocation6], %s6106_s29, %s6106_s29, %s6107_s10  }
  0x43   : > { %s6108_s16 = smov [#allocation8]   ;;  %s5968_s21 = scalar_lea.hbm %s7344_s5, 2048 }
  0x44   : > { %s252_s17 = sshll.u32 %s6108_s16, 4  ;;  %p5969_p6 = scmp.ne.s32.totalorder %s7344_s5, %s5968_s21  ;;  %s253_s17 = int_to_ptr.vmem [resolvable:$true] %s252_s17 }
  0x45   : > { %p5975_p5 = scmp.lt.u32.totalorder %s5968_s21, %s7344_s5 }
  0x46   : > { %p5971_p10 = pnand %p5969_p6, %p6222_p13 }
  0x48   : > { %p5972_p3 = pneg %p5971_p10 }
  0x4a   : > { %p5977_p7 = pnand %p5975_p5, %p5972_p3 }
  0x4c   : > { %5980 = shalt.err (!%p5977_p7)
}
  0x4d   : > { %s5981_s14 = scalar_lea.vmem %s253_s17, 2048  ;;  %p5989_p2 = scmp.lt.s32.totalorder %s253_s17, %s253_s17 }
  0x4e   : > { %p5982_p9 = scmp.ne.s32.totalorder %s253_s17, %s5981_s14  ;;  %p5990_p1 = scmp.lt.s32.totalorder %s5981_s14, %s5981_s14 }
  0x50   : > { %p5984_p12 = pnand %p5982_p9, %p6222_p13  ;;  %p5991_p4 = por %p5990_p1, %p5989_p2 }
  0x52   : > { %p5985_p0 = pneg %p5984_p12 }
  0x54   : > { %p5992_p8 = pnand %p5991_p4, %p5985_p0 }
  0x56   : > { %5995 = shalt.err (!%p5992_p8)
}
  0x57   : > { %s6109_s29 = smov 64   ;;  %s6110_s1 = smov 4  }
  0x58   : > { %5290 = dma.hbm_to_vmem [thread:$0]  (!%p6208_p11), %s7344_s5, 2048, %s253_s17, [#allocation9], %s6109_s29, %s6109_s29, %s6110_s1  }
  0x59   : > { %s6285_s13 = sadd.s32 1, %s6100_s27   ;;  %s32_s16 = sadd.s32 1, %s6096_s26 }
  0x5a   : > { %s29_s15 = ssub.s32 %s6100_s27, %s6285_s13  ;;  %p39_p8 = scmp.ne.s32.totalorder %s6096_s26, %s6092_s25 }
  0x5b   : > { %p30_p4 = scmp.eq.s32.totalorder %s29_s15, 0  ;;  %p40_p13 = scmp.eq.s32.totalorder %s6100_s27, 0 }
  0x5c   : > { %p5302_p6 = scmp.lt.s32.totalorder %s6100_s27, 2  ;;  %p7357_p3 = scmp.eq.s32.totalorder %s6178_s28, 1 }
  0x5d   : > { %s6295_s18 = scalar_select %p30_p4, %s6096_s26, %s32_s16  }
  0x5e   : > { %p41_p10 = por %p40_p13, %p39_p8  ;;  %p6299_p5 = por %p7357_p3, %p39_p8 }
  0x5f   : > { %s269_s12 = sand.u32 1, %s6096_s26   ;;  %s5201_s21 = sshll.u32 %s6100_s27, 13 }
  0x60   : > { %s4848_s17 = sshll.u32 %s269_s12, 9  ;;  %s6308_s11 = scalar_lea.hbm %s7339_s0, %s5201_s21 }
  0x61   : > { %s273_s14 = scalar_lea.vmem [#allocation2], %s4848_s17  ;;  %p6310_p11 = pnand %p5302_p6, %p41_p10 }
  0x62   : > { %s281_s29 = sshll.u32 %s273_s14, 4  ;;  %s6316_s20 = scalar_lea.sflag [#allocation3], %s269_s12  ;;  %s6314_s29 = int_to_ptr.vmem [resolvable:$true] %s281_s29 }
  0x63   : > { %s5996_s10 = scalar_lea.hbm %s6308_s11, 8192  ;;  %p5998_p9 = pneg %p6310_p11 }
  0x64   : > { %p5997_p7 = scmp.ne.s32.totalorder %s6308_s11, %s5996_s10  ;;  %s6001_s21 = scalar_lea.hbm %s7339_s0, 16384 }
  0x65   : > { %p6002_p2 = scmp.lt.u32.totalorder %s6308_s11, %s7339_s0  ;;  %p6003_p1 = scmp.lt.u32.totalorder %s6001_s21, %s5996_s10 }
  0x66   : > { %p5999_p12 = pnand %p5998_p9, %p5997_p7  ;;  %p6005_p8 = scmp.lt.u32.totalorder %s5996_s10, %s6308_s11 }
  0x67   : > { %p6004_p4 = por %p6003_p1, %p6002_p2 }
  0x68   : > { %p6000_p0 = pneg %p5999_p12 }
  0x69   : > { %p6006_p13 = por %p6005_p8, %p6004_p4 }
  0x6b   : > { %p6007_p6 = pnand %p6006_p13, %p6000_p0 }
  0x6d   : > { %6010 = shalt.err (!%p6007_p6)
}
  0x6e   : > { %s6011_s12 = scalar_lea.vmem %s6314_s29, 8192  ;;  %s6111_s23 = smov [#allocation2]  }
  0x6f   : > { %p6012_p10 = scmp.ne.s32.totalorder %s6314_s29, %s6011_s12  ;;  %s6016_s14 = sshll.u32 %s6111_s23, 4  ;;  %s6017_s14 = int_to_ptr.vmem [resolvable:$false] %s6016_s14 }
  0x70   : > { %s6018_s15 = scalar_lea.vmem %s6017_s14, 16384  ;;  %p6019_p12 = scmp.lt.s32.totalorder %s6314_s29, %s6017_s14 }
  0x71   : > { %p6014_p3 = pnand %p6012_p10, %p5998_p9  ;;  %p6020_p2 = scmp.lt.s32.totalorder %s6018_s15, %s6011_s12 }
  0x73   : > { %p6015_p7 = pneg %p6014_p3  ;;  %p6021_p1 = por %p6020_p2, %p6019_p12 }
  0x75   : > { %p6022_p4 = pnand %p6021_p1, %p6015_p7 }
  0x77   : > { %6025 = shalt.err (!%p6022_p4)
}
  0x78   : > { %s6112_s10 = smov 512   ;;  %s6113_s16 = smov 32  }
  0x79   : > { %5294 = dma.hbm_to_vmem [thread:$0]  (!%p6310_p11), %s6308_s11, 8192, %s6314_s29, %s6316_s20, %s6112_s10, %s6112_s10, %s6113_s16  }
  0x7a   : > { %p7360_p9 = scmp.ne.s32.totalorder %s7353_s9, 0 }
  0x7b   : > { %s6347_s21 = sand.u32 (!%p7360_p9), 1, %s6092_s25   ;;  %p7361_p0 = scmp.ne.s32.totalorder (!%p7360_p9), %s7351_s30, 0 }
  0x7c   : > { %293 = sbr.rel (%p7360_p9) target bundleno = 1289 (0x509), region = 48  ;;  %s4853_s17 = sshll.u32 (!%p7360_p9), %s6347_s21, 9 }
  0x7d   : > { %s296_s22 = scalar_lea.sflag (!%p7360_p9), [#allocation3], %s6347_s21  ;;  %s6351_s12 = scalar_lea.vmem (!%p7360_p9), [#allocation2], %s4853_s17 }
  0x83   : > { %6071 = dma.done.wait (%p7361_p0), %s296_s22, 8192  }
  0x84   : > { %6073 = vsyncadd (%p7361_p0), %s296_s22, 4294959104  ;;  %p7362_p11 = scmp.eq.s32.totalorder %s6178_s28, 0 }
  0x86   : > { %6075 = dma.done.wait (%p7362_p11), [#allocation6], 40960   ;;  %p7363_p8 = pmov %p7362_p11 }
  0x88   : > { %6077 = vsyncadd (%p7363_p8), [#allocation6], 4294926336  ;;  %p7364_p13 = pmov %p7363_p8 }
  0x89   : > { %p7365_p6 = pmov %p7363_p8 }
  0x8a   : > { %6079 = dma.done.wait (%p7364_p13), [#allocation9], 2048  }
  0x8b   : > { %6081 = vsyncadd (%p7365_p6), [#allocation9], 4294965248  ;;  %v5352_v0 = vld [vmem:[#allocation5 + $0x4] ss:$16 sps:$4 sm:$0xff]   ;;  %v5356_v2 = vld [vmem:[#allocation5] ss:$16 sps:$4 sm:$0xff]  }
  0x8c   : > { %v5354_v1 = vld [vmem:[#allocation5 + $0x204] ss:$16 sps:$4 sm:$0xff]   ;;  %3704 = vmatprep.subr.bf16.mxu1 %v5352_v0  ;;  %v5357_v3 = vld [vmem:[#allocation5 + $0x200] ss:$16 sps:$4 sm:$0xff]   ;;  %vm601_vm0 = vcmask 1043456   ;;  %vm2289_vm1 = vcmask 1041409  }
  0x8d   : > { %3747 = vmatprep.subr.bf16.mxu0 %v5354_v1  ;;  %v5358_v4 = vld [vmem:[#allocation5 + $0x24] ss:$16 sps:$4 sm:$0xff]   ;;  %3705 = vmatpush1.bf16.msra.mxu1 %v5356_v2  ;;  %v5362_v6 = vld [vmem:[#allocation5 + $0x20] ss:$16 sps:$4 sm:$0xff]   ;;  %vm2291_vm2 = vcmask 1042434   ;;  %vm2293_vm3 = vcmask 1043459  }
  0x8e   : > { %3748 = vmatpush1.bf16.msra.mxu0 %v5357_v3  ;;  %v5360_v5 = vld [vmem:[#allocation5 + $0x224] ss:$16 sps:$4 sm:$0xff]   ;;  %3706 = vmatprep.subr.bf16.mxu1 %v5358_v4  ;;  %v5363_v7 = vld [vmem:[#allocation5 + $0x220] ss:$16 sps:$4 sm:$0xff]   ;;  %vm2295_vm4 = vcmask 1044484   ;;  %vm2297_vm5 = vcmask 1045509  }
  0x8f   : > { %3749 = vmatprep.subr.bf16.mxu0 %v5360_v5  ;;  %v5364_v8 = vld [vmem:[#allocation5 + $0x44] ss:$16 sps:$4 sm:$0xff]   ;;  %v5368_v10 = vld [vmem:[#allocation5 + $0x40] ss:$16 sps:$4 sm:$0xff]   ;;  %vm2299_vm6 = vcmask 1046534   ;;  %vm2301_vm7 = vcmask 1047559  }
  0x90   : > { %v5366_v9 = vld [vmem:[#allocation5 + $0x244] ss:$16 sps:$4 sm:$0xff]   ;;  %v5369_v11 = vld [vmem:[#allocation5 + $0x240] ss:$16 sps:$4 sm:$0xff]   ;;  %s4857_s1 = sshll.u32 %s6347_s21, 4  ;;  %s5202_s10 = sshll.u32 %s6178_s28, 8 }
  0x91   : > { %3707 = vmatpush1.bf16.msra.mxu1 %v5362_v6  ;;  %v5370_v12 = vld [vmem:[#allocation5 + $0x64] ss:$16 sps:$4 sm:$0xff]   ;;  %v5374_v14 = vld [vmem:[#allocation5 + $0x60] ss:$16 sps:$4 sm:$0xff]   ;;  %s341_s14 = scalar_lea.vmem [#allocation10], %s4857_s1  ;;  %s7295_s22 = scalar_lea.hbm %s7346_s7, %s5202_s10 }
  0x92   : > { %3750 = vmatpush1.bf16.msra.mxu0 %v5363_v7  ;;  %3708 = vmatprep.subr.bf16.mxu1 %v5364_v8  ;;  %v5372_v13 = vld [vmem:[#allocation5 + $0x264] ss:$16 sps:$4 sm:$0xff]   ;;  %v5375_v15 = vld [vmem:[#allocation5 + $0x260] ss:$16 sps:$4 sm:$0xff]   ;;  %s4740_s15 = sshll.u32 %s341_s14, 4  ;;  %s6114_s28 = smov [#allocation10]   ;;  %s7290_s15 = int_to_ptr.vmem [resolvable:$true] %s4740_s15 }
  0x93   : > { %3751 = vmatprep.subr.bf16.mxu0 %v5366_v9  ;;  %v5376_v16 = vld [vmem:[#allocation5 + $0x84] ss:$16 sps:$4 sm:$0xff]   ;;  %v5380_v18 = vld [vmem:[#allocation5 + $0x80] ss:$16 sps:$4 sm:$0xff]   ;;  %s6026_s30 = scalar_lea.vmem %s7290_s15, 256  ;;  %s6030_s9 = sshll.u32 %s6114_s28, 4  ;;  %s6031_s9 = int_to_ptr.vmem [resolvable:$false] %s6030_s9 }
  0x94   : > { %v5378_v17 = vld [vmem:[#allocation5 + $0x284] ss:$16 sps:$4 sm:$0xff]   ;;  %v5381_v19 = vld [vmem:[#allocation5 + $0x280] ss:$16 sps:$4 sm:$0xff]   ;;  %p6027_p10 = scmp.ne.s32.totalorder %s7290_s15, %s6026_s30  ;;  %s6032_s11 = scalar_lea.vmem %s6031_s9, 512 }
  0x95   : > { %3709 = vmatpush1.bf16.msra.mxu1 %v5368_v10  ;;  %v5382_v20 = vld [vmem:[#allocation5 + $0xa4] ss:$16 sps:$4 sm:$0xff]   ;;  %v5386_v22 = vld [vmem:[#allocation5 + $0xa0] ss:$16 sps:$4 sm:$0xff]   ;;  %p6033_p12 = scmp.lt.s32.totalorder %s7290_s15, %s6031_s9  ;;  %p6034_p2 = scmp.lt.s32.totalorder %s6032_s11, %s6026_s30 }
  0x96   : > { %3752 = vmatpush1.bf16.msra.mxu0 %v5369_v11  ;;  %3710 = vmatprep.subr.bf16.mxu1 %v5370_v12  ;;  %v5384_v21 = vld [vmem:[#allocation5 + $0x2a4] ss:$16 sps:$4 sm:$0xff]   ;;  %v5387_v23 = vld [vmem:[#allocation5 + $0x2a0] ss:$16 sps:$4 sm:$0xff]   ;;  %p6028_p3 = pnand %p6027_p10, %p6299_p5 }
  0x97   : > { %3753 = vmatprep.subr.bf16.mxu0 %v5372_v13  ;;  %v5388_v24 = vld [vmem:[#allocation5 + $0xc4] ss:$16 sps:$4 sm:$0xff]   ;;  %v5392_v26 = vld [vmem:[#allocation5 + $0xc0] ss:$16 sps:$4 sm:$0xff]   ;;  %p6035_p1 = por %p6034_p2, %p6033_p12 }
  0x98   : > { %v5390_v25 = vld [vmem:[#allocation5 + $0x2c4] ss:$16 sps:$4 sm:$0xff]   ;;  %v5393_v27 = vld [vmem:[#allocation5 + $0x2c0] ss:$16 sps:$4 sm:$0xff]   ;;  %p6029_p7 = pneg %p6028_p3 }
  0x99   : > { %3711 = vmatpush1.bf16.msra.mxu1 %v5374_v14  ;;  %v5394_v28 = vld [vmem:[#allocation5 + $0xe4] ss:$16 sps:$4 sm:$0xff]   ;;  %v5398_v30 = vld [vmem:[#allocation5 + $0xe0] ss:$16 sps:$4 sm:$0xff]  }
  0x9a   : > { %3754 = vmatpush1.bf16.msra.mxu0 %v5375_v15  ;;  %3712 = vmatprep.subr.bf16.mxu1 %v5376_v16  ;;  %v5396_v29 = vld [vmem:[#allocation5 + $0x2e4] ss:$16 sps:$4 sm:$0xff]   ;;  %v5399_v31 = vld [vmem:[#allocation5 + $0x2e0] ss:$16 sps:$4 sm:$0xff]   ;;  %p6036_p4 = pnand %p6035_p1, %p6029_p7 }
  0x9b   : > { %3755 = vmatprep.subr.bf16.mxu0 %v5378_v17  ;;  %v5400_v32 = vld [vmem:[#allocation5 + $0x104] ss:$16 sps:$4 sm:$0xff]   ;;  %v5404_v34 = vld [vmem:[#allocation5 + $0x100] ss:$16 sps:$4 sm:$0xff]  }
  0x9c   : > { %v5402_v33 = vld [vmem:[#allocation5 + $0x304] ss:$16 sps:$4 sm:$0xff]   ;;  %v5405_v35 = vld [vmem:[#allocation5 + $0x300] ss:$16 sps:$4 sm:$0xff]  }
  0x9d   : > { %3713 = vmatpush1.bf16.msra.mxu1 %v5380_v18  ;;  %v5406_v36 = vld [vmem:[#allocation5 + $0x124] ss:$16 sps:$4 sm:$0xff]   ;;  %v5410_v38 = vld [vmem:[#allocation5 + $0x120] ss:$16 sps:$4 sm:$0xff]  }
  0x9e   : > { %3756 = vmatpush1.bf16.msra.mxu0 %v5381_v19  ;;  %3714 = vmatprep.subr.bf16.mxu1 %v5382_v20  ;;  %v5408_v37 = vld [vmem:[#allocation5 + $0x324] ss:$16 sps:$4 sm:$0xff]   ;;  %v5411_v39 = vld [vmem:[#allocation5 + $0x320] ss:$16 sps:$4 sm:$0xff]  }
  0x9f   : > { %3757 = vmatprep.subr.bf16.mxu0 %v5384_v21  ;;  %v5412_v40 = vld [vmem:[#allocation5 + $0x144] ss:$16 sps:$4 sm:$0xff]   ;;  %v5416_v42 = vld [vmem:[#allocation5 + $0x140] ss:$16 sps:$4 sm:$0xff]  }
  0xa0   : > { %v5414_v41 = vld [vmem:[#allocation5 + $0x344] ss:$16 sps:$4 sm:$0xff]   ;;  %v5417_v43 = vld [vmem:[#allocation5 + $0x340] ss:$16 sps:$4 sm:$0xff]  }
  0xa1   : > { %3715 = vmatpush1.bf16.msra.mxu1 %v5386_v22  ;;  %v5418_v44 = vld [vmem:[#allocation5 + $0x164] ss:$16 sps:$4 sm:$0xff]   ;;  %v5422_v46 = vld [vmem:[#allocation5 + $0x160] ss:$16 sps:$4 sm:$0xff]  }
  0xa2   : > { %3758 = vmatpush1.bf16.msra.mxu0 %v5387_v23  ;;  %3716 = vmatprep.subr.bf16.mxu1 %v5388_v24  ;;  %v5420_v45 = vld [vmem:[#allocation5 + $0x364] ss:$16 sps:$4 sm:$0xff]   ;;  %v5423_v47 = vld [vmem:[#allocation5 + $0x360] ss:$16 sps:$4 sm:$0xff]  }
  0xa3   : > { %3759 = vmatprep.subr.bf16.mxu0 %v5390_v25  ;;  %v345_v48 = vld [vmem:[%s6351_s12] sm:$0xff] }
  0xa4   : > { %v5424_v49 = vld [vmem:[#allocation5 + $0x184] ss:$16 sps:$4 sm:$0xff]   ;;  %v473_v54 = vcombine.high %v345_v48, %v345_v48  ;;  %v6376_v55 = vsel %vm601_vm0, %v345_v48, 0.0  ;;  %v5428_v6 = vld [vmem:[#allocation5 + $0x180] ss:$16 sps:$4 sm:$0xff]  }
  0xa5   : > { %3717 = vmatpush1.bf16.msra.mxu1 %v5392_v26  ;;  %v5426_v50 = vld [vmem:[#allocation5 + $0x384] ss:$16 sps:$4 sm:$0xff]   ;;  %v603_v62 = vrot.slane %v6376_v55, 4  ;;  %v5429_v21 = vld [vmem:[#allocation5 + $0x380] ss:$16 sps:$4 sm:$0xff]  }
  0xa6   : > { %3760 = vmatpush1.bf16.msra.mxu0 %v5393_v27  ;;  %3718 = vmatprep.subr.bf16.mxu1 %v5394_v28  ;;  %v6367_v51 = vld [vmem:[%s6351_s12 + $0x20] sm:$0xff]  ;;  %v609_v5 = vsel %vm601_vm0, %v473_v54, 0.0 }
  0xa7   : > { %3761 = vmatprep.subr.bf16.mxu0 %v5396_v29  ;;  %v6370_v52 = vld [vmem:[%s6351_s12 + $0x40] sm:$0xff]  ;;  %v477_v59 = vcombine.high %v6367_v51, %v6367_v51  ;;  %v610_v13 = vrot.slane %v609_v5, 4 }
  0xa8   : > { %v6373_v53 = vld [vmem:[%s6351_s12 + $0x60] sm:$0xff]  ;;  %v481_v60 = vcombine.high %v6370_v52, %v6370_v52 }
  0xa9   : > { %3719 = vmatpush1.bf16.msra.mxu1 %v5398_v30  ;;  %v6379_v56 = vld [vmem:[%s6351_s12 + $0x80] sm:$0xff]  ;;  %v485_v61 = vcombine.high %v6373_v53, %v6373_v53  ;;  %v665_v20 = vsel %vm601_vm0, %v477_v59, 0.0  ;;  %v611_v28 = vadd.f32 %v610_v13, %v609_v5 }
  0xaa   : > { %3762 = vmatpush1.bf16.msra.mxu0 %v5399_v31  ;;  %3720 = vmatprep.subr.bf16.mxu1 %v5400_v32  ;;  %v6382_v57 = vld [vmem:[%s6351_s12 + $0xa0] sm:$0xff]  ;;  %v489_v2 = vcombine.high %v6379_v56, %v6379_v56  ;;  %v666_v26 = vrot.slane %v665_v20, 4  ;;  %v721_v29 = vsel %vm601_vm0, %v481_v60, 0.0 }
  0xab   : > { %3763 = vmatprep.subr.bf16.mxu0 %v5402_v33  ;;  %v6385_v58 = vld [vmem:[%s6351_s12 + $0xc0] sm:$0xff]  ;;  %v493_v3 = vcombine.high %v6382_v57, %v6382_v57  ;;  %v777_v30 = vsel %vm601_vm0, %v485_v61, 0.0  ;;  %v722_v33 = vrot.slane %v721_v29, 4 }
  0xac   : > { %v6395_v63 = vld [vmem:[%s6351_s12 + $0xe0] sm:$0xff]  ;;  %v497_v4 = vcombine.high %v6385_v58, %v6385_v58  ;;  %v833_v31 = vsel %vm601_vm0, %v489_v2, 0.0  ;;  %v667_v32 = vadd.f32 %v666_v26, %v665_v20 }
  0xad   : > { %3721 = vmatpush1.bf16.msra.mxu1 %v5404_v34  ;;  %v6398_v0 = vld [vmem:[%s6351_s12 + $0x100] sm:$0xff]  ;;  %v501_v10 = vcombine.high %v6395_v63, %v6395_v63  ;;  %v778_v34 = vrot.slane %v777_v30, 4 }
  0xae   : > { %3764 = vmatpush1.bf16.msra.mxu0 %v5405_v35  ;;  %3722 = vmatprep.subr.bf16.mxu1 %v5406_v36  ;;  %v6401_v1 = vld [vmem:[%s6351_s12 + $0x120] sm:$0xff]  ;;  %v505_v11 = vcombine.high %v6398_v0, %v6398_v0  ;;  %v834_v35 = vrot.slane %v833_v31, 4 }
  0xaf   : > { %3765 = vmatprep.subr.bf16.mxu0 %v5408_v37  ;;  %v6411_v7 = vld [vmem:[%s6351_s12 + $0x140] sm:$0xff]  ;;  %v509_v12 = vcombine.high %v6401_v1, %v6401_v1  ;;  %v612_v37 = vrot.slane %v611_v28, 2 }
  0xb0   : > { %v6414_v8 = vld [vmem:[%s6351_s12 + $0x160] sm:$0xff]  ;;  %v513_v17 = vcombine.high %v6411_v7, %v6411_v7 }
  0xb1   : > { %3723 = vmatpush1.bf16.msra.mxu1 %v5410_v38  ;;  %v6417_v9 = vld [vmem:[%s6351_s12 + $0x180] sm:$0xff]  ;;  %v517_v18 = vcombine.high %v6414_v8, %v6414_v8  ;;  %v889_v38 = vsel %vm601_vm0, %v493_v3, 0.0  ;;  %v613_v48 = vadd.f32 %v612_v37, %v611_v28 }
  0xb2   : > { %3766 = vmatpush1.bf16.msra.mxu0 %v5411_v39  ;;  %3724 = vmatprep.subr.bf16.mxu1 %v5412_v40  ;;  %v6426_v14 = vld [vmem:[%s6351_s12 + $0x1a0] sm:$0xff]  ;;  %v521_v19 = vcombine.high %v6417_v9, %v6417_v9  ;;  %v945_v39 = vsel %vm601_vm0, %v497_v4, 0.0  ;;  %v1001_v40 = vsel %vm601_vm0, %v501_v10, 0.0 }
  0xb3   : > { %3767 = vmatprep.subr.bf16.mxu0 %v5414_v41  ;;  %v6429_v15 = vld [vmem:[%s6351_s12 + $0x1c0] sm:$0xff]  ;;  %v525_v23 = vcombine.high %v6426_v14, %v6426_v14  ;;  %v1002_v54 = vrot.slane %v1001_v40, 4  ;;  %v614_v10 = vrot.slane %v613_v48, 1 }
  0xb4   : > { %v6432_v16 = vld [vmem:[%s6351_s12 + $0x1e0] sm:$0xff]  ;;  %v529_v24 = vcombine.high %v6429_v15, %v6429_v15 }
  0xb5   : > { %3725 = vmatpush1.bf16.msra.mxu1 %v5416_v42  ;;  %v5430_v22 = vld [vmem:[#allocation5 + $0x1a4] ss:$16 sps:$4 sm:$0xff]   ;;  %v533_v25 = vcombine.high %v6432_v16, %v6432_v16  ;;  %v5434_v36 = vld [vmem:[#allocation5 + $0x1a0] ss:$16 sps:$4 sm:$0xff]  }
  0xb6   : > { %3768 = vmatpush1.bf16.msra.mxu0 %v5417_v43  ;;  %3726 = vmatprep.subr.bf16.mxu1 %v5418_v44  ;;  %v5432_v27 = vld [vmem:[#allocation5 + $0x3a4] ss:$16 sps:$4 sm:$0xff]   ;;  %v5435_v41 = vld [vmem:[#allocation5 + $0x3a0] ss:$16 sps:$4 sm:$0xff]   ;;  %v668_v43 = vrot.slane %v667_v32, 2  ;;  %v723_v44 = vadd.f32 %v722_v33, %v721_v29  ;;  %v6453_v29 = vadd.f32 %v614_v10, %v613_v48 }
  0xb7   : > { %3769 = vmatprep.subr.bf16.mxu0 %v5420_v45  ;;  %v5436_v42 = vld [vmem:[#allocation5 + $0x1c4] ss:$16 sps:$4 sm:$0xff]   ;;  %v779_v45 = vadd.f32 %v778_v34, %v777_v30  ;;  %v5440_v59 = vld [vmem:[#allocation5 + $0x1c0] ss:$16 sps:$4 sm:$0xff]   ;;  %v5485_v48 = vld [vmem:[#allocation5 + $0xc] ss:$16 sps:$4 sm:$0xff]  }
  0xb8   : > { %v5441_v60 = vld [vmem:[#allocation5 + $0x3c0] ss:$16 sps:$4 sm:$0xff]   ;;  %v669_v61 = vadd.f32 %v668_v43, %v667_v32  ;;  %v724_v2 = vrot.slane %v723_v44, 2  ;;  %v5442_v5 = vld [vmem:[#allocation5 + $0x1e4] ss:$16 sps:$4 sm:$0xff]  }
  0xb9   : > { %3727 = vmatpush1.bf16.msra.mxu1 %v5422_v46  ;;  %v835_v46 = vadd.f32 %v834_v35, %v833_v31  ;;  %v780_v3 = vrot.slane %v779_v45, 2  ;;  %v5446_v33 = vld [vmem:[#allocation5 + $0x1e0] ss:$16 sps:$4 sm:$0xff]   ;;  %v5482_v43 = vld [vmem:[#allocation5 + $0x404] ss:$16 sps:$4 sm:$0xff]  }
  0xba   : > { %3770 = vmatpush1.bf16.msra.mxu0 %v5423_v47  ;;  %3728 = vmatprep.subr.bf16.mxu1 %v5424_v49  ;;  %v5438_v47 = vld [vmem:[#allocation5 + $0x3c4] ss:$16 sps:$4 sm:$0xff]   ;;  %v890_v49 = vrot.slane %v889_v38, 4  ;;  %v725_v26 = vadd.f32 %v724_v2, %v723_v44  ;;  %v1225_v2 = vsel %vm601_vm0, %v517_v18, 0.0  ;;  %v1337_v18 = vsel %vm601_vm0, %v525_v23, 0.0 }
  0xbb   : > { %3771 = vmatprep.subr.bf16.mxu0 %v5426_v50  ;;  %v946_v50 = vrot.slane %v945_v39, 4  ;;  %v836_v4 = vrot.slane %v835_v46, 2 }
  0xbc   : > { %v891_v13 = vadd.f32 %v890_v49, %v889_v38  ;;  %v726_v35 = vrot.slane %v725_v26, 1 }
  0xbd   : > { %3729 = vmatpush1.bf16.msra.mxu1 %v5428_v6  ;;  %v5444_v6 = vld [vmem:[#allocation5 + $0x3e4] ss:$16 sps:$4 sm:$0xff]   ;;  %v947_v20 = vadd.f32 %v946_v50, %v945_v39  ;;  %v837_v28 = vadd.f32 %v836_v4, %v835_v46  ;;  %v5447_v39 = vld [vmem:[#allocation5 + $0x3e0] ss:$16 sps:$4 sm:$0xff]  }
  0xbe   : > { %3772 = vmatpush1.bf16.msra.mxu0 %v5429_v21  ;;  %3730 = vmatprep.subr.bf16.mxu1 %v5430_v22  ;;  %v1003_v21 = vadd.f32 %v1002_v54, %v1001_v40  ;;  %v670_v22 = vrot.slane %v669_v61, 1  ;;  %v892_v30 = vrot.slane %v891_v13, 2  ;;  %v6461_v44 = vadd.f32 %v726_v35, %v725_v26 }
  0xbf   : > { %3773 = vmatprep.subr.bf16.mxu0 %v5432_v27  ;;  %v781_v27 = vadd.f32 %v780_v3, %v779_v45  ;;  %v948_v31 = vrot.slane %v947_v20, 2  ;;  %v838_v38 = vrot.slane %v837_v28, 1 }
  0xc0   : > { %v1004_v32 = vrot.slane %v1003_v21, 2  ;;  %v6455_v34 = vadd.f32 %v670_v22, %v669_v61  ;;  %v1169_v61 = vsel %vm601_vm0, %v513_v17, 0.0  ;;  %v1393_v22 = vsel %vm601_vm0, %v529_v24, 0.0 }
  0xc1   : > { %3731 = vmatpush1.bf16.msra.mxu1 %v5434_v36  ;;  %v782_v37 = vrot.slane %v781_v27, 1  ;;  %v893_v36 = vadd.f32 %v892_v30, %v891_v13  ;;  %v949_v40 = vadd.f32 %v948_v31, %v947_v20  ;;  %v6465_v46 = vadd.f32 %v838_v38, %v837_v28 }
  0xc2   : > { %3774 = vmatpush1.bf16.msra.mxu0 %v5435_v41  ;;  %3732 = vmatprep.subr.bf16.mxu1 %v5436_v42  ;;  %v1005_v41 = vadd.f32 %v1004_v32, %v1003_v21  ;;  %v1057_v42 = vsel %vm601_vm0, %v505_v11, 0.0  ;;  %v1113_v11 = vsel %vm601_vm0, %v509_v12, 0.0  ;;  %v1226_v13 = vrot.slane %v1225_v2, 4 }
  0xc3   : > { %3775 = vmatprep.subr.bf16.mxu0 %v5438_v47  ;;  %v6463_v45 = vadd.f32 %v782_v37, %v781_v27  ;;  %v1058_v47 = vrot.slane %v1057_v42, 4  ;;  %v894_v49 = vrot.slane %v893_v36, 1  ;;  %v950_v50 = vrot.slane %v949_v40, 1 }
  0xc4   : > { %v1006_v54 = vrot.slane %v1005_v41, 1  ;;  %v1281_v20 = vsel %vm601_vm0, %v521_v19, 0.0  ;;  %v1227_v28 = vadd.f32 %v1226_v13, %v1225_v2  ;;  %v1338_v30 = vrot.slane %v1337_v18, 4 }
  0xc5   : > { %3733 = vmatpush1.bf16.msra.mxu1 %v5440_v59  ;;  %v1059_v59 = vadd.f32 %v1058_v47, %v1057_v42  ;;  %v895_v3 = vadd.f32 %v894_v49, %v893_v36  ;;  %v951_v4 = vadd.f32 %v950_v50, %v949_v40  ;;  %v1282_v21 = vrot.slane %v1281_v20, 4 }
  0xc6   : > { %3776 = vmatpush1.bf16.msra.mxu0 %v5441_v60  ;;  %3734 = vmatprep.subr.bf16.mxu1 %v5442_v5  ;;  %v1114_v60 = vrot.slane %v1113_v11, 4  ;;  %v1007_v5 = vadd.f32 %v1006_v54, %v1005_v41  ;;  %v1394_v32 = vrot.slane %v1393_v22, 4  ;;  %v1228_v37 = vrot.slane %v1227_v28, 2 }
  0xc7   : > { %3777 = vmatprep.subr.bf16.mxu0 %v5444_v6  ;;  %v1170_v6 = vrot.slane %v1169_v61, 4  ;;  %v1060_v10 = vrot.slane %v1059_v59, 2  ;;  %v1283_v19 = vadd.f32 %v1282_v21, %v1281_v20  ;;  %v1339_v38 = vadd.f32 %v1338_v30, %v1337_v18 }
  0xc8   : > { %v1115_v12 = vadd.f32 %v1114_v60, %v1113_v11  ;;  %v1395_v36 = vadd.f32 %v1394_v32, %v1393_v22  ;;  %v1508_v20 = vmul.f32 0.25, %v6455_v34  ;;  %v1540_v30 = vmul.f32 0.25, %v895_v3 }
  0xc9   : > { %3735 = vmatpush1.bf16.msra.mxu1 %v5446_v33  ;;  %v1171_v17 = vadd.f32 %v1170_v6, %v1169_v61  ;;  %v1061_v26 = vadd.f32 %v1060_v10, %v1059_v59  ;;  %v1449_v33 = vsel %vm601_vm0, %v533_v25, 0.0  ;;  %v1284_v24 = vrot.slane %v1283_v19, 2 }
  0xca   : > { %3778 = vmatpush1.bf16.msra.mxu0 %v5447_v39  ;;  %3876 = vmatprep.subr.bf16.mxu1 %v5485_v48  ;;  %v1116_v27 = vrot.slane %v1115_v12, 2  ;;  %v1450_v40 = vrot.slane %v1449_v33, 4  ;;  %v1340_v47 = vrot.slane %v1339_v38, 2  ;;  %v1396_v50 = vrot.slane %v1395_v36, 2 }
  0xcb   : > { %3790 = vmatprep.subr.bf16.mxu0 %v5482_v43  ;;  %v1172_v31 = vrot.slane %v1171_v17, 2  ;;  %v1062_v23 = vrot.slane %v1061_v26, 1  ;;  %v1229_v43 = vadd.f32 %v1228_v37, %v1227_v28  ;;  %v1285_v49 = vadd.f32 %v1284_v24, %v1283_v19 }
  0xcc   : > { %v1117_v35 = vadd.f32 %v1116_v27, %v1115_v12  ;;  %v1451_v54 = vadd.f32 %v1450_v40, %v1449_v33  ;;  %v1341_v60 = vadd.f32 %v1340_v47, %v1339_v38  ;;  %v1500_v25 = vmul.f32 0.25, %v6453_v29 }
  0xcd   : > { %v1173_v39 = vadd.f32 %v1172_v31, %v1171_v17  ;;  %v1063_v41 = vadd.f32 %v1062_v23, %v1061_v26  ;;  %v1230_v59 = vrot.slane %v1229_v43, 1  ;;  %v1286_v2 = vrot.slane %v1285_v49, 1 }
  0xce   : > { %v1118_v42 = vrot.slane %v1117_v35, 1  ;;  %v1397_v6 = vadd.f32 %v1396_v50, %v1395_v36  ;;  %v1452_v10 = vrot.slane %v1451_v54, 2  ;;  %v1342_v13 = vrot.slane %v1341_v60, 1 }
  0xcf   : > { %v1174_v48 = vrot.slane %v1173_v39, 1  ;;  %v1231_v12 = vadd.f32 %v1230_v59, %v1229_v43  ;;  %v1516_v17 = vmul.f32 0.25, %v6461_v44  ;;  %v1287_v21 = vadd.f32 %v1286_v2, %v1285_v49 }
  0xd0   : > { %v1119_v11 = vadd.f32 %v1118_v42, %v1117_v35  ;;  %v1398_v18 = vrot.slane %v1397_v6, 1  ;;  %v1453_v22 = vadd.f32 %v1452_v10, %v1451_v54  ;;  %v1524_v26 = vmul.f32 0.25, %v6463_v45 }
  0xd1   : > { %v1175_v61 = vadd.f32 %v1174_v48, %v1173_v39  ;;  %v1343_v27 = vadd.f32 %v1342_v13, %v1341_v60  ;;  %v1532_v28 = vmul.f32 0.25, %v6465_v46  ;;  %v1548_v29 = vmul.f32 0.25, %v951_v4 }
  0xd2   : > { %v1399_v31 = vadd.f32 %v1398_v18, %v1397_v6  ;;  %v1454_v19 = vrot.slane %v1453_v22, 1  ;;  %v1556_v32 = vmul.f32 0.25, %v1007_v5  ;;  %v1564_v33 = vmul.f32 0.25, %v1063_v41 }
  0xd3   : > { %v1572_v23 = vmul.f32 0.25, %v1119_v11  ;;  %v1580_v35 = vmul.f32 0.25, %v1175_v61  ;;  %v1588_v34 = vmul.f32 0.25, %v1231_v12  ;;  %v1596_v37 = vmul.f32 0.25, %v1287_v21 }
  0xd4   : > { %v1455_v44 = vadd.f32 %v1454_v19, %v1453_v22  ;;  %v1604_v38 = vmul.f32 0.25, %v1343_v27  ;;  %v1612_v39 = vmul.f32 0.25, %v1399_v31  ;;  %v1628_v24 = vpack.c.bf16 %v1500_v25, %v1500_v25 }
  0xd5   : > { %v1636_v45 = vpack.c.bf16 %v1508_v20, %v1508_v20  ;;  %v1644_v36 = vpack.c.bf16 %v1516_v17, %v1516_v17  ;;  %v1652_v46 = vpack.c.bf16 %v1524_v26, %v1524_v26  ;;  %v1660_v3 = vpack.c.bf16 %v1532_v28, %v1532_v28 }
  0xd6   : > { %v1620_v4 = vmul.f32 0.25, %v1455_v44  ;;  %v1668_v40 = vpack.c.bf16 %v1540_v30, %v1540_v30  ;;  %v1676_v5 = vpack.c.bf16 %v1548_v29, %v1548_v29  ;;  %v1684_v41 = vpack.c.bf16 %v1556_v32, %v1556_v32 }
  0xd7   : > { %v1692_v42 = vpack.c.bf16 %v1564_v33, %v1564_v33  ;;  %v1700_v43 = vpack.c.bf16 %v1572_v23, %v1572_v23  ;;  %v1708_v47 = vpack.c.bf16 %v1580_v35, %v1580_v35  ;;  %v1716_v48 = vpack.c.bf16 %v1588_v34, %v1588_v34 }
  0xd8   : > { %v1724_v49 = vpack.c.bf16 %v1596_v37, %v1596_v37  ;;  %v1732_v50 = vpack.c.bf16 %v1604_v38, %v1604_v38  ;;  %v1740_v54 = vpack.c.bf16 %v1612_v39, %v1612_v39  ;;  %v1748_v11 = vpack.c.bf16 %v1620_v4, %v1620_v4 }
  0xd9   : > { %v2162_v59 = vunpack.c.l.b16 %v1628_v24  ;;  %v2170_v60 = vunpack.c.l.b16 %v1636_v45  ;;  %v2178_v25 = vunpack.c.l.b16 %v1644_v36  ;;  %v2186_v61 = vunpack.c.l.b16 %v1652_v46 }
  0xda   : > { %v2194_v2 = vunpack.c.l.b16 %v1660_v3  ;;  %v2202_v6 = vunpack.c.l.b16 %v1668_v40  ;;  %v2210_v10 = vunpack.c.l.b16 %v1676_v5  ;;  %v2218_v12 = vunpack.c.l.b16 %v1684_v41 }
  0xdb   : > { %v2226_v13 = vunpack.c.l.b16 %v1692_v42  ;;  %v2234_v20 = vunpack.c.l.b16 %v1700_v43  ;;  %v2242_v17 = vunpack.c.l.b16 %v1708_v47  ;;  %v2250_v21 = vunpack.c.l.b16 %v1716_v48 }
  0xdc   : > { %v2258_v18 = vunpack.c.l.b16 %v1724_v49  ;;  %v2266_v22 = vunpack.c.l.b16 %v1732_v50  ;;  %v2274_v26 = vunpack.c.l.b16 %v1740_v54  ;;  %v2282_v27 = vunpack.c.l.b16 %v1748_v11 }
  0xdd   : > { %v2303_v28 = vsel %vm2289_vm1, %v2170_v60, %v2162_v59  ;;  %v2359_v30 = vsel %vm2289_vm1, %v2234_v20, %v2226_v13  ;;  %v604_v29 = vadd.f32 %v603_v62, %v6376_v55  ;;  %v658_v31 = vsel %vm601_vm0, %v6367_v51, 0.0 }
  0xde   : > { %v2304_v19 = vsel %vm2291_vm2, %v2178_v25, %v2303_v28  ;;  %v2360_v32 = vsel %vm2291_vm2, %v2242_v17, %v2359_v30  ;;  %v659_v33 = vrot.slane %v658_v31, 4  ;;  %v714_v23 = vsel %vm601_vm0, %v6370_v52, 0.0 }
  0xdf   : > { %v2305_v35 = vsel %vm2293_vm3, %v2186_v61, %v2304_v19  ;;  %v2361_v34 = vsel %vm2293_vm3, %v2250_v21, %v2360_v32  ;;  %v605_v37 = vrot.slane %v604_v29, 2  ;;  %v715_v44 = vrot.slane %v714_v23, 4 }
  0xe0   : > { %v2306_v38 = vsel %vm2295_vm4, %v2194_v2, %v2305_v35  ;;  %v2362_v55 = vsel %vm2295_vm4, %v2258_v18, %v2361_v34  ;;  %v660_v62 = vadd.f32 %v659_v33, %v658_v31  ;;  %v770_v51 = vsel %vm601_vm0, %v6373_v53, 0.0 }
  0xe1   : > { %v2307_v39 = vsel %vm2297_vm5, %v2202_v6, %v2306_v38  ;;  %v2363_v24 = vsel %vm2297_vm5, %v2266_v22, %v2362_v55  ;;  %v606_v45 = vadd.f32 %v605_v37, %v604_v29  ;;  %v716_v52 = vadd.f32 %v715_v44, %v714_v23 }
  0xe2   : > { %v2308_v36 = vsel %vm2299_vm6, %v2210_v10, %v2307_v39  ;;  %v2364_v46 = vsel %vm2299_vm6, %v2274_v26, %v2363_v24  ;;  %v661_v3 = vrot.slane %v660_v62, 2  ;;  %v771_v4 = vrot.slane %v770_v51, 4 }
  0xe3   : > { %v2309_v40 = vsel %vm2301_vm7, %v2218_v12, %v2308_v36  ;;  %v2365_v5 = vsel %vm2301_vm7, %v2282_v27, %v2364_v46  ;;  %v607_v41 = vrot.slane %v606_v45, 1  ;;  %v717_v42 = vrot.slane %v716_v52, 2 }
  0xe4   : > { %v6523_v43 = vpack.c.b16 %v2365_v5, %v2309_v40  ;;  %v662_v53 = vadd.f32 %v661_v3, %v660_v62  ;;  %v772_v47 = vadd.f32 %v771_v4, %v770_v51  ;;  %v826_v48 = vsel %vm601_vm0, %v6379_v56, 0.0 }
  0xe5   : > { %v6527_v49 = vadd.f32 %v607_v41, %v606_v45  ;;  %v718_v50 = vadd.f32 %v717_v42, %v716_v52  ;;  %v827_v54 = vrot.slane %v826_v48, 4  ;;  %v882_v11 = vsel %vm601_vm0, %v6382_v57, 0.0 }
  0xe6   : > { %3736 = vmatprep.mubr.bf16.mxu1 %v6523_v43  ;;  %v663_v59 = vrot.slane %v662_v53, 1  ;;  %v773_v60 = vrot.slane %v772_v47, 2  ;;  %v883_v25 = vrot.slane %v882_v11, 4  ;;  %v938_v61 = vsel %vm601_vm0, %v6385_v58, 0.0 }
  0xe7   : > { %v719_v2 = vrot.slane %v718_v50, 1  ;;  %v828_v6 = vadd.f32 %v827_v54, %v826_v48  ;;  %v939_v10 = vrot.slane %v938_v61, 4  ;;  %v994_v56 = vsel %vm601_vm0, %v6395_v63, 0.0 }
  0xe8   : > { %v6536_v12 = vadd.f32 %v663_v59, %v662_v53  ;;  %v774_v13 = vadd.f32 %v773_v60, %v772_v47  ;;  %v884_v20 = vadd.f32 %v883_v25, %v882_v11  ;;  %v995_v17 = vrot.slane %v994_v56, 4 }
  0xe9   : > { %v6538_v57 = vadd.f32 %v719_v2, %v718_v50  ;;  %v829_v21 = vrot.slane %v828_v6, 2  ;;  %v940_v18 = vadd.f32 %v939_v10, %v938_v61  ;;  %v1050_v22 = vsel %vm601_vm0, %v6398_v0, 0.0 }
  0xea   : > { %v775_v26 = vrot.slane %v774_v13, 1  ;;  %v885_v58 = vrot.slane %v884_v20, 2  ;;  %v996_v27 = vadd.f32 %v995_v17, %v994_v56  ;;  %v1051_v28 = vrot.slane %v1050_v22, 4 }
  0xeb   : > { %v830_v30 = vadd.f32 %v829_v21, %v828_v6  ;;  %v941_v29 = vrot.slane %v940_v18, 2  ;;  %v1106_v63 = vsel %vm601_vm0, %v6401_v1, 0.0  ;;  %v1162_v31 = vsel %vm601_vm0, %v6411_v7, 0.0 }
  0xec   : > { %v776_v19 = vadd.f32 %v775_v26, %v774_v13  ;;  %v886_v32 = vadd.f32 %v885_v58, %v884_v20  ;;  %v997_v33 = vrot.slane %v996_v27, 2  ;;  %v1052_v23 = vadd.f32 %v1051_v28, %v1050_v22 }
  0xed   : > { %v831_v35 = vrot.slane %v830_v30, 1  ;;  %v942_v34 = vadd.f32 %v941_v29, %v940_v18  ;;  %v1107_v37 = vrot.slane %v1106_v63, 4  ;;  %v1163_v0 = vrot.slane %v1162_v31, 4 }
  0xee   : > { %v887_v44 = vrot.slane %v886_v32, 1  ;;  %v998_v38 = vadd.f32 %v997_v33, %v996_v27  ;;  %v1053_v55 = vrot.slane %v1052_v23, 2  ;;  %v1218_v62 = vsel %vm601_vm0, %v6414_v8, 0.0 }
  0xef   : > { %v832_v51 = vadd.f32 %v831_v35, %v830_v30  ;;  %v943_v39 = vrot.slane %v942_v34, 1  ;;  %v1108_v1 = vadd.f32 %v1107_v37, %v1106_v63  ;;  %v1164_v24 = vadd.f32 %v1163_v0, %v1162_v31 }
  0xf0   : > { %v888_v45 = vadd.f32 %v887_v44, %v886_v32  ;;  %v999_v7 = vrot.slane %v998_v38, 1  ;;  %v1054_v52 = vadd.f32 %v1053_v55, %v1052_v23  ;;  %v1219_v36 = vrot.slane %v1218_v62, 4 }
  0xf1   : > { %v944_v46 = vadd.f32 %v943_v39, %v942_v34  ;;  %v1109_v3 = vrot.slane %v1108_v1, 2  ;;  %v1165_v4 = vrot.slane %v1164_v24, 2  ;;  %v1274_v40 = vsel %vm601_vm0, %v6417_v9, 0.0 }
  0xf2   : > { %v1000_v5 = vadd.f32 %v999_v7, %v998_v38  ;;  %v1055_v41 = vrot.slane %v1054_v52, 1  ;;  %v1220_v42 = vadd.f32 %v1219_v36, %v1218_v62  ;;  %v1275_v53 = vrot.slane %v1274_v40, 4 }
  0xf3   : > { %v1110_v47 = vadd.f32 %v1109_v3, %v1108_v1  ;;  %v1166_v8 = vadd.f32 %v1165_v4, %v1164_v24  ;;  %v1330_v48 = vsel %vm601_vm0, %v6426_v14, 0.0  ;;  %v1386_v50 = vsel %vm601_vm0, %v6429_v15, 0.0 }
  0xf4   : > { %v1056_v54 = vadd.f32 %v1055_v41, %v1054_v52  ;;  %v1221_v11 = vrot.slane %v1220_v42, 2  ;;  %v1276_v59 = vadd.f32 %v1275_v53, %v1274_v40  ;;  %v1331_v60 = vrot.slane %v1330_v48, 4 }
  0xf5   : > { %v1111_v25 = vrot.slane %v1110_v47, 1  ;;  %v1167_v61 = vrot.slane %v1166_v8, 1  ;;  %v1387_v2 = vrot.slane %v1386_v50, 4  ;;  %v1442_v9 = vsel %vm601_vm0, %v6432_v16, 0.0 }
  0xf6   : > { %v1222_v6 = vadd.f32 %v1221_v11, %v1220_v42  ;;  %v1277_v10 = vrot.slane %v1276_v59, 2  ;;  %v1332_v56 = vadd.f32 %v1331_v60, %v1330_v48  ;;  %v1443_v13 = vrot.slane %v1442_v9, 4  ;;  %v6560_v11 = vld [vmem:[%s6351_s12 + $0x8] sm:$0xff] }
  0xf7   : > { %v1112_v20 = vadd.f32 %v1111_v25, %v1110_v47  ;;  %v1168_v17 = vadd.f32 %v1167_v61, %v1166_v8  ;;  %v1388_v14 = vadd.f32 %v1387_v2, %v1386_v50  ;;  %v1499_v21 = vmul.f32 0.25, %v6527_v49  ;;  %v6563_v2 = vld [vmem:[%s6351_s12 + $0x28] sm:$0xff] }
  0xf8   : > { %v1223_v15 = vrot.slane %v1222_v6, 1  ;;  %v1278_v18 = vadd.f32 %v1277_v10, %v1276_v59  ;;  %v1333_v22 = vrot.slane %v1332_v56, 2  ;;  %v1444_v26 = vadd.f32 %v1443_v13, %v1442_v9  ;;  %v6566_v9 = vld [vmem:[%s6351_s12 + $0x48] sm:$0xff] }
  0xf9   : > { %v1389_v58 = vrot.slane %v1388_v14, 2  ;;  %v1507_v27 = vmul.f32 0.25, %v6536_v12  ;;  %v1515_v28 = vmul.f32 0.25, %v6538_v57  ;;  %v1523_v30 = vmul.f32 0.25, %v776_v19 }
  0xfa   : > { %v1224_v16 = vadd.f32 %v1223_v15, %v1222_v6  ;;  %v1279_v29 = vrot.slane %v1278_v18, 1  ;;  %v1334_v63 = vadd.f32 %v1333_v22, %v1332_v56  ;;  %v1445_v31 = vrot.slane %v1444_v26, 2  ;;  %v6575_v22 = vld [vmem:[%s6351_s12 + $0xa8] sm:$0xff] }
  0xfb   : > { %v1390_v32 = vadd.f32 %v1389_v58, %v1388_v14  ;;  %v1531_v33 = vmul.f32 0.25, %v832_v51  ;;  %v1539_v23 = vmul.f32 0.25, %v888_v45  ;;  %v1547_v35 = vmul.f32 0.25, %v944_v46 }
  0xfc   : > { %v1280_v34 = vadd.f32 %v1279_v29, %v1278_v18  ;;  %v1335_v49 = vrot.slane %v1334_v63, 1  ;;  %v1446_v37 = vadd.f32 %v1445_v31, %v1444_v26  ;;  %v1555_v0 = vmul.f32 0.25, %v1000_v5  ;;  %v6578_v26 = vld [vmem:[%s6351_s12 + $0xc8] sm:$0xff] }
  0xfd   : > { %v1391_v44 = vrot.slane %v1390_v32, 1  ;;  %v1563_v38 = vmul.f32 0.25, %v1056_v54  ;;  %v1571_v55 = vmul.f32 0.25, %v1112_v20  ;;  %v1579_v62 = vmul.f32 0.25, %v1168_v17  ;;  %v6569_v20 = vld [vmem:[%s6351_s12 + $0x68] sm:$0xff] }
  0xfe   : > { %v1336_v12 = vadd.f32 %v1335_v49, %v1334_v63  ;;  %v1447_v39 = vrot.slane %v1446_v37, 1  ;;  %v1587_v57 = vmul.f32 0.25, %v1224_v16  ;;  %v1595_v19 = vmul.f32 0.25, %v1280_v34  ;;  %v6572_v17 = vld [vmem:[%s6351_s12 + $0x88] sm:$0xff] }
  0xff   : > { %v1392_v1 = vadd.f32 %v1391_v44, %v1390_v32  ;;  %v1627_v24 = vpack.c.bf16 %v1499_v21, %v1499_v21  ;;  %v1635_v7 = vpack.c.bf16 %v1507_v27, %v1507_v27  ;;  %v1643_v52 = vpack.c.bf16 %v1515_v28, %v1515_v28  ;;  %v6581_v16 = vld [vmem:[%s6351_s12 + $0xe8] sm:$0xff] }
 0x100   : > { %v1448_v36 = vadd.f32 %v1447_v39, %v1446_v37  ;;  %v1603_v51 = vmul.f32 0.25, %v1336_v12  ;;  %v1651_v45 = vpack.c.bf16 %v1523_v30, %v1523_v30  ;;  %v1659_v46 = vpack.c.bf16 %v1531_v33, %v1531_v33  ;;  %v6584_v29 = vld [vmem:[%s6351_s12 + $0x108] sm:$0xff] }
 0x101   : > { %v1611_v3 = vmul.f32 0.25, %v1392_v1  ;;  %v1667_v4 = vpack.c.bf16 %v1539_v23, %v1539_v23  ;;  %v1675_v40 = vpack.c.bf16 %v1547_v35, %v1547_v35  ;;  %v1683_v5 = vpack.c.bf16 %v1555_v0, %v1555_v0  ;;  %v6589_v33 = vld [vmem:[%s6351_s12 + $0x128] sm:$0xff] }
 0x102   : > { %v1619_v41 = vmul.f32 0.25, %v1448_v36  ;;  %v1691_v42 = vpack.c.bf16 %v1563_v38, %v1563_v38  ;;  %v1699_v53 = vpack.c.bf16 %v1571_v55, %v1571_v55  ;;  %v1707_v47 = vpack.c.bf16 %v1579_v62, %v1579_v62  ;;  %v6592_v23 = vld [vmem:[%s6351_s12 + $0x148] sm:$0xff] }
 0x103   : > { %v1715_v8 = vpack.c.bf16 %v1587_v57, %v1587_v57  ;;  %v1723_v48 = vpack.c.bf16 %v1595_v19, %v1595_v19  ;;  %v1731_v50 = vpack.c.bf16 %v1603_v51, %v1603_v51  ;;  %v1739_v54 = vpack.c.bf16 %v1611_v3, %v1611_v3  ;;  %v6599_v37 = vld [vmem:[%s6351_s12 + $0x168] sm:$0xff] }
 0x104   : > { %v1747_v59 = vpack.c.bf16 %v1619_v41, %v1619_v41  ;;  %v2161_v60 = vunpack.c.l.b16 %v1627_v24  ;;  %v2169_v25 = vunpack.c.l.b16 %v1635_v7  ;;  %v2177_v61 = vunpack.c.l.b16 %v1643_v52  ;;  %v6608_v62 = vld [vmem:[%s6351_s12 + $0x188] sm:$0xff] }
 0x105   : > { %v2185_v6 = vunpack.c.l.b16 %v1651_v45  ;;  %v2193_v10 = vunpack.c.l.b16 %v1659_v46  ;;  %v2201_v56 = vunpack.c.l.b16 %v1667_v4  ;;  %v2209_v13 = vunpack.c.l.b16 %v1675_v40  ;;  %v6611_v12 = vld [vmem:[%s6351_s12 + $0x1a8] sm:$0xff] }
 0x106   : > { %v2217_v14 = vunpack.c.l.b16 %v1683_v5  ;;  %v2225_v21 = vunpack.c.l.b16 %v1691_v42  ;;  %v2233_v15 = vunpack.c.l.b16 %v1699_v53  ;;  %v2241_v18 = vunpack.c.l.b16 %v1707_v47  ;;  %v6620_v24 = vld [vmem:[%s6351_s12 + $0x1c8] sm:$0xff] }
 0x107   : > { %v2249_v58 = vunpack.c.l.b16 %v1715_v8  ;;  %v2257_v27 = vunpack.c.l.b16 %v1723_v48  ;;  %v2265_v28 = vunpack.c.l.b16 %v1731_v50  ;;  %v2273_v30 = vunpack.c.l.b16 %v1739_v54  ;;  %v6623_v7 = vld [vmem:[%s6351_s12 + $0x1e8] sm:$0xff] }
 0x108   : > { %v2281_v63 = vunpack.c.l.b16 %v1747_v59  ;;  %v2290_v31 = vsel %vm2289_vm1, %v2169_v25, %v2161_v60  ;;  %v2352_v32 = vsel %vm2289_vm1, %v2233_v15, %v2225_v21  ;;  %v474_v35 = vcombine.high %v6560_v11, %v6560_v11  ;;  %v5483_v48 = vld [vmem:[#allocation5 + $0x8] ss:$16 sps:$4 sm:$0xff]   ;;  %v5491_v25 = vld [vmem:[#allocation5 + $0x2c] ss:$16 sps:$4 sm:$0xff]  }
 0x109   : > { %v2292_v34 = vsel %vm2291_vm2, %v2177_v61, %v2290_v31  ;;  %v2353_v49 = vsel %vm2291_vm2, %v2241_v18, %v2352_v32  ;;  %v478_v0 = vcombine.high %v6563_v2, %v6563_v2  ;;  %v482_v44 = vcombine.high %v6566_v9, %v6566_v9 }
 0x10a   : > { %v2294_v38 = vsel %vm2293_vm3, %v2185_v6, %v2292_v34  ;;  %v2354_v55 = vsel %vm2293_vm3, %v2249_v58, %v2353_v49  ;;  %v486_v39 = vcombine.high %v6569_v20, %v6569_v20  ;;  %v490_v57 = vcombine.high %v6572_v17, %v6572_v17  ;;  %v5497_v34 = vld [vmem:[#allocation5 + $0x4c] ss:$16 sps:$4 sm:$0xff]  }
 0x10b   : > { %v2296_v19 = vsel %vm2295_vm4, %v2193_v10, %v2294_v38  ;;  %v2355_v1 = vsel %vm2295_vm4, %v2257_v27, %v2354_v55  ;;  %v494_v52 = vcombine.high %v6575_v22, %v6575_v22  ;;  %v498_v36 = vcombine.high %v6578_v26, %v6578_v26 }
 0x10c   : > { %v2298_v51 = vsel %vm2297_vm5, %v2201_v56, %v2296_v19  ;;  %v2356_v45 = vsel %vm2297_vm5, %v2265_v28, %v2355_v1  ;;  %v502_v46 = vcombine.high %v6581_v16, %v6581_v16  ;;  %v506_v3 = vcombine.high %v6584_v29, %v6584_v29 }
 0x10d   : > { %v2300_v4 = vsel %vm2299_vm6, %v2209_v13, %v2298_v51  ;;  %v2357_v40 = vsel %vm2299_vm6, %v2273_v30, %v2356_v45  ;;  %v510_v5 = vcombine.high %v6589_v33, %v6589_v33  ;;  %v514_v41 = vcombine.high %v6592_v23, %v6592_v23  ;;  %v5489_v30 = vld [vmem:[#allocation5 + $0x28] ss:$16 sps:$4 sm:$0xff]  }
 0x10e   : > { %v2302_v42 = vsel %vm2301_vm7, %v2217_v14, %v2300_v4  ;;  %v2358_v53 = vsel %vm2301_vm7, %v2281_v63, %v2357_v40  ;;  %v518_v47 = vcombine.high %v6599_v37, %v6599_v37  ;;  %v522_v8 = vcombine.high %v6608_v62, %v6608_v62 }
 0x10f   : > { %v6647_v50 = vpack.c.b16 %v2358_v53, %v2302_v42  ;;  %v526_v54 = vcombine.high %v6611_v12, %v6611_v12  ;;  %v530_v59 = vcombine.high %v6620_v24, %v6620_v24  ;;  %v534_v60 = vcombine.high %v6623_v7, %v6623_v7  ;;  %v5503_v42 = vld [vmem:[#allocation5 + $0x6c] ss:$16 sps:$4 sm:$0xff]  }
 0x110   : > { %v623_v61 = vsel %vm601_vm0, %v474_v35, 0.0  ;;  %v679_v6 = vsel %vm601_vm0, %v478_v0, 0.0  ;;  %v735_v10 = vsel %vm601_vm0, %v482_v44, 0.0  ;;  %v791_v56 = vsel %vm601_vm0, %v486_v39, 0.0 }
 0x111   : > { %3737 = vmatmul.mubr.bf16.vlgmr.msra.gmra.mrb[0].mxu1 %v6647_v50  ;;  %v624_v13 = vrot.slane %v623_v61, 4  ;;  %v680_v14 = vrot.slane %v679_v6, 4  ;;  %v736_v21 = vrot.slane %v735_v10, 4  ;;  %v792_v15 = vrot.slane %v791_v56, 4 }
 0x112   : > { %v847_v18 = vsel %vm601_vm0, %v490_v57, 0.0  ;;  %v903_v58 = vsel %vm601_vm0, %v494_v52, 0.0  ;;  %v959_v27 = vsel %vm601_vm0, %v498_v36, 0.0  ;;  %v1015_v28 = vsel %vm601_vm0, %v502_v46, 0.0  ;;  %3877 = vmatpush1.bf16.msra.mxu1 %v5483_v48  ;;  %3908 = vmatprep.mubr.bf16.mxu1 %v6523_v43  ;;  %v5495_v43 = vld [vmem:[#allocation5 + $0x48] ss:$16 sps:$4 sm:$0xff]  }
 0x113   : > { %v625_v63 = vadd.f32 %v624_v13, %v623_v61  ;;  %v681_v31 = vadd.f32 %v680_v14, %v679_v6  ;;  %v737_v32 = vadd.f32 %v736_v21, %v735_v10  ;;  %v793_v35 = vadd.f32 %v792_v15, %v791_v56  ;;  %3878 = vmatprep.subr.bf16.mxu1 %v5491_v25 }
 0x114   : > { %v848_v49 = vrot.slane %v847_v18, 4  ;;  %v904_v0 = vrot.slane %v903_v58, 4  ;;  %v960_v44 = vrot.slane %v959_v27, 4  ;;  %v1016_v38 = vrot.slane %v1015_v28, 4 }
 0x115   : > { %v626_v55 = vrot.slane %v625_v63, 2  ;;  %v682_v39 = vrot.slane %v681_v31, 2  ;;  %v738_v57 = vrot.slane %v737_v32, 2  ;;  %v794_v19 = vrot.slane %v793_v35, 2 }
 0x116   : > { %v849_v1 = vadd.f32 %v848_v49, %v847_v18  ;;  %v905_v52 = vadd.f32 %v904_v0, %v903_v58  ;;  %v961_v36 = vadd.f32 %v960_v44, %v959_v27  ;;  %v1017_v51 = vadd.f32 %v1016_v38, %v1015_v28  ;;  %3879 = vmatpush1.bf16.msra.mxu1 %v5489_v30  ;;  %v5501_v58 = vld [vmem:[#allocation5 + $0x68] ss:$16 sps:$4 sm:$0xff]  }
 0x117   : > { %v627_v45 = vadd.f32 %v626_v55, %v625_v63  ;;  %v683_v46 = vadd.f32 %v682_v39, %v681_v31  ;;  %v739_v4 = vadd.f32 %v738_v57, %v737_v32  ;;  %v795_v40 = vadd.f32 %v794_v19, %v793_v35  ;;  %3880 = vmatprep.subr.bf16.mxu1 %v5497_v34  ;;  %v5509_v31 = vld [vmem:[#allocation5 + $0x8c] ss:$16 sps:$4 sm:$0xff]  }
 0x118   : > { %v850_v53 = vrot.slane %v849_v1, 2  ;;  %v906_v48 = vrot.slane %v905_v52, 2  ;;  %v962_v25 = vrot.slane %v961_v36, 2  ;;  %v1018_v61 = vrot.slane %v1017_v51, 2 }
 0x119   : > { %v628_v6 = vrot.slane %v627_v45, 1  ;;  %v684_v10 = vrot.slane %v683_v46, 1  ;;  %v740_v56 = vrot.slane %v739_v4, 1  ;;  %v796_v13 = vrot.slane %v795_v40, 1 }
 0x11a   : > { %v851_v14 = vadd.f32 %v850_v53, %v849_v1  ;;  %v907_v21 = vadd.f32 %v906_v48, %v905_v52  ;;  %v963_v15 = vadd.f32 %v962_v25, %v961_v36  ;;  %v1019_v18 = vadd.f32 %v1018_v61, %v1017_v51  ;;  %3881 = vmatpush1.bf16.msra.mxu1 %v5495_v43 }
 0x11b   : > { %v6665_v27 = vadd.f32 %v628_v6, %v627_v45  ;;  %v6667_v28 = vadd.f32 %v684_v10, %v683_v46  ;;  %v6669_v30 = vadd.f32 %v740_v56, %v739_v4  ;;  %v6671_v63 = vadd.f32 %v796_v13, %v795_v40  ;;  %3882 = vmatprep.subr.bf16.mxu1 %v5503_v42 }
 0x11c   : > { %v852_v32 = vrot.slane %v851_v14, 1  ;;  %v908_v35 = vrot.slane %v907_v21, 1  ;;  %v964_v34 = vrot.slane %v963_v15, 1  ;;  %v1020_v49 = vrot.slane %v1019_v18, 1 }
 0x11d   : > { %v1071_v0 = vsel %vm601_vm0, %v506_v3, 0.0  ;;  %v1127_v44 = vsel %vm601_vm0, %v510_v5, 0.0  ;;  %v1183_v38 = vsel %vm601_vm0, %v514_v41, 0.0  ;;  %v1239_v55 = vsel %vm601_vm0, %v518_v47, 0.0  ;;  %v5507_v5 = vld [vmem:[#allocation5 + $0x88] ss:$16 sps:$4 sm:$0xff]  }
 0x11e   : > { %v6689_v39 = vadd.f32 %v852_v32, %v851_v14  ;;  %v6691_v57 = vadd.f32 %v908_v35, %v907_v21  ;;  %v6693_v3 = vadd.f32 %v964_v34, %v963_v15  ;;  %v6695_v19 = vadd.f32 %v1020_v49, %v1019_v18  ;;  %3883 = vmatpush1.bf16.msra.mxu1 %v5501_v58  ;;  %v5515_v41 = vld [vmem:[#allocation5 + $0xac] ss:$16 sps:$4 sm:$0xff]  }
 0x11f   : > { %v1072_v1 = vrot.slane %v1071_v0, 4  ;;  %v1128_v52 = vrot.slane %v1127_v44, 4  ;;  %v1184_v36 = vrot.slane %v1183_v38, 4  ;;  %v1240_v51 = vrot.slane %v1239_v55, 4  ;;  %3884 = vmatprep.subr.bf16.mxu1 %v5509_v31 }
 0x120   : > { %v1295_v47 = vsel %vm601_vm0, %v522_v8, 0.0  ;;  %v1351_v43 = vsel %vm601_vm0, %v526_v54, 0.0  ;;  %v1407_v45 = vsel %vm601_vm0, %v530_v59, 0.0  ;;  %v1463_v46 = vsel %vm601_vm0, %v534_v60, 0.0  ;;  %v5513_v54 = vld [vmem:[#allocation5 + $0xa8] ss:$16 sps:$4 sm:$0xff]  }
 0x121   : > { %v1073_v4 = vadd.f32 %v1072_v1, %v1071_v0  ;;  %v1129_v40 = vadd.f32 %v1128_v52, %v1127_v44  ;;  %v1185_v42 = vadd.f32 %v1184_v36, %v1183_v38  ;;  %v1241_v53 = vadd.f32 %v1240_v51, %v1239_v55  ;;  %v5521_v59 = vld [vmem:[#allocation5 + $0xcc] ss:$16 sps:$4 sm:$0xff]   ;;  %v5519_v44 = vld [vmem:[#allocation5 + $0xc8] ss:$16 sps:$4 sm:$0xff]  }
 0x122   : > { %v1296_v8 = vrot.slane %v1295_v47, 4  ;;  %v1352_v48 = vrot.slane %v1351_v43, 4  ;;  %v1408_v25 = vrot.slane %v1407_v45, 4  ;;  %v1464_v61 = vrot.slane %v1463_v46, 4  ;;  %3885 = vmatpush1.bf16.msra.mxu1 %v5507_v5  ;;  %v5527_v52 = vld [vmem:[#allocation5 + $0xec] ss:$16 sps:$4 sm:$0xff]  }
 0x123   : > { %v1074_v6 = vrot.slane %v1073_v4, 2  ;;  %v1130_v10 = vrot.slane %v1129_v40, 2  ;;  %v1186_v56 = vrot.slane %v1185_v42, 2  ;;  %v1242_v13 = vrot.slane %v1241_v53, 2  ;;  %3886 = vmatprep.subr.bf16.mxu1 %v5515_v41 }
 0x124   : > { %v1297_v14 = vadd.f32 %v1296_v8, %v1295_v47  ;;  %v1353_v21 = vadd.f32 %v1352_v48, %v1351_v43  ;;  %v1409_v15 = vadd.f32 %v1408_v25, %v1407_v45  ;;  %v1465_v60 = vadd.f32 %v1464_v61, %v1463_v46  ;;  %v5525_v48 = vld [vmem:[#allocation5 + $0xe8] ss:$16 sps:$4 sm:$0xff]  }
 0x125   : > { %v1075_v18 = vadd.f32 %v1074_v6, %v1073_v4  ;;  %v1131_v58 = vadd.f32 %v1130_v10, %v1129_v40  ;;  %v1187_v31 = vadd.f32 %v1186_v56, %v1185_v42  ;;  %v1243_v32 = vadd.f32 %v1242_v13, %v1241_v53  ;;  %v5533_v10 = vld [vmem:[#allocation5 + $0x10c] ss:$16 sps:$4 sm:$0xff]  }
 0x126   : > { %v1298_v35 = vrot.slane %v1297_v14, 2  ;;  %v1354_v34 = vrot.slane %v1353_v21, 2  ;;  %v1410_v49 = vrot.slane %v1409_v15, 2  ;;  %v1466_v0 = vrot.slane %v1465_v60, 2  ;;  %3887 = vmatpush1.bf16.msra.mxu1 %v5513_v54 }
 0x127   : > { %v1076_v38 = vrot.slane %v1075_v18, 1  ;;  %v1132_v55 = vrot.slane %v1131_v58, 1  ;;  %v1188_v5 = vrot.slane %v1187_v31, 1  ;;  %v1244_v1 = vrot.slane %v1243_v32, 1  ;;  %3888 = vmatprep.subr.bf16.mxu1 %v5521_v59 }
 0x128   : > { %v1299_v36 = vadd.f32 %v1298_v35, %v1297_v14  ;;  %v1355_v51 = vadd.f32 %v1354_v34, %v1353_v21  ;;  %v1411_v41 = vadd.f32 %v1410_v49, %v1409_v15  ;;  %v1467_v47 = vadd.f32 %v1466_v0, %v1465_v60  ;;  %v5531_v21 = vld [vmem:[#allocation5 + $0x108] ss:$16 sps:$4 sm:$0xff]  }
 0x129   : > { %v1077_v43 = vadd.f32 %v1076_v38, %v1075_v18  ;;  %v1133_v45 = vadd.f32 %v1132_v55, %v1131_v58  ;;  %v1189_v46 = vadd.f32 %v1188_v5, %v1187_v31  ;;  %v1245_v4 = vadd.f32 %v1244_v1, %v1243_v32  ;;  %v5545_v1 = vld [vmem:[#allocation5 + $0x14c] ss:$16 sps:$4 sm:$0xff]  }
 0x12a   : > { %v1300_v40 = vrot.slane %v1299_v36, 1  ;;  %v1356_v42 = vrot.slane %v1355_v51, 1  ;;  %v1412_v53 = vrot.slane %v1411_v41, 1  ;;  %v1468_v8 = vrot.slane %v1467_v47, 1  ;;  %3889 = vmatpush1.bf16.msra.mxu1 %v5519_v44 }
 0x12b   : > { %v1502_v25 = vmul.f32 0.25, %v6665_v27  ;;  %v1510_v61 = vmul.f32 0.25, %v6667_v28  ;;  %v1518_v54 = vmul.f32 0.25, %v6669_v30  ;;  %v1526_v6 = vmul.f32 0.25, %v6671_v63  ;;  %3890 = vmatprep.subr.bf16.mxu1 %v5527_v52  ;;  %v5539_v28 = vld [vmem:[#allocation5 + $0x12c] ss:$16 sps:$4 sm:$0xff]  }
 0x12c   : > { %v1301_v56 = vadd.f32 %v1300_v40, %v1299_v36  ;;  %v1357_v13 = vadd.f32 %v1356_v42, %v1355_v51  ;;  %v1413_v59 = vadd.f32 %v1412_v53, %v1411_v41  ;;  %v1469_v14 = vadd.f32 %v1468_v8, %v1467_v47  ;;  %v5543_v8 = vld [vmem:[#allocation5 + $0x148] ss:$16 sps:$4 sm:$0xff]  }
 0x12d   : > { %v1534_v15 = vmul.f32 0.25, %v6689_v39  ;;  %v1542_v60 = vmul.f32 0.25, %v6691_v57  ;;  %v1550_v18 = vmul.f32 0.25, %v6693_v3  ;;  %v1558_v27 = vmul.f32 0.25, %v6695_v19  ;;  %v5537_v57 = vld [vmem:[#allocation5 + $0x128] ss:$16 sps:$4 sm:$0xff]  }
 0x12e   : > { %v1566_v58 = vmul.f32 0.25, %v1077_v43  ;;  %v1574_v30 = vmul.f32 0.25, %v1133_v45  ;;  %v1582_v31 = vmul.f32 0.25, %v1189_v46  ;;  %v1590_v63 = vmul.f32 0.25, %v1245_v4  ;;  %3891 = vmatpush1.bf16.msra.mxu1 %v5525_v48 }
 0x12f   : > { %v1598_v32 = vmul.f32 0.25, %v1301_v56  ;;  %v1606_v35 = vmul.f32 0.25, %v1357_v13  ;;  %v1614_v34 = vmul.f32 0.25, %v1413_v59  ;;  %v1622_v49 = vmul.f32 0.25, %v1469_v14  ;;  %3892 = vmatprep.subr.bf16.mxu1 %v5533_v10 }
 0x130   : > { %v1630_v0 = vpack.c.bf16 %v1502_v25, %v1502_v25  ;;  %v1638_v44 = vpack.c.bf16 %v1510_v61, %v1510_v61  ;;  %v1646_v39 = vpack.c.bf16 %v1518_v54, %v1518_v54  ;;  %v1654_v38 = vpack.c.bf16 %v1526_v6, %v1526_v6  ;;  %v5551_v6 = vld [vmem:[#allocation5 + $0x16c] ss:$16 sps:$4 sm:$0xff]  }
 0x131   : > { %v1662_v55 = vpack.c.bf16 %v1534_v15, %v1534_v15  ;;  %v1670_v3 = vpack.c.bf16 %v1542_v60, %v1542_v60  ;;  %v1678_v5 = vpack.c.bf16 %v1550_v18, %v1550_v18  ;;  %v1686_v19 = vpack.c.bf16 %v1558_v27, %v1558_v27 }
 0x132   : > { %v1694_v52 = vpack.c.bf16 %v1566_v58, %v1566_v58  ;;  %v1702_v36 = vpack.c.bf16 %v1574_v30, %v1574_v30  ;;  %v1710_v51 = vpack.c.bf16 %v1582_v31, %v1582_v31  ;;  %v1718_v41 = vpack.c.bf16 %v1590_v63, %v1590_v63  ;;  %3893 = vmatpush1.bf16.msra.mxu1 %v5531_v21  ;;  %v5549_v30 = vld [vmem:[#allocation5 + $0x168] ss:$16 sps:$4 sm:$0xff]  }
 0x133   : > { %v1726_v47 = vpack.c.bf16 %v1598_v32, %v1598_v32  ;;  %v1734_v43 = vpack.c.bf16 %v1606_v35, %v1606_v35  ;;  %v1742_v45 = vpack.c.bf16 %v1614_v34, %v1614_v34  ;;  %v1750_v46 = vpack.c.bf16 %v1622_v49, %v1622_v49  ;;  %3894 = vmatprep.subr.bf16.mxu1 %v5539_v28  ;;  %v5557_v34 = vld [vmem:[#allocation5 + $0x18c] ss:$16 sps:$4 sm:$0xff]  }
 0x134   : > { %v2164_v4 = vunpack.c.l.b16 %v1630_v0  ;;  %v2172_v40 = vunpack.c.l.b16 %v1638_v44  ;;  %v2180_v42 = vunpack.c.l.b16 %v1646_v39  ;;  %v2188_v53 = vunpack.c.l.b16 %v1654_v38 }
 0x135   : > { %v2196_v48 = vunpack.c.l.b16 %v1662_v55  ;;  %v2204_v25 = vunpack.c.l.b16 %v1670_v3  ;;  %v2212_v61 = vunpack.c.l.b16 %v1678_v5  ;;  %v2220_v54 = vunpack.c.l.b16 %v1686_v19 }
 0x136   : > { %v2228_v10 = vunpack.c.l.b16 %v1694_v52  ;;  %v2236_v56 = vunpack.c.l.b16 %v1702_v36  ;;  %v2244_v13 = vunpack.c.l.b16 %v1710_v51  ;;  %v2252_v59 = vunpack.c.l.b16 %v1718_v41  ;;  %3895 = vmatpush1.bf16.msra.mxu1 %v5537_v57  ;;  %v5563_v51 = vld [vmem:[#allocation5 + $0x1ac] ss:$16 sps:$4 sm:$0xff]  }
 0x137   : > { %v2260_v14 = vunpack.c.l.b16 %v1726_v47  ;;  %v2268_v21 = vunpack.c.l.b16 %v1734_v43  ;;  %v2276_v15 = vunpack.c.l.b16 %v1742_v45  ;;  %v2284_v60 = vunpack.c.l.b16 %v1750_v46  ;;  %3896 = vmatprep.subr.bf16.mxu1 %v5545_v1  ;;  %v5555_v1 = vld [vmem:[#allocation5 + $0x188] ss:$16 sps:$4 sm:$0xff]  }
 0x138   : > { %v2317_v18 = vsel %vm2289_vm1, %v2172_v40, %v2164_v4  ;;  %v2373_v27 = vsel %vm2289_vm1, %v2236_v56, %v2228_v10  ;;  %v616_v28 = vsel %vm601_vm0, %v6560_v11, 0.0  ;;  %v672_v58 = vsel %vm601_vm0, %v6563_v2, 0.0 }
 0x139   : > { %v2318_v31 = vsel %vm2291_vm2, %v2180_v42, %v2317_v18  ;;  %v2374_v63 = vsel %vm2291_vm2, %v2244_v13, %v2373_v27  ;;  %v617_v32 = vrot.slane %v616_v28, 4  ;;  %v673_v35 = vrot.slane %v672_v58, 4  ;;  %v5569_v13 = vld [vmem:[#allocation5 + $0x1cc] ss:$16 sps:$4 sm:$0xff]  }
 0x13a   : > { %v2319_v49 = vsel %vm2293_vm3, %v2188_v53, %v2318_v31  ;;  %v2375_v0 = vsel %vm2293_vm3, %v2252_v59, %v2374_v63  ;;  %v728_v44 = vsel %vm601_vm0, %v6566_v9, 0.0  ;;  %v784_v11 = vsel %vm601_vm0, %v6569_v20, 0.0  ;;  %3897 = vmatpush1.bf16.msra.mxu1 %v5543_v8 }
 0x13b   : > { %v2320_v2 = vsel %vm2295_vm4, %v2196_v48, %v2319_v49  ;;  %v2376_v39 = vsel %vm2295_vm4, %v2260_v14, %v2375_v0  ;;  %v618_v38 = vadd.f32 %v617_v32, %v616_v28  ;;  %v674_v57 = vadd.f32 %v673_v35, %v672_v58  ;;  %3898 = vmatprep.subr.bf16.mxu1 %v5551_v6 }
 0x13c   : > { %v2321_v55 = vsel %vm2297_vm5, %v2204_v25, %v2320_v2  ;;  %v2377_v3 = vsel %vm2297_vm5, %v2268_v21, %v2376_v39  ;;  %v729_v5 = vrot.slane %v728_v44, 4  ;;  %v785_v19 = vrot.slane %v784_v11, 4 }
 0x13d   : > { %v2322_v9 = vsel %vm2299_vm6, %v2212_v61, %v2321_v55  ;;  %v2378_v52 = vsel %vm2299_vm6, %v2276_v15, %v2377_v3  ;;  %v619_v20 = vrot.slane %v618_v38, 2  ;;  %v675_v36 = vrot.slane %v674_v57, 2  ;;  %v5561_v61 = vld [vmem:[#allocation5 + $0x1a8] ss:$16 sps:$4 sm:$0xff]  }
 0x13e   : > { %v2323_v41 = vsel %vm2301_vm7, %v2220_v54, %v2322_v9  ;;  %v2379_v47 = vsel %vm2301_vm7, %v2284_v60, %v2378_v52  ;;  %v730_v43 = vadd.f32 %v729_v5, %v728_v44  ;;  %v786_v45 = vadd.f32 %v785_v19, %v784_v11  ;;  %3899 = vmatpush1.bf16.msra.mxu1 %v5549_v30 }
 0x13f   : > { %v6743_v46 = vpack.c.b16 %v2379_v47, %v2323_v41  ;;  %v620_v4 = vadd.f32 %v619_v20, %v618_v38  ;;  %v676_v40 = vadd.f32 %v675_v36, %v674_v57  ;;  %v840_v42 = vsel %vm601_vm0, %v6572_v17, 0.0  ;;  %3900 = vmatprep.subr.bf16.mxu1 %v5557_v34  ;;  %v5575_v34 = vld [vmem:[#allocation5 + $0x1ec] ss:$16 sps:$4 sm:$0xff]  }
 0x140   : > { %v731_v53 = vrot.slane %v730_v43, 2  ;;  %v787_v8 = vrot.slane %v786_v45, 2  ;;  %v841_v48 = vrot.slane %v840_v42, 4  ;;  %v896_v25 = vsel %vm601_vm0, %v6575_v22, 0.0 }
 0x141   : > { %3779 = vmatprep.mubr.bf16.mxu0 %v6743_v46  ;;  %v621_v54 = vrot.slane %v620_v4, 1  ;;  %v677_v6 = vrot.slane %v676_v40, 1  ;;  %v897_v10 = vrot.slane %v896_v25, 4  ;;  %v952_v56 = vsel %vm601_vm0, %v6578_v26, 0.0  ;;  %v5567_v26 = vld [vmem:[#allocation5 + $0x1c8] ss:$16 sps:$4 sm:$0xff]  }
 0x142   : > { %v732_v59 = vadd.f32 %v731_v53, %v730_v43  ;;  %v788_v14 = vadd.f32 %v787_v8, %v786_v45  ;;  %v842_v17 = vadd.f32 %v841_v48, %v840_v42  ;;  %v953_v21 = vrot.slane %v952_v56, 4  ;;  %3901 = vmatpush1.bf16.msra.mxu1 %v5555_v1 }
 0x143   : > { %v6752_v15 = vadd.f32 %v621_v54, %v620_v4  ;;  %v6754_v60 = vadd.f32 %v677_v6, %v676_v40  ;;  %v898_v22 = vadd.f32 %v897_v10, %v896_v25  ;;  %v1008_v18 = vsel %vm601_vm0, %v6581_v16, 0.0  ;;  %3902 = vmatprep.subr.bf16.mxu1 %v5563_v51  ;;  %v5573_v51 = vld [vmem:[#allocation5 + $0x1e8] ss:$16 sps:$4 sm:$0xff]  }
 0x144   : > { %v733_v27 = vrot.slane %v732_v59, 1  ;;  %v789_v28 = vrot.slane %v788_v14, 1  ;;  %v843_v58 = vrot.slane %v842_v17, 2  ;;  %v954_v30 = vadd.f32 %v953_v21, %v952_v56  ;;  %v5595_v56 = vld [vmem:[#allocation5 + $0x208] ss:$16 sps:$4 sm:$0xff]  }
 0x145   : > { %v899_v31 = vrot.slane %v898_v22, 2  ;;  %v1009_v63 = vrot.slane %v1008_v18, 4  ;;  %v1064_v32 = vsel %vm601_vm0, %v6584_v29, 0.0  ;;  %v1120_v35 = vsel %vm601_vm0, %v6589_v33, 0.0 }
 0x146   : > { %v6762_v49 = vadd.f32 %v733_v27, %v732_v59  ;;  %v6764_v0 = vadd.f32 %v789_v28, %v788_v14  ;;  %v844_v16 = vadd.f32 %v843_v58, %v842_v17  ;;  %v955_v44 = vrot.slane %v954_v30, 2  ;;  %3903 = vmatpush1.bf16.msra.mxu1 %v5561_v61 }
 0x147   : > { %v900_v11 = vadd.f32 %v899_v31, %v898_v22  ;;  %v1010_v2 = vadd.f32 %v1009_v63, %v1008_v18  ;;  %v1065_v39 = vrot.slane %v1064_v32, 4  ;;  %v1121_v38 = vrot.slane %v1120_v35, 4  ;;  %3904 = vmatprep.subr.bf16.mxu1 %v5569_v13 }
 0x148   : > { %v845_v57 = vrot.slane %v844_v16, 1  ;;  %v956_v55 = vadd.f32 %v955_v44, %v954_v30  ;;  %v1176_v29 = vsel %vm601_vm0, %v6592_v23, 0.0  ;;  %v1232_v33 = vsel %vm601_vm0, %v6599_v37, 0.0  ;;  %v5597_v23 = vld [vmem:[#allocation5 + $0x20c] ss:$16 sps:$4 sm:$0xff]  }
 0x149   : > { %v901_v3 = vrot.slane %v900_v11, 1  ;;  %v1011_v5 = vrot.slane %v1010_v2, 2  ;;  %v1066_v19 = vadd.f32 %v1065_v39, %v1064_v32  ;;  %v1122_v1 = vadd.f32 %v1121_v38, %v1120_v35  ;;  %v5601_v32 = vld [vmem:[#allocation5 + $0x228] ss:$16 sps:$4 sm:$0xff]  }
 0x14a   : > { %v6770_v9 = vadd.f32 %v845_v57, %v844_v16  ;;  %v957_v52 = vrot.slane %v956_v55, 1  ;;  %v1177_v20 = vrot.slane %v1176_v29, 4  ;;  %v1233_v36 = vrot.slane %v1232_v33, 4  ;;  %3905 = vmatpush1.bf16.msra.mxu1 %v5567_v26 }
 0x14b   : > { %v902_v41 = vadd.f32 %v901_v3, %v900_v11  ;;  %v1012_v47 = vadd.f32 %v1011_v5, %v1010_v2  ;;  %v1067_v43 = vrot.slane %v1066_v19, 2  ;;  %v1123_v45 = vrot.slane %v1122_v1, 2  ;;  %3906 = vmatprep.subr.bf16.mxu1 %v5575_v34  ;;  %v5609_v11 = vld [vmem:[#allocation5 + $0x24c] ss:$16 sps:$4 sm:$0xff]  }
 0x14c   : > { %v958_v4 = vadd.f32 %v957_v52, %v956_v55  ;;  %v1178_v40 = vadd.f32 %v1177_v20, %v1176_v29  ;;  %v1234_v37 = vadd.f32 %v1233_v36, %v1232_v33  ;;  %v1288_v42 = vsel %vm601_vm0, %v6608_v62, 0.0  ;;  %v5603_v62 = vld [vmem:[#allocation5 + $0x22c] ss:$16 sps:$4 sm:$0xff]  }
 0x14d   : > { %v1013_v53 = vrot.slane %v1012_v47, 1  ;;  %v1068_v8 = vadd.f32 %v1067_v43, %v1066_v19  ;;  %v1124_v48 = vadd.f32 %v1123_v45, %v1122_v1  ;;  %v1289_v25 = vrot.slane %v1288_v42, 4  ;;  %v5615_v20 = vld [vmem:[#allocation5 + $0x26c] ss:$16 sps:$4 sm:$0xff]  }
 0x14e   : > { %v1179_v61 = vrot.slane %v1178_v40, 2  ;;  %v1235_v54 = vrot.slane %v1234_v37, 2  ;;  %v1344_v6 = vsel %vm601_vm0, %v6611_v12, 0.0  ;;  %v1400_v10 = vsel %vm601_vm0, %v6620_v24, 0.0  ;;  %3907 = vmatpush1.bf16.msra.mxu1 %v5573_v51 }
 0x14f   : > { %v1014_v13 = vadd.f32 %v1013_v53, %v1012_v47  ;;  %v1069_v59 = vrot.slane %v1068_v8, 1  ;;  %v1125_v14 = vrot.slane %v1124_v48, 1  ;;  %v1290_v17 = vadd.f32 %v1289_v25, %v1288_v42  ;;  %3919 = vmatprep.subr.bf16.mxu1 %v5597_v23  ;;  %v5613_v42 = vld [vmem:[#allocation5 + $0x268] ss:$16 sps:$4 sm:$0xff]   ;;  %v5621_v25 = vld [vmem:[#allocation5 + $0x28c] ss:$16 sps:$4 sm:$0xff]  }
 0x150   : > { %v1180_v21 = vadd.f32 %v1179_v61, %v1178_v40  ;;  %v1236_v22 = vadd.f32 %v1235_v54, %v1234_v37  ;;  %v1345_v18 = vrot.slane %v1344_v6, 4  ;;  %v1401_v27 = vrot.slane %v1400_v10, 4 }
 0x151   : > { %v1070_v28 = vadd.f32 %v1069_v59, %v1068_v8  ;;  %v1126_v58 = vadd.f32 %v1125_v14, %v1124_v48  ;;  %v1291_v30 = vrot.slane %v1290_v17, 2  ;;  %v1456_v12 = vsel %vm601_vm0, %v6623_v7, 0.0  ;;  %3909 = vmatmul.mubr.bf16.vlgmr.msra.gmra.mrb[4].mxu1 %v6647_v50 }
 0x152   : > { %v1181_v24 = vrot.slane %v1180_v21, 1  ;;  %v1237_v26 = vrot.slane %v1236_v22, 1  ;;  %v1346_v31 = vadd.f32 %v1345_v18, %v1344_v6  ;;  %v1402_v63 = vadd.f32 %v1401_v27, %v1400_v10  ;;  %3920 = vmatpush1.bf16.msra.mxu1 %v5595_v56  ;;  %3951 = vmatprep.mubr.bf16.mxu1 %v6743_v46  ;;  %v5619_v18 = vld [vmem:[#allocation5 + $0x288] ss:$16 sps:$4 sm:$0xff]  }
 0x153   : > { %v1292_v35 = vadd.f32 %v1291_v30, %v1290_v17  ;;  %v1457_v34 = vrot.slane %v1456_v12, 4  ;;  %v1501_v16 = vmul.f32 0.25, %v6752_v15  ;;  %v1509_v44 = vmul.f32 0.25, %v6754_v60  ;;  %3921 = vmatprep.subr.bf16.mxu1 %v5603_v62  ;;  %v5607_v15 = vld [vmem:[#allocation5 + $0x248] ss:$16 sps:$4 sm:$0xff]  }
 0x154   : > { %v1182_v2 = vadd.f32 %v1181_v24, %v1180_v21  ;;  %v1238_v7 = vadd.f32 %v1237_v26, %v1236_v22  ;;  %v1347_v39 = vrot.slane %v1346_v31, 2  ;;  %v1403_v50 = vrot.slane %v1402_v63, 2 }
 0x155   : > { %v1293_v38 = vrot.slane %v1292_v35, 1  ;;  %v1458_v57 = vadd.f32 %v1457_v34, %v1456_v12  ;;  %v1517_v55 = vmul.f32 0.25, %v6762_v49  ;;  %v1525_v29 = vmul.f32 0.25, %v6764_v0  ;;  %v5627_v12 = vld [vmem:[#allocation5 + $0x2ac] ss:$16 sps:$4 sm:$0xff]  }
 0x156   : > { %v1348_v33 = vadd.f32 %v1347_v39, %v1346_v31  ;;  %v1404_v46 = vadd.f32 %v1403_v50, %v1402_v63  ;;  %v1533_v3 = vmul.f32 0.25, %v6770_v9  ;;  %v1541_v5 = vmul.f32 0.25, %v902_v41  ;;  %3922 = vmatpush1.bf16.msra.mxu1 %v5601_v32 }
 0x157   : > { %v1294_v60 = vadd.f32 %v1293_v38, %v1292_v35  ;;  %v1459_v19 = vrot.slane %v1458_v57, 2  ;;  %v1549_v1 = vmul.f32 0.25, %v958_v4  ;;  %v1557_v52 = vmul.f32 0.25, %v1014_v13  ;;  %3923 = vmatprep.subr.bf16.mxu1 %v5609_v11  ;;  %v6791_v11 = vld [vmem:[%s6351_s12 + $0x30] sm:$0xff] }
 0x158   : > { %v1349_v36 = vrot.slane %v1348_v33, 1  ;;  %v1405_v51 = vrot.slane %v1404_v46, 1  ;;  %v1565_v47 = vmul.f32 0.25, %v1070_v28  ;;  %v1573_v43 = vmul.f32 0.25, %v1126_v58  ;;  %v6794_v38 = vld [vmem:[%s6351_s12 + $0x50] sm:$0xff] }
 0x159   : > { %v1460_v49 = vadd.f32 %v1459_v19, %v1458_v57  ;;  %v1581_v45 = vmul.f32 0.25, %v1182_v2  ;;  %v1589_v0 = vmul.f32 0.25, %v1238_v7  ;;  %v1597_v23 = vmul.f32 0.25, %v1294_v60  ;;  %v6797_v57 = vld [vmem:[%s6351_s12 + $0x70] sm:$0xff]  ;;  %v5633_v60 = vld [vmem:[#allocation5 + $0x2cc] ss:$16 sps:$4 sm:$0xff]  }
 0x15a   : > { %v1350_v40 = vadd.f32 %v1349_v36, %v1348_v33  ;;  %v1406_v37 = vadd.f32 %v1405_v51, %v1404_v46  ;;  %v1629_v9 = vpack.c.bf16 %v1501_v16, %v1501_v16  ;;  %v1637_v41 = vpack.c.bf16 %v1509_v44, %v1509_v44  ;;  %3924 = vmatpush1.bf16.msra.mxu1 %v5607_v15  ;;  %v6788_v44 = vld [vmem:[%s6351_s12 + $0x10] sm:$0xff] }
 0x15b   : > { %v1461_v53 = vrot.slane %v1460_v49, 1  ;;  %v1645_v8 = vpack.c.bf16 %v1517_v55, %v1517_v55  ;;  %v1653_v4 = vpack.c.bf16 %v1525_v29, %v1525_v29  ;;  %v1661_v48 = vpack.c.bf16 %v1533_v3, %v1533_v3  ;;  %3925 = vmatprep.subr.bf16.mxu1 %v5615_v20  ;;  %v5625_v55 = vld [vmem:[#allocation5 + $0x2a8] ss:$16 sps:$4 sm:$0xff]   ;;  %v6804_v15 = vld [vmem:[%s6351_s12 + $0xb0] sm:$0xff] }
 0x15c   : > { %v1605_v61 = vmul.f32 0.25, %v1350_v40  ;;  %v1613_v54 = vmul.f32 0.25, %v1406_v37  ;;  %v1669_v6 = vpack.c.bf16 %v1541_v5, %v1541_v5  ;;  %v1677_v10 = vpack.c.bf16 %v1549_v1, %v1549_v1  ;;  %v6801_v5 = vld [vmem:[%s6351_s12 + $0x90] sm:$0xff] }
 0x15d   : > { %v1462_v56 = vadd.f32 %v1461_v53, %v1460_v49  ;;  %v1685_v13 = vpack.c.bf16 %v1557_v52, %v1557_v52  ;;  %v1693_v59 = vpack.c.bf16 %v1565_v47, %v1565_v47  ;;  %v1701_v14 = vpack.c.bf16 %v1573_v43, %v1573_v43  ;;  %v6809_v52 = vld [vmem:[%s6351_s12 + $0xd0] sm:$0xff] }
 0x15e   : > { %v1709_v17 = vpack.c.bf16 %v1581_v45, %v1581_v45  ;;  %v1717_v62 = vpack.c.bf16 %v1589_v0, %v1589_v0  ;;  %v1725_v21 = vpack.c.bf16 %v1597_v23, %v1597_v23  ;;  %v1733_v22 = vpack.c.bf16 %v1605_v61, %v1605_v61  ;;  %3926 = vmatpush1.bf16.msra.mxu1 %v5613_v42  ;;  %v6812_v20 = vld [vmem:[%s6351_s12 + $0xf0] sm:$0xff] }
 0x15f   : > { %v1621_v27 = vmul.f32 0.25, %v1462_v56  ;;  %v1741_v28 = vpack.c.bf16 %v1613_v54, %v1613_v54  ;;  %v2163_v58 = vunpack.c.l.b16 %v1629_v9  ;;  %v2171_v30 = vunpack.c.l.b16 %v1637_v41  ;;  %3927 = vmatprep.subr.bf16.mxu1 %v5621_v25  ;;  %v6821_v49 = vld [vmem:[%s6351_s12 + $0x110] sm:$0xff]  ;;  %v5639_v56 = vld [vmem:[#allocation5 + $0x2ec] ss:$16 sps:$4 sm:$0xff]  }
 0x160   : > { %v2179_v24 = vunpack.c.l.b16 %v1645_v8  ;;  %v2187_v26 = vunpack.c.l.b16 %v1653_v4  ;;  %v2195_v31 = vunpack.c.l.b16 %v1661_v48  ;;  %v2203_v63 = vunpack.c.l.b16 %v1669_v6  ;;  %v6824_v45 = vld [vmem:[%s6351_s12 + $0x130] sm:$0xff]  ;;  %v5631_v4 = vld [vmem:[#allocation5 + $0x2c8] ss:$16 sps:$4 sm:$0xff]  }
 0x161   : > { %v1749_v32 = vpack.c.bf16 %v1621_v27, %v1621_v27  ;;  %v2211_v35 = vunpack.c.l.b16 %v1677_v10  ;;  %v2219_v34 = vunpack.c.l.b16 %v1685_v13  ;;  %v2227_v16 = vunpack.c.l.b16 %v1693_v59  ;;  %v6827_v0 = vld [vmem:[%s6351_s12 + $0x150] sm:$0xff] }
 0x162   : > { %v2235_v2 = vunpack.c.l.b16 %v1701_v14  ;;  %v2243_v7 = vunpack.c.l.b16 %v1709_v17  ;;  %v2251_v39 = vunpack.c.l.b16 %v1717_v62  ;;  %v2259_v50 = vunpack.c.l.b16 %v1725_v21  ;;  %3928 = vmatpush1.bf16.msra.mxu1 %v5619_v18  ;;  %v6836_v41 = vld [vmem:[%s6351_s12 + $0x170] sm:$0xff] }
 0x163   : > { %v2267_v29 = vunpack.c.l.b16 %v1733_v22  ;;  %v2275_v33 = vunpack.c.l.b16 %v1741_v28  ;;  %v2283_v46 = vunpack.c.l.b16 %v1749_v32  ;;  %v2310_v3 = vsel %vm2289_vm1, %v2171_v30, %v2163_v58  ;;  %3929 = vmatprep.subr.bf16.mxu1 %v5627_v12  ;;  %v6839_v42 = vld [vmem:[%s6351_s12 + $0x190] sm:$0xff] }
 0x164   : > { %v2311_v19 = vsel %vm2291_vm2, %v2179_v24, %v2310_v3  ;;  %v2366_v1 = vsel %vm2289_vm1, %v2235_v2, %v2227_v16  ;;  %v475_v36 = vcombine.high %v6788_v44, %v6788_v44  ;;  %v479_v51 = vcombine.high %v6791_v11, %v6791_v11  ;;  %v6848_v61 = vld [vmem:[%s6351_s12 + $0x1b0] sm:$0xff]  ;;  %v5645_v16 = vld [vmem:[#allocation5 + $0x30c] ss:$16 sps:$4 sm:$0xff]  }
 0x165   : > { %v2312_v47 = vsel %vm2293_vm3, %v2187_v26, %v2311_v19  ;;  %v2367_v43 = vsel %vm2291_vm2, %v2243_v7, %v2366_v1  ;;  %v483_v23 = vcombine.high %v6794_v38, %v6794_v38  ;;  %v487_v40 = vcombine.high %v6797_v57, %v6797_v57  ;;  %v6851_v54 = vld [vmem:[%s6351_s12 + $0x1d0] sm:$0xff]  ;;  %v5637_v26 = vld [vmem:[#allocation5 + $0x2e8] ss:$16 sps:$4 sm:$0xff]  }
 0x166   : > { %v2313_v37 = vsel %vm2295_vm4, %v2195_v31, %v2312_v47  ;;  %v2368_v9 = vsel %vm2293_vm3, %v2251_v39, %v2367_v43  ;;  %v491_v53 = vcombine.high %v6801_v5, %v6801_v5  ;;  %v495_v8 = vcombine.high %v6804_v15, %v6804_v15  ;;  %3930 = vmatpush1.bf16.msra.mxu1 %v5625_v55  ;;  %v6860_v14 = vld [vmem:[%s6351_s12 + $0x1f0] sm:$0xff] }
 0x167   : > { %v2314_v48 = vsel %vm2297_vm5, %v2203_v63, %v2313_v37  ;;  %v2369_v25 = vsel %vm2295_vm4, %v2259_v50, %v2368_v9  ;;  %v499_v6 = vcombine.high %v6809_v52, %v6809_v52  ;;  %v503_v10 = vcombine.high %v6812_v20, %v6812_v20  ;;  %3931 = vmatprep.subr.bf16.mxu1 %v5633_v60  ;;  %v5480_v28 = vld [vmem:[#allocation5 + $0x400] ss:$16 sps:$4 sm:$0xff]   ;;  %v5488_v63 = vld [vmem:[#allocation5 + $0x424] ss:$16 sps:$4 sm:$0xff]  }
 0x168   : > { %v2315_v13 = vsel %vm2299_vm6, %v2211_v35, %v2314_v48  ;;  %v2370_v59 = vsel %vm2297_vm5, %v2267_v29, %v2369_v25  ;;  %v507_v17 = vcombine.high %v6821_v49, %v6821_v49  ;;  %v511_v62 = vcombine.high %v6824_v45, %v6824_v45  ;;  %v5486_v3 = vld [vmem:[#allocation5 + $0x420] ss:$16 sps:$4 sm:$0xff]   ;;  %v5494_v47 = vld [vmem:[#allocation5 + $0x444] ss:$16 sps:$4 sm:$0xff]   ;;  %v5651_v48 = vld [vmem:[#allocation5 + $0x32c] ss:$16 sps:$4 sm:$0xff]  }
 0x169   : > { %v2316_v21 = vsel %vm2301_vm7, %v2219_v34, %v2315_v13  ;;  %v2371_v22 = vsel %vm2299_vm6, %v2275_v33, %v2370_v59  ;;  %v515_v18 = vcombine.high %v6827_v0, %v6827_v0  ;;  %v519_v27 = vcombine.high %v6836_v41, %v6836_v41 }
 0x16a   : > { %v2372_v58 = vsel %vm2301_vm7, %v2283_v46, %v2371_v22  ;;  %v523_v30 = vcombine.high %v6839_v42, %v6839_v42  ;;  %v527_v12 = vcombine.high %v6848_v61, %v6848_v61  ;;  %v531_v24 = vcombine.high %v6851_v54, %v6851_v54  ;;  %3932 = vmatpush1.bf16.msra.mxu1 %v5631_v4 }
 0x16b   : > { %v6879_v31 = vpack.c.b16 %v2372_v58, %v2316_v21  ;;  %v535_v32 = vcombine.high %v6860_v14, %v6860_v14  ;;  %v637_v35 = vsel %vm601_vm0, %v475_v36, 0.0  ;;  %v693_v34 = vsel %vm601_vm0, %v479_v51, 0.0  ;;  %3933 = vmatprep.subr.bf16.mxu1 %v5639_v56  ;;  %v5643_v51 = vld [vmem:[#allocation5 + $0x308] ss:$16 sps:$4 sm:$0xff]   ;;  %v5492_v21 = vld [vmem:[#allocation5 + $0x440] ss:$16 sps:$4 sm:$0xff]  }
 0x16c   : > { %v638_v2 = vrot.slane %v637_v35, 4  ;;  %v694_v7 = vrot.slane %v693_v34, 4  ;;  %v749_v39 = vsel %vm601_vm0, %v483_v23, 0.0  ;;  %v805_v50 = vsel %vm601_vm0, %v487_v40, 0.0 }
 0x16d   : > { %3780 = vmatmul.mubr.bf16.vlgmr.msra.gmra.mrb[0].mxu0 %v6879_v31  ;;  %v750_v55 = vrot.slane %v749_v39, 4  ;;  %v806_v29 = vrot.slane %v805_v50, 4  ;;  %v861_v33 = vsel %vm601_vm0, %v491_v53, 0.0  ;;  %v917_v46 = vsel %vm601_vm0, %v495_v8, 0.0 }
 0x16e   : > { %3791 = vmatpush1.bf16.msra.mxu0 %v5480_v28  ;;  %v639_v60 = vadd.f32 %v638_v2, %v637_v35  ;;  %v695_v19 = vadd.f32 %v694_v7, %v693_v34  ;;  %v862_v1 = vrot.slane %v861_v33, 4  ;;  %v918_v36 = vrot.slane %v917_v46, 4  ;;  %3934 = vmatpush1.bf16.msra.mxu1 %v5637_v26 }
 0x16f   : > { %3792 = vmatprep.subr.bf16.mxu0 %v5488_v63  ;;  %v751_v43 = vadd.f32 %v750_v55, %v749_v39  ;;  %v807_v23 = vadd.f32 %v806_v29, %v805_v50  ;;  %v973_v40 = vsel %vm601_vm0, %v499_v6, 0.0  ;;  %v1029_v37 = vsel %vm601_vm0, %v503_v10, 0.0  ;;  %3935 = vmatprep.subr.bf16.mxu1 %v5645_v16  ;;  %v5649_v6 = vld [vmem:[#allocation5 + $0x328] ss:$16 sps:$4 sm:$0xff]   ;;  %v5500_v10 = vld [vmem:[#allocation5 + $0x464] ss:$16 sps:$4 sm:$0xff]  }
 0x170   : > { %v640_v9 = vrot.slane %v639_v60, 2  ;;  %v696_v53 = vrot.slane %v695_v19, 2  ;;  %v863_v8 = vadd.f32 %v862_v1, %v861_v33  ;;  %v919_v4 = vadd.f32 %v918_v36, %v917_v46  ;;  %v5657_v55 = vld [vmem:[#allocation5 + $0x34c] ss:$16 sps:$4 sm:$0xff]  }
 0x171   : > { %v752_v25 = vrot.slane %v751_v43, 2  ;;  %v808_v56 = vrot.slane %v807_v23, 2  ;;  %v974_v13 = vrot.slane %v973_v40, 4  ;;  %v1030_v59 = vrot.slane %v1029_v37, 4 }
 0x172   : > { %3793 = vmatpush1.bf16.msra.mxu0 %v5486_v3  ;;  %v641_v22 = vadd.f32 %v640_v9, %v639_v60  ;;  %v697_v28 = vadd.f32 %v696_v53, %v695_v19  ;;  %v864_v58 = vrot.slane %v863_v8, 2  ;;  %v920_v26 = vrot.slane %v919_v4, 2  ;;  %3936 = vmatpush1.bf16.msra.mxu1 %v5643_v51  ;;  %v5498_v60 = vld [vmem:[#allocation5 + $0x460] ss:$16 sps:$4 sm:$0xff]  }
 0x173   : > { %3794 = vmatprep.subr.bf16.mxu0 %v5494_v47  ;;  %v753_v63 = vadd.f32 %v752_v25, %v751_v43  ;;  %v809_v35 = vadd.f32 %v808_v56, %v807_v23  ;;  %v975_v34 = vadd.f32 %v974_v13, %v973_v40  ;;  %v1031_v16 = vadd.f32 %v1030_v59, %v1029_v37  ;;  %v5655_v47 = vld [vmem:[#allocation5 + $0x348] ss:$16 sps:$4 sm:$0xff]   ;;  %v5506_v43 = vld [vmem:[#allocation5 + $0x484] ss:$16 sps:$4 sm:$0xff]   ;;  %v5663_v25 = vld [vmem:[#allocation5 + $0x36c] ss:$16 sps:$4 sm:$0xff]  }
 0x174   : > { %v642_v2 = vrot.slane %v641_v22, 1  ;;  %v698_v7 = vrot.slane %v697_v28, 1  ;;  %v865_v39 = vadd.f32 %v864_v58, %v863_v8  ;;  %v921_v50 = vadd.f32 %v920_v26, %v919_v4  ;;  %3937 = vmatprep.subr.bf16.mxu1 %v5651_v48  ;;  %v5512_v26 = vld [vmem:[#allocation5 + $0x4a4] ss:$16 sps:$4 sm:$0xff]  }
 0x175   : > { %v754_v29 = vrot.slane %v753_v63, 1  ;;  %v810_v33 = vrot.slane %v809_v35, 1  ;;  %v976_v46 = vrot.slane %v975_v34, 2  ;;  %v1032_v3 = vrot.slane %v1031_v16, 2 }
 0x176   : > { %3795 = vmatpush1.bf16.msra.mxu0 %v5492_v21  ;;  %v6892_v19 = vadd.f32 %v642_v2, %v641_v22  ;;  %v6894_v1 = vadd.f32 %v698_v7, %v697_v28  ;;  %v866_v36 = vrot.slane %v865_v39, 1  ;;  %v922_v51 = vrot.slane %v921_v50, 1  ;;  %3938 = vmatpush1.bf16.msra.mxu1 %v5649_v6  ;;  %v5504_v22 = vld [vmem:[#allocation5 + $0x480] ss:$16 sps:$4 sm:$0xff]  }
 0x177   : > { %3796 = vmatprep.subr.bf16.mxu0 %v5500_v10  ;;  %v6896_v23 = vadd.f32 %v754_v29, %v753_v63  ;;  %v6898_v40 = vadd.f32 %v810_v33, %v809_v35  ;;  %v977_v37 = vadd.f32 %v976_v46, %v975_v34  ;;  %v1033_v9 = vadd.f32 %v1032_v3, %v1031_v16 }
 0x178   : > { %v6900_v53 = vadd.f32 %v866_v36, %v865_v39  ;;  %v6902_v8 = vadd.f32 %v922_v51, %v921_v50  ;;  %v1085_v4 = vsel %vm601_vm0, %v507_v17, 0.0  ;;  %v1141_v48 = vsel %vm601_vm0, %v511_v62, 0.0  ;;  %3939 = vmatprep.subr.bf16.mxu1 %v5657_v55  ;;  %v5510_v55 = vld [vmem:[#allocation5 + $0x4a0] ss:$16 sps:$4 sm:$0xff]  }
 0x179   : > { %v978_v56 = vrot.slane %v977_v37, 1  ;;  %v1034_v13 = vrot.slane %v1033_v9, 1  ;;  %v1086_v59 = vrot.slane %v1085_v4, 4  ;;  %v1142_v21 = vrot.slane %v1141_v48, 4 }
 0x17a   : > { %3797 = vmatpush1.bf16.msra.mxu0 %v5498_v60  ;;  %v1197_v28 = vsel %vm601_vm0, %v515_v18, 0.0  ;;  %v1253_v17 = vsel %vm601_vm0, %v519_v27, 0.0  ;;  %v1309_v62 = vsel %vm601_vm0, %v523_v30, 0.0  ;;  %v1365_v58 = vsel %vm601_vm0, %v527_v12, 0.0  ;;  %3940 = vmatpush1.bf16.msra.mxu1 %v5655_v47  ;;  %v5661_v27 = vld [vmem:[#allocation5 + $0x368] ss:$16 sps:$4 sm:$0xff]  }
 0x17b   : > { %3798 = vmatprep.subr.bf16.mxu0 %v5506_v43  ;;  %v6928_v6 = vadd.f32 %v978_v56, %v977_v37  ;;  %v6930_v18 = vadd.f32 %v1034_v13, %v1033_v9  ;;  %v1087_v10 = vadd.f32 %v1086_v59, %v1085_v4  ;;  %v1143_v63 = vadd.f32 %v1142_v21, %v1141_v48  ;;  %v5669_v30 = vld [vmem:[#allocation5 + $0x38c] ss:$16 sps:$4 sm:$0xff]   ;;  %v5518_v60 = vld [vmem:[#allocation5 + $0x4c4] ss:$16 sps:$4 sm:$0xff]   ;;  %v5667_v37 = vld [vmem:[#allocation5 + $0x388] ss:$16 sps:$4 sm:$0xff]  }
 0x17c   : > { %v1198_v35 = vrot.slane %v1197_v28, 4  ;;  %v1254_v34 = vrot.slane %v1253_v17, 4  ;;  %v1310_v16 = vrot.slane %v1309_v62, 4  ;;  %v1366_v2 = vrot.slane %v1365_v58, 4  ;;  %3941 = vmatprep.subr.bf16.mxu1 %v5663_v25  ;;  %v5516_v21 = vld [vmem:[#allocation5 + $0x4c0] ss:$16 sps:$4 sm:$0xff]  }
 0x17d   : > { %v1088_v7 = vrot.slane %v1087_v10, 2  ;;  %v1144_v39 = vrot.slane %v1143_v63, 2  ;;  %v1421_v12 = vsel %vm601_vm0, %v531_v24, 0.0  ;;  %v1477_v50 = vsel %vm601_vm0, %v535_v32, 0.0  ;;  %v5675_v32 = vld [vmem:[#allocation5 + $0x3ac] ss:$16 sps:$4 sm:$0xff]  }
 0x17e   : > { %3799 = vmatpush1.bf16.msra.mxu0 %v5504_v22  ;;  %v1199_v29 = vadd.f32 %v1198_v35, %v1197_v28  ;;  %v1255_v33 = vadd.f32 %v1254_v34, %v1253_v17  ;;  %v1311_v46 = vadd.f32 %v1310_v16, %v1309_v62  ;;  %v1367_v3 = vadd.f32 %v1366_v2, %v1365_v58  ;;  %v5524_v58 = vld [vmem:[#allocation5 + $0x4e4] ss:$16 sps:$4 sm:$0xff]   ;;  %v5673_v35 = vld [vmem:[#allocation5 + $0x3a8] ss:$16 sps:$4 sm:$0xff]  }
 0x17f   : > { %3800 = vmatprep.subr.bf16.mxu0 %v5512_v26  ;;  %v1089_v36 = vadd.f32 %v1088_v7, %v1087_v10  ;;  %v1145_v51 = vadd.f32 %v1144_v39, %v1143_v63  ;;  %v1422_v47 = vrot.slane %v1421_v12, 4  ;;  %v1478_v43 = vrot.slane %v1477_v50, 4  ;;  %3942 = vmatpush1.bf16.msra.mxu1 %v5661_v27  ;;  %v5681_v7 = vld [vmem:[#allocation5 + $0x3cc] ss:$16 sps:$4 sm:$0xff]  }
 0x180   : > { %v1200_v24 = vrot.slane %v1199_v29, 2  ;;  %v1256_v9 = vrot.slane %v1255_v33, 2  ;;  %v1312_v4 = vrot.slane %v1311_v46, 2  ;;  %v1368_v48 = vrot.slane %v1367_v3, 2  ;;  %3943 = vmatprep.subr.bf16.mxu1 %v5669_v30 }
 0x181   : > { %v1090_v25 = vrot.slane %v1089_v36, 1  ;;  %v1146_v56 = vrot.slane %v1145_v51, 1  ;;  %v1423_v13 = vadd.f32 %v1422_v47, %v1421_v12  ;;  %v1479_v59 = vadd.f32 %v1478_v43, %v1477_v50 }
 0x182   : > { %3801 = vmatpush1.bf16.msra.mxu0 %v5510_v55  ;;  %v1201_v22 = vadd.f32 %v1200_v24, %v1199_v29  ;;  %v1257_v28 = vadd.f32 %v1256_v9, %v1255_v33  ;;  %v1313_v17 = vadd.f32 %v1312_v4, %v1311_v46  ;;  %v1369_v62 = vadd.f32 %v1368_v48, %v1367_v3  ;;  %v5522_v29 = vld [vmem:[#allocation5 + $0x4e0] ss:$16 sps:$4 sm:$0xff]   ;;  %v5530_v33 = vld [vmem:[#allocation5 + $0x504] ss:$16 sps:$4 sm:$0xff]   ;;  %v5679_v24 = vld [vmem:[#allocation5 + $0x3c8] ss:$16 sps:$4 sm:$0xff]  }
 0x183   : > { %3802 = vmatprep.subr.bf16.mxu0 %v5518_v60  ;;  %v1091_v26 = vadd.f32 %v1090_v25, %v1089_v36  ;;  %v1147_v10 = vadd.f32 %v1146_v56, %v1145_v51  ;;  %v1424_v63 = vrot.slane %v1423_v13, 2  ;;  %v1480_v27 = vrot.slane %v1479_v59, 2  ;;  %3944 = vmatpush1.bf16.msra.mxu1 %v5667_v37  ;;  %v5687_v48 = vld [vmem:[#allocation5 + $0x3ec] ss:$16 sps:$4 sm:$0xff]  }
 0x184   : > { %v1202_v34 = vrot.slane %v1201_v22, 1  ;;  %v1258_v16 = vrot.slane %v1257_v28, 1  ;;  %v1314_v2 = vrot.slane %v1313_v17, 1  ;;  %v1370_v30 = vrot.slane %v1369_v62, 1  ;;  %3945 = vmatprep.subr.bf16.mxu1 %v5675_v32 }
 0x185   : > { %v1425_v39 = vadd.f32 %v1424_v63, %v1423_v13  ;;  %v1481_v12 = vadd.f32 %v1480_v27, %v1479_v59  ;;  %v1504_v50 = vmul.f32 0.25, %v6892_v19  ;;  %v1512_v55 = vmul.f32 0.25, %v6894_v1 }
 0x186   : > { %3803 = vmatpush1.bf16.msra.mxu0 %v5516_v21  ;;  %v1203_v46 = vadd.f32 %v1202_v34, %v1201_v22  ;;  %v1259_v3 = vadd.f32 %v1258_v16, %v1257_v28  ;;  %v1315_v60 = vadd.f32 %v1314_v2, %v1313_v17  ;;  %v1371_v36 = vadd.f32 %v1370_v30, %v1369_v62  ;;  %v5534_v16 = vld [vmem:[#allocation5 + $0x520] ss:$16 sps:$4 sm:$0xff]  }
 0x187   : > { %3804 = vmatprep.subr.bf16.mxu0 %v5524_v58  ;;  %v1426_v51 = vrot.slane %v1425_v39, 1  ;;  %v1482_v47 = vrot.slane %v1481_v12, 1  ;;  %v1520_v43 = vmul.f32 0.25, %v6896_v23  ;;  %v1528_v37 = vmul.f32 0.25, %v6898_v40  ;;  %3946 = vmatpush1.bf16.msra.mxu1 %v5673_v35  ;;  %v5528_v23 = vld [vmem:[#allocation5 + $0x500] ss:$16 sps:$4 sm:$0xff]  }
 0x188   : > { %v1536_v19 = vmul.f32 0.25, %v6900_v53  ;;  %v1544_v1 = vmul.f32 0.25, %v6902_v8  ;;  %v1552_v9 = vmul.f32 0.25, %v6928_v6  ;;  %v1560_v4 = vmul.f32 0.25, %v6930_v18  ;;  %3947 = vmatprep.subr.bf16.mxu1 %v5681_v7  ;;  %v5536_v53 = vld [vmem:[#allocation5 + $0x524] ss:$16 sps:$4 sm:$0xff]  }
 0x189   : > { %v1427_v32 = vadd.f32 %v1426_v51, %v1425_v39  ;;  %v1483_v25 = vadd.f32 %v1482_v47, %v1481_v12  ;;  %v1568_v56 = vmul.f32 0.25, %v1091_v26  ;;  %v1576_v13 = vmul.f32 0.25, %v1147_v10  ;;  %v5685_v18 = vld [vmem:[#allocation5 + $0x3e8] ss:$16 sps:$4 sm:$0xff]   ;;  %v5542_v12 = vld [vmem:[#allocation5 + $0x544] ss:$16 sps:$4 sm:$0xff]  }
 0x18a   : > { %3805 = vmatpush1.bf16.msra.mxu0 %v5522_v29  ;;  %v1584_v59 = vmul.f32 0.25, %v1203_v46  ;;  %v1592_v40 = vmul.f32 0.25, %v1259_v3  ;;  %v1600_v21 = vmul.f32 0.25, %v1315_v60  ;;  %v1608_v22 = vmul.f32 0.25, %v1371_v36 }
 0x18b   : > { %3806 = vmatprep.subr.bf16.mxu0 %v5530_v33  ;;  %v1616_v28 = vmul.f32 0.25, %v1427_v32  ;;  %v1624_v8 = vmul.f32 0.25, %v1483_v25  ;;  %v1632_v17 = vpack.c.bf16 %v1504_v50, %v1504_v50  ;;  %v1640_v6 = vpack.c.bf16 %v1512_v55, %v1512_v55  ;;  %3948 = vmatpush1.bf16.msra.mxu1 %v5679_v24  ;;  %v5540_v24 = vld [vmem:[#allocation5 + $0x540] ss:$16 sps:$4 sm:$0xff]  }
 0x18c   : > { %v1648_v62 = vpack.c.bf16 %v1520_v43, %v1520_v43  ;;  %v1656_v58 = vpack.c.bf16 %v1528_v37, %v1528_v37  ;;  %v1664_v63 = vpack.c.bf16 %v1536_v19, %v1536_v19  ;;  %v1672_v27 = vpack.c.bf16 %v1544_v1, %v1544_v1  ;;  %3949 = vmatprep.subr.bf16.mxu1 %v5687_v48  ;;  %v5548_v48 = vld [vmem:[#allocation5 + $0x564] ss:$16 sps:$4 sm:$0xff]  }
 0x18d   : > { %v1680_v26 = vpack.c.bf16 %v1552_v9, %v1552_v9  ;;  %v1688_v10 = vpack.c.bf16 %v1560_v4, %v1560_v4  ;;  %v1696_v35 = vpack.c.bf16 %v1568_v56, %v1568_v56  ;;  %v1704_v34 = vpack.c.bf16 %v1576_v13, %v1576_v13 }
 0x18e   : > { %3807 = vmatpush1.bf16.msra.mxu0 %v5528_v23  ;;  %v1712_v2 = vpack.c.bf16 %v1584_v59, %v1584_v59  ;;  %v1720_v30 = vpack.c.bf16 %v1592_v40, %v1592_v40  ;;  %v1728_v7 = vpack.c.bf16 %v1600_v21, %v1600_v21  ;;  %v1736_v39 = vpack.c.bf16 %v1608_v22, %v1608_v22 }
 0x18f   : > { %3808 = vmatprep.subr.bf16.mxu0 %v5536_v53  ;;  %v1744_v50 = vpack.c.bf16 %v1616_v28, %v1616_v28  ;;  %v1752_v55 = vpack.c.bf16 %v1624_v8, %v1624_v8  ;;  %v2166_v29 = vunpack.c.l.b16 %v1632_v17  ;;  %v2174_v33 = vunpack.c.l.b16 %v1640_v6  ;;  %3950 = vmatpush1.bf16.msra.mxu1 %v5685_v18  ;;  %v5546_v8 = vld [vmem:[#allocation5 + $0x560] ss:$16 sps:$4 sm:$0xff]  }
 0x190   : > { %v2182_v46 = vunpack.c.l.b16 %v1648_v62  ;;  %v2190_v3 = vunpack.c.l.b16 %v1656_v58  ;;  %v2198_v60 = vunpack.c.l.b16 %v1664_v63  ;;  %v2206_v36 = vunpack.c.l.b16 %v1672_v27 }
 0x191   : > { %v2214_v51 = vunpack.c.l.b16 %v1680_v26  ;;  %v2222_v47 = vunpack.c.l.b16 %v1688_v10  ;;  %v2230_v43 = vunpack.c.l.b16 %v1696_v35  ;;  %v2238_v37 = vunpack.c.l.b16 %v1704_v34 }
 0x192   : > { %3809 = vmatpush1.bf16.msra.mxu0 %v5534_v16  ;;  %v2246_v19 = vunpack.c.l.b16 %v1712_v2  ;;  %v2254_v1 = vunpack.c.l.b16 %v1720_v30  ;;  %v2262_v9 = vunpack.c.l.b16 %v1728_v7  ;;  %v2270_v4 = vunpack.c.l.b16 %v1736_v39  ;;  %3952 = vmatmul.mubr.bf16.vlgmr.msra.gmra.mrb[4].mxu1 %v6879_v31  ;;  %v5552_v30 = vld [vmem:[#allocation5 + $0x580] ss:$16 sps:$4 sm:$0xff]  }
 0x193   : > { %3810 = vmatprep.subr.bf16.mxu0 %v5542_v12  ;;  %v2278_v32 = vunpack.c.l.b16 %v1744_v50  ;;  %v2286_v25 = vunpack.c.l.b16 %v1752_v55  ;;  %v2331_v56 = vsel %vm2289_vm1, %v2174_v33, %v2166_v29  ;;  %v2387_v13 = vsel %vm2289_vm1, %v2238_v37, %v2230_v43  ;;  %v5560_v55 = vld [vmem:[#allocation5 + $0x5a4] ss:$16 sps:$4 sm:$0xff]  }
 0x194   : > { %v2332_v23 = vsel %vm2291_vm2, %v2182_v46, %v2331_v56  ;;  %v2388_v59 = vsel %vm2291_vm2, %v2246_v19, %v2387_v13  ;;  %v630_v40 = vsel %vm601_vm0, %v6788_v44, 0.0  ;;  %v686_v21 = vsel %vm601_vm0, %v6791_v11, 0.0  ;;  %v5554_v11 = vld [vmem:[#allocation5 + $0x584] ss:$16 sps:$4 sm:$0xff]   ;;  %v5558_v19 = vld [vmem:[#allocation5 + $0x5a0] ss:$16 sps:$4 sm:$0xff]  }
 0x195   : > { %v2333_v31 = vsel %vm2293_vm3, %v2190_v3, %v2332_v23  ;;  %v2389_v22 = vsel %vm2293_vm3, %v2254_v1, %v2388_v59  ;;  %v631_v53 = vrot.slane %v630_v40, 4  ;;  %v687_v28 = vrot.slane %v686_v21, 4 }
 0x196   : > { %3811 = vmatpush1.bf16.msra.mxu0 %v5540_v24  ;;  %v2334_v17 = vsel %vm2295_vm4, %v2198_v60, %v2333_v31  ;;  %v2390_v6 = vsel %vm2295_vm4, %v2262_v9, %v2389_v22  ;;  %v742_v18 = vsel %vm601_vm0, %v6794_v38, 0.0  ;;  %v798_v44 = vsel %vm601_vm0, %v6797_v57, 0.0 }
 0x197   : > { %3812 = vmatprep.subr.bf16.mxu0 %v5548_v48  ;;  %v2335_v62 = vsel %vm2297_vm5, %v2206_v36, %v2334_v17  ;;  %v2391_v58 = vsel %vm2297_vm5, %v2270_v4, %v2390_v6  ;;  %v632_v63 = vadd.f32 %v631_v53, %v630_v40  ;;  %v688_v27 = vadd.f32 %v687_v28, %v686_v21  ;;  %v5566_v48 = vld [vmem:[#allocation5 + $0x5c4] ss:$16 sps:$4 sm:$0xff]   ;;  %v5564_v53 = vld [vmem:[#allocation5 + $0x5c0] ss:$16 sps:$4 sm:$0xff]  }
 0x198   : > { %v2336_v26 = vsel %vm2299_vm6, %v2214_v51, %v2335_v62  ;;  %v2392_v10 = vsel %vm2299_vm6, %v2278_v32, %v2391_v58  ;;  %v743_v35 = vrot.slane %v742_v18, 4  ;;  %v799_v34 = vrot.slane %v798_v44, 4  ;;  %v5572_v28 = vld [vmem:[#allocation5 + $0x5e4] ss:$16 sps:$4 sm:$0xff]  }
 0x199   : > { %v2337_v16 = vsel %vm2301_vm7, %v2222_v47, %v2336_v26  ;;  %v2393_v38 = vsel %vm2301_vm7, %v2286_v25, %v2392_v10  ;;  %v633_v2 = vrot.slane %v632_v63, 2  ;;  %v689_v57 = vrot.slane %v688_v27, 2 }
 0x19a   : > { %3813 = vmatpush1.bf16.msra.mxu0 %v5546_v8  ;;  %v2413_v7 = vpack.c.b16 %v2393_v38, %v2337_v16  ;;  %v744_v39 = vadd.f32 %v743_v35, %v742_v18  ;;  %v800_v12 = vadd.f32 %v799_v34, %v798_v44  ;;  %v854_v50 = vsel %vm601_vm0, %v6801_v5, 0.0  ;;  %v5706_v44 = vld [vmem:[#allocation5 + $0x40c] ss:$16 sps:$4 sm:$0xff]  }
 0x19b   : > { %3814 = vmatprep.subr.bf16.mxu0 %v5554_v11  ;;  %v634_v29 = vadd.f32 %v633_v2, %v632_v63  ;;  %v690_v33 = vadd.f32 %v689_v57, %v688_v27  ;;  %v855_v46 = vrot.slane %v854_v50, 4  ;;  %v910_v3 = vsel %vm601_vm0, %v6804_v15, 0.0  ;;  %v5704_v27 = vld [vmem:[#allocation5 + $0x408] ss:$16 sps:$4 sm:$0xff]   ;;  %3962 = vmatprep.subr.bf16.mxu1 %v5706_v44  ;;  %v5709_v57 = vld [vmem:[#allocation5 + $0x42c] ss:$16 sps:$4 sm:$0xff]  }
 0x19c   : > { %3822 = vmatprep.mubr.bf16.mxu0 %v2413_v7  ;;  %v745_v60 = vrot.slane %v744_v39, 2  ;;  %v801_v36 = vrot.slane %v800_v12, 2  ;;  %v911_v51 = vrot.slane %v910_v3, 4  ;;  %v966_v47 = vsel %vm601_vm0, %v6809_v52, 0.0  ;;  %3994 = vmatprep.mubr.bf16.mxu1 %v2413_v7  ;;  %v5707_v2 = vld [vmem:[#allocation5 + $0x428] ss:$16 sps:$4 sm:$0xff]  }
 0x19d   : > { %v635_v43 = vrot.slane %v634_v29, 1  ;;  %v691_v37 = vrot.slane %v690_v33, 1  ;;  %v856_v24 = vadd.f32 %v855_v46, %v854_v50  ;;  %v967_v5 = vrot.slane %v966_v47, 4  ;;  %3963 = vmatpush1.bf16.msra.mxu1 %v5704_v27 }
 0x19e   : > { %3815 = vmatpush1.bf16.msra.mxu0 %v5552_v30  ;;  %v746_v1 = vadd.f32 %v745_v60, %v744_v39  ;;  %v802_v9 = vadd.f32 %v801_v36, %v800_v12  ;;  %v912_v4 = vadd.f32 %v911_v51, %v910_v3  ;;  %v1022_v15 = vsel %vm601_vm0, %v6812_v20, 0.0  ;;  %v5570_v30 = vld [vmem:[#allocation5 + $0x5e0] ss:$16 sps:$4 sm:$0xff]   ;;  %3964 = vmatprep.subr.bf16.mxu1 %v5709_v57 }
 0x19f   : > { %3816 = vmatprep.subr.bf16.mxu0 %v5560_v55  ;;  %v6979_v32 = vadd.f32 %v635_v43, %v634_v29  ;;  %v6981_v25 = vadd.f32 %v691_v37, %v690_v33  ;;  %v857_v52 = vrot.slane %v856_v24, 2  ;;  %v968_v56 = vadd.f32 %v967_v5, %v966_v47  ;;  %v5594_v55 = vld [vmem:[#allocation5 + $0x604] ss:$16 sps:$4 sm:$0xff]   ;;  %v5710_v5 = vld [vmem:[#allocation5 + $0x448] ss:$16 sps:$4 sm:$0xff]  }
 0x1a0   : > { %v747_v13 = vrot.slane %v746_v1, 1  ;;  %v803_v23 = vrot.slane %v802_v9, 1  ;;  %v913_v59 = vrot.slane %v912_v4, 2  ;;  %v1023_v40 = vrot.slane %v1022_v15, 4 }
 0x1a1   : > { %v858_v21 = vadd.f32 %v857_v52, %v856_v24  ;;  %v969_v31 = vrot.slane %v968_v56, 2  ;;  %v1078_v22 = vsel %vm601_vm0, %v6821_v49, 0.0  ;;  %v1134_v20 = vsel %vm601_vm0, %v6824_v45, 0.0  ;;  %3965 = vmatpush1.bf16.msra.mxu1 %v5707_v2 }
 0x1a2   : > { %3817 = vmatpush1.bf16.msra.mxu0 %v5558_v19  ;;  %v6987_v8 = vadd.f32 %v747_v13, %v746_v1  ;;  %v6989_v17 = vadd.f32 %v803_v23, %v802_v9  ;;  %v914_v6 = vadd.f32 %v913_v59, %v912_v4  ;;  %v1024_v18 = vadd.f32 %v1023_v40, %v1022_v15  ;;  %v5715_v4 = vld [vmem:[#allocation5 + $0x46c] ss:$16 sps:$4 sm:$0xff]  }
 0x1a3   : > { %3818 = vmatprep.subr.bf16.mxu0 %v5566_v48  ;;  %v859_v11 = vrot.slane %v858_v21, 1  ;;  %v970_v62 = vadd.f32 %v969_v31, %v968_v56  ;;  %v1079_v58 = vrot.slane %v1078_v22, 4  ;;  %v1135_v63 = vrot.slane %v1134_v20, 4 }
 0x1a4   : > { %v915_v49 = vrot.slane %v914_v6, 1  ;;  %v1025_v26 = vrot.slane %v1024_v18, 2  ;;  %v1190_v45 = vsel %vm601_vm0, %v6827_v0, 0.0  ;;  %v1246_v10 = vsel %vm601_vm0, %v6836_v41, 0.0  ;;  %v5712_v0 = vld [vmem:[#allocation5 + $0x44c] ss:$16 sps:$4 sm:$0xff]  }
 0x1a5   : > { %v6995_v35 = vadd.f32 %v859_v11, %v858_v21  ;;  %v971_v34 = vrot.slane %v970_v62, 1  ;;  %v1080_v16 = vadd.f32 %v1079_v58, %v1078_v22  ;;  %v1136_v38 = vadd.f32 %v1135_v63, %v1134_v20  ;;  %3966 = vmatprep.subr.bf16.mxu1 %v5712_v0  ;;  %v5713_v22 = vld [vmem:[#allocation5 + $0x468] ss:$16 sps:$4 sm:$0xff]  }
 0x1a6   : > { %3819 = vmatpush1.bf16.msra.mxu0 %v5564_v53  ;;  %v6997_v7 = vadd.f32 %v915_v49, %v914_v6  ;;  %v1026_v39 = vadd.f32 %v1025_v26, %v1024_v18  ;;  %v1191_v12 = vrot.slane %v1190_v45, 4  ;;  %v1247_v50 = vrot.slane %v1246_v10, 4  ;;  %3967 = vmatpush1.bf16.msra.mxu1 %v5710_v5  ;;  %v5718_v18 = vld [vmem:[#allocation5 + $0x48c] ss:$16 sps:$4 sm:$0xff]  }
 0x1a7   : > { %3820 = vmatprep.subr.bf16.mxu0 %v5572_v28  ;;  %v6999_v41 = vadd.f32 %v971_v34, %v970_v62  ;;  %v1081_v29 = vrot.slane %v1080_v16, 2  ;;  %v1137_v33 = vrot.slane %v1136_v38, 2  ;;  %v1302_v46 = vsel %vm601_vm0, %v6839_v42, 0.0  ;;  %3968 = vmatprep.subr.bf16.mxu1 %v5715_v4 }
 0x1a8   : > { %v1027_v3 = vrot.slane %v1026_v39, 1  ;;  %v1192_v60 = vadd.f32 %v1191_v12, %v1190_v45  ;;  %v1248_v36 = vadd.f32 %v1247_v50, %v1246_v10  ;;  %v1303_v51 = vrot.slane %v1302_v46, 4 }
 0x1a9   : > { %v1082_v47 = vadd.f32 %v1081_v29, %v1080_v16  ;;  %v1138_v43 = vadd.f32 %v1137_v33, %v1136_v38  ;;  %v1358_v37 = vsel %vm601_vm0, %v6848_v61, 0.0  ;;  %v1414_v24 = vsel %vm601_vm0, %v6851_v54, 0.0  ;;  %v5716_v16 = vld [vmem:[#allocation5 + $0x488] ss:$16 sps:$4 sm:$0xff]  }
 0x1aa   : > { %3821 = vmatpush1.bf16.msra.mxu0 %v5570_v30  ;;  %v1028_v19 = vadd.f32 %v1027_v3, %v1026_v39  ;;  %v1193_v1 = vrot.slane %v1192_v60, 2  ;;  %v1249_v9 = vrot.slane %v1248_v36, 2  ;;  %v1304_v42 = vadd.f32 %v1303_v51, %v1302_v46  ;;  %3969 = vmatpush1.bf16.msra.mxu1 %v5713_v22 }
 0x1ab   : > { %3833 = vmatprep.subr.bf16.mxu0 %v5594_v55  ;;  %v1083_v15 = vrot.slane %v1082_v47, 1  ;;  %v1139_v48 = vrot.slane %v1138_v43, 1  ;;  %v1359_v52 = vrot.slane %v1358_v37, 4  ;;  %v1415_v56 = vrot.slane %v1414_v24, 4  ;;  %3970 = vmatprep.subr.bf16.mxu1 %v5718_v18 }
 0x1ac   : > { %v1194_v13 = vadd.f32 %v1193_v1, %v1192_v60  ;;  %v1250_v23 = vadd.f32 %v1249_v9, %v1248_v36  ;;  %v1305_v61 = vrot.slane %v1304_v42, 2  ;;  %v1470_v54 = vsel %vm601_vm0, %v6860_v14, 0.0  ;;  %v5719_v60 = vld [vmem:[#allocation5 + $0x4a8] ss:$16 sps:$4 sm:$0xff]  }
 0x1ad   : > { %v1084_v59 = vadd.f32 %v1083_v15, %v1082_v47  ;;  %v1140_v40 = vadd.f32 %v1139_v48, %v1138_v43  ;;  %v1360_v21 = vadd.f32 %v1359_v52, %v1358_v37  ;;  %v1416_v31 = vadd.f32 %v1415_v56, %v1414_v24  ;;  %v5724_v47 = vld [vmem:[#allocation5 + $0x4cc] ss:$16 sps:$4 sm:$0xff]   ;;  %v5722_v52 = vld [vmem:[#allocation5 + $0x4c8] ss:$16 sps:$4 sm:$0xff]  }
 0x1ae   : > { %v1195_v20 = vrot.slane %v1194_v13, 1  ;;  %v1251_v53 = vrot.slane %v1250_v23, 1  ;;  %v1306_v28 = vadd.f32 %v1305_v61, %v1304_v42  ;;  %v1471_v6 = vrot.slane %v1470_v54, 4  ;;  %3971 = vmatpush1.bf16.msra.mxu1 %v5716_v16  ;;  %v5730_v16 = vld [vmem:[#allocation5 + $0x50c] ss:$16 sps:$4 sm:$0xff]  }
 0x1af   : > { %v1361_v44 = vrot.slane %v1360_v21, 2  ;;  %v1417_v11 = vrot.slane %v1416_v31, 2  ;;  %v1503_v62 = vmul.f32 0.25, %v6979_v32  ;;  %v1511_v58 = vmul.f32 0.25, %v6981_v25  ;;  %v5721_v25 = vld [vmem:[#allocation5 + $0x4ac] ss:$16 sps:$4 sm:$0xff]  }
 0x1b0   : > { %v1196_v63 = vadd.f32 %v1195_v20, %v1194_v13  ;;  %v1252_v14 = vadd.f32 %v1251_v53, %v1250_v23  ;;  %v1307_v27 = vrot.slane %v1306_v28, 1  ;;  %v1472_v49 = vadd.f32 %v1471_v6, %v1470_v54  ;;  %3972 = vmatprep.subr.bf16.mxu1 %v5721_v25  ;;  %v5727_v54 = vld [vmem:[#allocation5 + $0x4ec] ss:$16 sps:$4 sm:$0xff]  }
 0x1b1   : > { %v1362_v26 = vadd.f32 %v1361_v44, %v1360_v21  ;;  %v1418_v45 = vadd.f32 %v1417_v11, %v1416_v31  ;;  %v1519_v10 = vmul.f32 0.25, %v6987_v8  ;;  %v1527_v34 = vmul.f32 0.25, %v6989_v17  ;;  %v7017_v6 = vld [vmem:[%s6351_s12 + $0x18] sm:$0xff] }
 0x1b2   : > { %v1308_v38 = vadd.f32 %v1307_v27, %v1306_v28  ;;  %v1473_v2 = vrot.slane %v1472_v49, 2  ;;  %v1535_v57 = vmul.f32 0.25, %v6995_v35  ;;  %v1543_v32 = vmul.f32 0.25, %v6997_v7  ;;  %3973 = vmatpush1.bf16.msra.mxu1 %v5719_v60  ;;  %v7037_v25 = vld [vmem:[%s6351_s12 + $0xd8] sm:$0xff] }
 0x1b3   : > { %v1363_v30 = vrot.slane %v1362_v26, 1  ;;  %v1419_v39 = vrot.slane %v1418_v45, 1  ;;  %v1551_v12 = vmul.f32 0.25, %v6999_v41  ;;  %v1559_v50 = vmul.f32 0.25, %v1028_v19  ;;  %3974 = vmatprep.subr.bf16.mxu1 %v5724_v47  ;;  %v7071_v47 = vld [vmem:[%s6351_s12 + $0x198] sm:$0xff] }
 0x1b4   : > { %v1474_v0 = vadd.f32 %v1473_v2, %v1472_v49  ;;  %v1567_v55 = vmul.f32 0.25, %v1084_v59  ;;  %v1575_v8 = vmul.f32 0.25, %v1140_v40  ;;  %v1583_v29 = vmul.f32 0.25, %v1196_v63  ;;  %v7023_v63 = vld [vmem:[%s6351_s12 + $0x58] sm:$0xff] }
 0x1b5   : > { %v1364_v17 = vadd.f32 %v1363_v30, %v1362_v26  ;;  %v1420_v33 = vadd.f32 %v1419_v39, %v1418_v45  ;;  %v1591_v46 = vmul.f32 0.25, %v1252_v14  ;;  %v1599_v3 = vmul.f32 0.25, %v1308_v38  ;;  %v5725_v14 = vld [vmem:[#allocation5 + $0x4e8] ss:$16 sps:$4 sm:$0xff]  }
 0x1b6   : > { %v1475_v35 = vrot.slane %v1474_v0, 1  ;;  %v1631_v36 = vpack.c.bf16 %v1503_v62, %v1503_v62  ;;  %v1639_v7 = vpack.c.bf16 %v1511_v58, %v1511_v58  ;;  %v1647_v51 = vpack.c.bf16 %v1519_v10, %v1519_v10  ;;  %v7020_v58 = vld [vmem:[%s6351_s12 + $0x38] sm:$0xff]  ;;  %3975 = vmatpush1.bf16.msra.mxu1 %v5722_v52 }
 0x1b7   : > { %v1607_v43 = vmul.f32 0.25, %v1364_v17  ;;  %v1615_v37 = vmul.f32 0.25, %v1420_v33  ;;  %v1655_v41 = vpack.c.bf16 %v1527_v34, %v1527_v34  ;;  %v1663_v24 = vpack.c.bf16 %v1535_v57, %v1535_v57  ;;  %v7026_v10 = vld [vmem:[%s6351_s12 + $0x78] sm:$0xff]  ;;  %3976 = vmatprep.subr.bf16.mxu1 %v5727_v54 }
 0x1b8   : > { %v1476_v5 = vadd.f32 %v1475_v35, %v1474_v0  ;;  %v1671_v19 = vpack.c.bf16 %v1543_v32, %v1543_v32  ;;  %v1679_v1 = vpack.c.bf16 %v1551_v12, %v1551_v12  ;;  %v1687_v9 = vpack.c.bf16 %v1559_v50, %v1559_v50  ;;  %v7029_v34 = vld [vmem:[%s6351_s12 + $0x98] sm:$0xff] }
 0x1b9   : > { %v1695_v42 = vpack.c.bf16 %v1567_v55, %v1567_v55  ;;  %v1703_v4 = vpack.c.bf16 %v1575_v8, %v1575_v8  ;;  %v1711_v15 = vpack.c.bf16 %v1583_v29, %v1583_v29  ;;  %v1719_v48 = vpack.c.bf16 %v1591_v46, %v1591_v46  ;;  %v7034_v32 = vld [vmem:[%s6351_s12 + $0xb8] sm:$0xff] }
 0x1ba   : > { %v1623_v56 = vmul.f32 0.25, %v1476_v5  ;;  %v1727_v13 = vpack.c.bf16 %v1599_v3, %v1599_v3  ;;  %v1735_v23 = vpack.c.bf16 %v1607_v43, %v1607_v43  ;;  %v1743_v61 = vpack.c.bf16 %v1615_v37, %v1615_v37  ;;  %v7044_v50 = vld [vmem:[%s6351_s12 + $0xf8] sm:$0xff]  ;;  %3977 = vmatpush1.bf16.msra.mxu1 %v5725_v14 }
 0x1bb   : > { %v2165_v59 = vunpack.c.l.b16 %v1631_v36  ;;  %v2173_v40 = vunpack.c.l.b16 %v1639_v7  ;;  %v2181_v21 = vunpack.c.l.b16 %v1647_v51  ;;  %v2189_v31 = vunpack.c.l.b16 %v1655_v41  ;;  %v7047_v0 = vld [vmem:[%s6351_s12 + $0x118] sm:$0xff]  ;;  %3978 = vmatprep.subr.bf16.mxu1 %v5730_v16 }
 0x1bc   : > { %v1751_v22 = vpack.c.bf16 %v1623_v56, %v1623_v56  ;;  %v2197_v20 = vunpack.c.l.b16 %v1663_v24  ;;  %v2205_v53 = vunpack.c.l.b16 %v1671_v19  ;;  %v2213_v28 = vunpack.c.l.b16 %v1679_v1  ;;  %v7056_v33 = vld [vmem:[%s6351_s12 + $0x138] sm:$0xff] }
 0x1bd   : > { %v2221_v18 = vunpack.c.l.b16 %v1687_v9  ;;  %v2229_v44 = vunpack.c.l.b16 %v1695_v42  ;;  %v2237_v11 = vunpack.c.l.b16 %v1703_v4  ;;  %v2245_v62 = vunpack.c.l.b16 %v1711_v15  ;;  %v7059_v46 = vld [vmem:[%s6351_s12 + $0x158] sm:$0xff] }
 0x1be   : > { %v2253_v27 = vunpack.c.l.b16 %v1719_v48  ;;  %v2261_v49 = vunpack.c.l.b16 %v1727_v13  ;;  %v2269_v26 = vunpack.c.l.b16 %v1735_v23  ;;  %v2277_v45 = vunpack.c.l.b16 %v1743_v61  ;;  %v5728_v35 = vld [vmem:[#allocation5 + $0x508] ss:$16 sps:$4 sm:$0xff]   ;;  %v5733_v41 = vld [vmem:[#allocation5 + $0x52c] ss:$16 sps:$4 sm:$0xff]   ;;  %v5592_v13 = vld [vmem:[#allocation5 + $0x600] ss:$16 sps:$4 sm:$0xff]  }
 0x1bf   : > { %v2285_v38 = vunpack.c.l.b16 %v1751_v22  ;;  %v2324_v2 = vsel %vm2289_vm1, %v2173_v40, %v2165_v59  ;;  %v2380_v57 = vsel %vm2289_vm1, %v2237_v11, %v2229_v44  ;;  %v476_v30 = vcombine.high %v7017_v6, %v7017_v6  ;;  %v7068_v51 = vld [vmem:[%s6351_s12 + $0x178] sm:$0xff]  ;;  %3979 = vmatpush1.bf16.msra.mxu1 %v5728_v35 }
 0x1c0   : > { %v2325_v39 = vsel %vm2291_vm2, %v2181_v21, %v2324_v2  ;;  %v2381_v12 = vsel %vm2291_vm2, %v2245_v62, %v2380_v57  ;;  %v480_v55 = vcombine.high %v7020_v58, %v7020_v58  ;;  %v484_v8 = vcombine.high %v7023_v63, %v7023_v63  ;;  %v7080_v19 = vld [vmem:[%s6351_s12 + $0x1b8] sm:$0xff]  ;;  %3980 = vmatprep.subr.bf16.mxu1 %v5733_v41 }
 0x1c1   : > { %v2326_v29 = vsel %vm2293_vm3, %v2189_v31, %v2325_v39  ;;  %v2382_v17 = vsel %vm2293_vm3, %v2253_v27, %v2381_v12  ;;  %v488_v3 = vcombine.high %v7026_v10, %v7026_v10  ;;  %v492_v60 = vcombine.high %v7029_v34, %v7029_v34  ;;  %v7083_v1 = vld [vmem:[%s6351_s12 + $0x1d8] sm:$0xff]  ;;  %v5600_v31 = vld [vmem:[#allocation5 + $0x624] ss:$16 sps:$4 sm:$0xff]  }
 0x1c2   : > { %v2327_v36 = vsel %vm2295_vm4, %v2197_v20, %v2326_v29  ;;  %v2383_v7 = vsel %vm2295_vm4, %v2261_v49, %v2382_v17  ;;  %v496_v43 = vcombine.high %v7034_v32, %v7034_v32  ;;  %v500_v37 = vcombine.high %v7037_v25, %v7037_v25  ;;  %v7086_v9 = vld [vmem:[%s6351_s12 + $0x1f8] sm:$0xff]  ;;  %s4727_s12 = scalar_lea.sflag [#allocation4], %s6347_s21 }
 0x1c3   : > { %v2328_v24 = vsel %vm2297_vm5, %v2205_v53, %v2327_v36  ;;  %v2384_v5 = vsel %vm2297_vm5, %v2269_v26, %v2383_v7  ;;  %v504_v42 = vcombine.high %v7044_v50, %v7044_v50  ;;  %v508_v4 = vcombine.high %v7047_v0, %v7047_v0  ;;  %v5731_v40 = vld [vmem:[#allocation5 + $0x528] ss:$16 sps:$4 sm:$0xff]   ;;  %v5736_v62 = vld [vmem:[#allocation5 + $0x54c] ss:$16 sps:$4 sm:$0xff]  }
 0x1c4   : > { %v2329_v15 = vsel %vm2299_vm6, %v2213_v28, %v2328_v24  ;;  %v2385_v48 = vsel %vm2299_vm6, %v2277_v45, %v2384_v5  ;;  %v512_v52 = vcombine.high %v7056_v33, %v7056_v33  ;;  %v516_v56 = vcombine.high %v7059_v46, %v7059_v46  ;;  %v5598_v45 = vld [vmem:[#allocation5 + $0x620] ss:$16 sps:$4 sm:$0xff]   ;;  %3981 = vmatpush1.bf16.msra.mxu1 %v5731_v40  ;;  %v5734_v36 = vld [vmem:[#allocation5 + $0x548] ss:$16 sps:$4 sm:$0xff]  }
 0x1c5   : > { %v2330_v23 = vsel %vm2301_vm7, %v2221_v18, %v2329_v15  ;;  %v2386_v61 = vsel %vm2301_vm7, %v2285_v38, %v2385_v48  ;;  %v520_v54 = vcombine.high %v7068_v51, %v7068_v51  ;;  %v524_v59 = vcombine.high %v7071_v47, %v7071_v47  ;;  %3982 = vmatprep.subr.bf16.mxu1 %v5736_v62  ;;  %v5604_v24 = vld [vmem:[#allocation5 + $0x640] ss:$16 sps:$4 sm:$0xff]   ;;  %v5737_v62 = vld [vmem:[#allocation5 + $0x568] ss:$16 sps:$4 sm:$0xff]  }
 0x1c6   : > { %v7104_v21 = vpack.c.b16 %v2386_v61, %v2330_v23  ;;  %v528_v22 = vcombine.high %v7080_v19, %v7080_v19  ;;  %v532_v20 = vcombine.high %v7083_v1, %v7083_v1  ;;  %v536_v53 = vcombine.high %v7086_v9, %v7086_v9 }
 0x1c7   : > { %v651_v28 = vsel %vm601_vm0, %v476_v30, 0.0  ;;  %v707_v18 = vsel %vm601_vm0, %v480_v55, 0.0  ;;  %v763_v44 = vsel %vm601_vm0, %v484_v8, 0.0  ;;  %v819_v11 = vsel %vm601_vm0, %v488_v3, 0.0  ;;  %v5606_v30 = vld [vmem:[#allocation5 + $0x644] ss:$16 sps:$4 sm:$0xff]  }
 0x1c8   : > { %3823 = vmatmul.mubr.bf16.vlgmr.msra.gmra.mrb[0].mxu0 %v7104_v21  ;;  %v652_v14 = vrot.slane %v651_v28, 4  ;;  %v708_v27 = vrot.slane %v707_v18, 4  ;;  %v764_v49 = vrot.slane %v763_v44, 4  ;;  %v820_v26 = vrot.slane %v819_v11, 4  ;;  %3983 = vmatpush1.bf16.msra.mxu1 %v5734_v36 }
 0x1c9   : > { %3834 = vmatpush1.bf16.msra.mxu0 %v5592_v13  ;;  %v875_v16 = vsel %vm601_vm0, %v492_v60, 0.0  ;;  %v931_v38 = vsel %vm601_vm0, %v496_v43, 0.0  ;;  %v987_v2 = vsel %vm601_vm0, %v500_v37, 0.0  ;;  %v1043_v57 = vsel %vm601_vm0, %v504_v42, 0.0  ;;  %v5739_v37 = vld [vmem:[#allocation5 + $0x56c] ss:$16 sps:$4 sm:$0xff]  }
 0x1ca   : > { %3835 = vmatprep.subr.bf16.mxu0 %v5600_v31  ;;  %v653_v39 = vadd.f32 %v652_v14, %v651_v28  ;;  %v709_v12 = vadd.f32 %v708_v27, %v707_v18  ;;  %v765_v55 = vadd.f32 %v764_v49, %v763_v44  ;;  %v821_v8 = vadd.f32 %v820_v26, %v819_v11  ;;  %v5612_v13 = vld [vmem:[#allocation5 + $0x664] ss:$16 sps:$4 sm:$0xff]  }
 0x1cb   : > { %v876_v29 = vrot.slane %v875_v16, 4  ;;  %v932_v17 = vrot.slane %v931_v38, 4  ;;  %v988_v3 = vrot.slane %v987_v2, 4  ;;  %v1044_v35 = vrot.slane %v1043_v57, 4  ;;  %3984 = vmatprep.subr.bf16.mxu1 %v5739_v37 }
 0x1cc   : > { %v654_v60 = vrot.slane %v653_v39, 2  ;;  %v710_v7 = vrot.slane %v709_v12, 2  ;;  %v766_v43 = vrot.slane %v765_v55, 2  ;;  %v822_v41 = vrot.slane %v821_v8, 2  ;;  %3985 = vmatpush1.bf16.msra.mxu1 %v5737_v62 }
 0x1cd   : > { %3836 = vmatpush1.bf16.msra.mxu0 %v5598_v45  ;;  %v877_v5 = vadd.f32 %v876_v29, %v875_v16  ;;  %v933_v42 = vadd.f32 %v932_v17, %v931_v38  ;;  %v989_v15 = vadd.f32 %v988_v3, %v987_v2  ;;  %v1045_v48 = vadd.f32 %v1044_v35, %v1043_v57  ;;  %v5742_v45 = vld [vmem:[#allocation5 + $0x58c] ss:$16 sps:$4 sm:$0xff]   ;;  %v5610_v16 = vld [vmem:[#allocation5 + $0x660] ss:$16 sps:$4 sm:$0xff]  }
 0x1ce   : > { %3837 = vmatprep.subr.bf16.mxu0 %v5606_v30  ;;  %v655_v23 = vadd.f32 %v654_v60, %v653_v39  ;;  %v711_v61 = vadd.f32 %v710_v7, %v709_v12  ;;  %v767_v40 = vadd.f32 %v766_v43, %v765_v55  ;;  %v823_v31 = vadd.f32 %v822_v41, %v821_v8  ;;  %v5618_v39 = vld [vmem:[#allocation5 + $0x684] ss:$16 sps:$4 sm:$0xff]   ;;  %v5740_v60 = vld [vmem:[#allocation5 + $0x588] ss:$16 sps:$4 sm:$0xff]  }
 0x1cf   : > { %v878_v28 = vrot.slane %v877_v5, 2  ;;  %v934_v18 = vrot.slane %v933_v42, 2  ;;  %v990_v44 = vrot.slane %v989_v15, 2  ;;  %v1046_v11 = vrot.slane %v1045_v48, 2  ;;  %3986 = vmatprep.subr.bf16.mxu1 %v5742_v45 }
 0x1d0   : > { %v656_v14 = vrot.slane %v655_v23, 1  ;;  %v712_v27 = vrot.slane %v711_v61, 1  ;;  %v768_v49 = vrot.slane %v767_v40, 1  ;;  %v824_v26 = vrot.slane %v823_v31, 1  ;;  %3987 = vmatpush1.bf16.msra.mxu1 %v5740_v60 }
 0x1d1   : > { %3838 = vmatpush1.bf16.msra.mxu0 %v5604_v24  ;;  %v879_v38 = vadd.f32 %v878_v28, %v877_v5  ;;  %v935_v2 = vadd.f32 %v934_v18, %v933_v42  ;;  %v991_v57 = vadd.f32 %v990_v44, %v989_v15  ;;  %v1047_v30 = vadd.f32 %v1046_v11, %v1045_v48  ;;  %v5745_v24 = vld [vmem:[#allocation5 + $0x5ac] ss:$16 sps:$4 sm:$0xff]   ;;  %v5616_v5 = vld [vmem:[#allocation5 + $0x680] ss:$16 sps:$4 sm:$0xff]   ;;  %v5624_v48 = vld [vmem:[#allocation5 + $0x6a4] ss:$16 sps:$4 sm:$0xff]  }
 0x1d2   : > { %3839 = vmatprep.subr.bf16.mxu0 %v5612_v13  ;;  %v7121_v12 = vadd.f32 %v656_v14, %v655_v23  ;;  %v7123_v55 = vadd.f32 %v712_v27, %v711_v61  ;;  %v7125_v8 = vadd.f32 %v768_v49, %v767_v40  ;;  %v7127_v29 = vadd.f32 %v824_v26, %v823_v31  ;;  %v5743_v18 = vld [vmem:[#allocation5 + $0x5a8] ss:$16 sps:$4 sm:$0xff]   ;;  %v5748_v14 = vld [vmem:[#allocation5 + $0x5cc] ss:$16 sps:$4 sm:$0xff]  }
 0x1d3   : > { %v880_v17 = vrot.slane %v879_v38, 1  ;;  %v936_v3 = vrot.slane %v935_v2, 1  ;;  %v992_v35 = vrot.slane %v991_v57, 1  ;;  %v1048_v36 = vrot.slane %v1047_v30, 1  ;;  %3988 = vmatprep.subr.bf16.mxu1 %v5745_v24 }
 0x1d4   : > { %v1099_v7 = vsel %vm601_vm0, %v508_v4, 0.0  ;;  %v1155_v43 = vsel %vm601_vm0, %v512_v52, 0.0  ;;  %v1211_v41 = vsel %vm601_vm0, %v516_v56, 0.0  ;;  %v1267_v37 = vsel %vm601_vm0, %v520_v54, 0.0  ;;  %3989 = vmatpush1.bf16.msra.mxu1 %v5743_v18 }
 0x1d5   : > { %3840 = vmatpush1.bf16.msra.mxu0 %v5610_v16  ;;  %v7145_v4 = vadd.f32 %v880_v17, %v879_v38  ;;  %v7147_v42 = vadd.f32 %v936_v3, %v935_v2  ;;  %v7149_v15 = vadd.f32 %v992_v35, %v991_v57  ;;  %v7151_v52 = vadd.f32 %v1048_v36, %v1047_v30  ;;  %v5746_v3 = vld [vmem:[#allocation5 + $0x5c8] ss:$16 sps:$4 sm:$0xff]  }
 0x1d6   : > { %3841 = vmatprep.subr.bf16.mxu0 %v5618_v39  ;;  %v1100_v56 = vrot.slane %v1099_v7, 4  ;;  %v1156_v13 = vrot.slane %v1155_v43, 4  ;;  %v1212_v23 = vrot.slane %v1211_v41, 4  ;;  %v1268_v61 = vrot.slane %v1267_v37, 4  ;;  %3990 = vmatprep.subr.bf16.mxu1 %v5748_v14 }
 0x1d7   : > { %v1323_v54 = vsel %vm601_vm0, %v524_v59, 0.0  ;;  %v1379_v40 = vsel %vm601_vm0, %v528_v22, 0.0  ;;  %v1435_v31 = vsel %vm601_vm0, %v532_v20, 0.0  ;;  %v1491_v28 = vsel %vm601_vm0, %v536_v53, 0.0  ;;  %v5622_v22 = vld [vmem:[#allocation5 + $0x6a0] ss:$16 sps:$4 sm:$0xff]  }
 0x1d8   : > { %v1101_v44 = vadd.f32 %v1100_v56, %v1099_v7  ;;  %v1157_v11 = vadd.f32 %v1156_v13, %v1155_v43  ;;  %v1213_v59 = vadd.f32 %v1212_v23, %v1211_v41  ;;  %v1269_v62 = vadd.f32 %v1268_v61, %v1267_v37  ;;  %v5630_v20 = vld [vmem:[#allocation5 + $0x6c4] ss:$16 sps:$4 sm:$0xff]   ;;  %v5751_v43 = vld [vmem:[#allocation5 + $0x5ec] ss:$16 sps:$4 sm:$0xff]   ;;  %v5628_v41 = vld [vmem:[#allocation5 + $0x6c0] ss:$16 sps:$4 sm:$0xff]   ;;  %3991 = vmatpush1.bf16.msra.mxu1 %v5746_v3 }
 0x1d9   : > { %3842 = vmatpush1.bf16.msra.mxu0 %v5616_v5  ;;  %v1324_v27 = vrot.slane %v1323_v54, 4  ;;  %v1380_v49 = vrot.slane %v1379_v40, 4  ;;  %v1436_v26 = vrot.slane %v1435_v31, 4  ;;  %v1492_v45 = vrot.slane %v1491_v28, 4  ;;  %v5636_v56 = vld [vmem:[#allocation5 + $0x6e4] ss:$16 sps:$4 sm:$0xff]   ;;  %3992 = vmatprep.subr.bf16.mxu1 %v5751_v43 }
 0x1da   : > { %3843 = vmatprep.subr.bf16.mxu0 %v5624_v48  ;;  %v1102_v16 = vrot.slane %v1101_v44, 2  ;;  %v1158_v38 = vrot.slane %v1157_v11, 2  ;;  %v1214_v2 = vrot.slane %v1213_v59, 2  ;;  %v1270_v53 = vrot.slane %v1269_v62, 2 }
 0x1db   : > { %v1325_v57 = vadd.f32 %v1324_v27, %v1323_v54  ;;  %v1381_v30 = vadd.f32 %v1380_v49, %v1379_v40  ;;  %v1437_v39 = vadd.f32 %v1436_v26, %v1435_v31  ;;  %v1493_v17 = vadd.f32 %v1492_v45, %v1491_v28  ;;  %v5634_v27 = vld [vmem:[#allocation5 + $0x6e0] ss:$16 sps:$4 sm:$0xff]  }
 0x1dc   : > { %v1103_v35 = vadd.f32 %v1102_v16, %v1101_v44  ;;  %v1159_v36 = vadd.f32 %v1158_v38, %v1157_v11  ;;  %v1215_v60 = vadd.f32 %v1214_v2, %v1213_v59  ;;  %v1271_v7 = vadd.f32 %v1270_v53, %v1269_v62  ;;  %v5749_v44 = vld [vmem:[#allocation5 + $0x5e8] ss:$16 sps:$4 sm:$0xff]   ;;  %v5642_v16 = vld [vmem:[#allocation5 + $0x704] ss:$16 sps:$4 sm:$0xff]  }
 0x1dd   : > { %3844 = vmatpush1.bf16.msra.mxu0 %v5622_v22  ;;  %v1326_v37 = vrot.slane %v1325_v57, 2  ;;  %v1382_v24 = vrot.slane %v1381_v30, 2  ;;  %v1438_v5 = vrot.slane %v1437_v39, 2  ;;  %v1494_v48 = vrot.slane %v1493_v17, 2  ;;  %v5754_v22 = vld [vmem:[#allocation5 + $0x60c] ss:$16 sps:$4 sm:$0xff]   ;;  %3993 = vmatpush1.bf16.msra.mxu1 %v5749_v44 }
 0x1de   : > { %3845 = vmatprep.subr.bf16.mxu0 %v5630_v20  ;;  %v1104_v13 = vrot.slane %v1103_v35, 1  ;;  %v1160_v23 = vrot.slane %v1159_v36, 1  ;;  %v1216_v61 = vrot.slane %v1215_v60, 1  ;;  %v1272_v54 = vrot.slane %v1271_v7, 1  ;;  %4005 = vmatprep.subr.bf16.mxu1 %v5754_v22 }
 0x1df   : > { %v1327_v40 = vadd.f32 %v1326_v37, %v1325_v57  ;;  %v1383_v31 = vadd.f32 %v1382_v24, %v1381_v30  ;;  %v1439_v28 = vadd.f32 %v1438_v5, %v1437_v39  ;;  %v1495_v18 = vadd.f32 %v1494_v48, %v1493_v17  ;;  %v5640_v30 = vld [vmem:[#allocation5 + $0x700] ss:$16 sps:$4 sm:$0xff]  }
 0x1e0   : > { %v1105_v11 = vadd.f32 %v1104_v13, %v1103_v35  ;;  %v1161_v59 = vadd.f32 %v1160_v23, %v1159_v36  ;;  %v1217_v62 = vadd.f32 %v1216_v61, %v1215_v60  ;;  %v1273_v14 = vadd.f32 %v1272_v54, %v1271_v7  ;;  %v5752_v36 = vld [vmem:[#allocation5 + $0x608] ss:$16 sps:$4 sm:$0xff]   ;;  %v5757_v60 = vld [vmem:[#allocation5 + $0x62c] ss:$16 sps:$4 sm:$0xff]   ;;  %v5648_v7 = vld [vmem:[#allocation5 + $0x724] ss:$16 sps:$4 sm:$0xff]   ;;  %3995 = vmatmul.mubr.bf16.vlgmr.msra.gmra.mrb[4].mxu1 %v7104_v21 }
 0x1e1   : > { %3846 = vmatpush1.bf16.msra.mxu0 %v5628_v41  ;;  %v1328_v49 = vrot.slane %v1327_v40, 1  ;;  %v1384_v26 = vrot.slane %v1383_v31, 1  ;;  %v1440_v45 = vrot.slane %v1439_v28, 1  ;;  %v1496_v20 = vrot.slane %v1495_v18, 1  ;;  %4006 = vmatpush1.bf16.msra.mxu1 %v5752_v36  ;;  %v5763_v36 = vld [vmem:[#allocation5 + $0x66c] ss:$16 sps:$4 sm:$0xff]  }
 0x1e2   : > { %3847 = vmatprep.subr.bf16.mxu0 %v5636_v56  ;;  %v1506_v38 = vmul.f32 0.25, %v7121_v12  ;;  %v1514_v2 = vmul.f32 0.25, %v7123_v55  ;;  %v1522_v53 = vmul.f32 0.25, %v7125_v8  ;;  %v1530_v57 = vmul.f32 0.25, %v7127_v29  ;;  %4007 = vmatprep.subr.bf16.mxu1 %v5757_v60  ;;  %v5652_v60 = vld [vmem:[#allocation5 + $0x740] ss:$16 sps:$4 sm:$0xff]  }
 0x1e3   : > { %v1329_v39 = vadd.f32 %v1328_v49, %v1327_v40  ;;  %v1385_v17 = vadd.f32 %v1384_v26, %v1383_v31  ;;  %v1441_v3 = vadd.f32 %v1440_v45, %v1439_v28  ;;  %v1497_v35 = vadd.f32 %v1496_v20, %v1495_v18  ;;  %v5755_v40 = vld [vmem:[#allocation5 + $0x628] ss:$16 sps:$4 sm:$0xff]   ;;  %v5654_v49 = vld [vmem:[#allocation5 + $0x744] ss:$16 sps:$4 sm:$0xff]  }
 0x1e4   : > { %v1538_v43 = vmul.f32 0.25, %v7145_v4  ;;  %v1546_v41 = vmul.f32 0.25, %v7147_v42  ;;  %v1554_v12 = vmul.f32 0.25, %v7149_v15  ;;  %v1562_v55 = vmul.f32 0.25, %v7151_v52  ;;  %v7177_v8 = vpop.f32.mrb[0].mxu1 }
 0x1e5   : > { %3848 = vmatpush1.bf16.msra.mxu0 %v5634_v27  ;;  %v1570_v29 = vmul.f32 0.25, %v1105_v11  ;;  %v1578_v37 = vmul.f32 0.25, %v1161_v59  ;;  %v1586_v24 = vmul.f32 0.25, %v1217_v62  ;;  %v1594_v5 = vmul.f32 0.25, %v1273_v14  ;;  %v7179_v48 = vpop.f32.mrb[1].mxu1  ;;  %4008 = vmatpush1.bf16.msra.mxu1 %v5755_v40 }
 0x1e6   : > { %3849 = vmatprep.subr.bf16.mxu0 %v5642_v16  ;;  %v1602_v56 = vmul.f32 0.25, %v1329_v39  ;;  %v1610_v13 = vmul.f32 0.25, %v1385_v17  ;;  %v1618_v4 = vmul.f32 0.25, %v1441_v3  ;;  %v1626_v23 = vmul.f32 0.25, %v1497_v35  ;;  %v7182_v42 = vpop.f32.mrb[2].mxu1 }
 0x1e7   : > { %v1634_v15 = vpack.c.bf16 %v1506_v38, %v1506_v38  ;;  %v1642_v52 = vpack.c.bf16 %v1514_v2, %v1514_v2  ;;  %v1650_v61 = vpack.c.bf16 %v1522_v53, %v1522_v53  ;;  %v1658_v54 = vpack.c.bf16 %v1530_v57, %v1530_v57  ;;  %v7184_v31 = vpop.f32.mrb[3].mxu1  ;;  %v5760_v59 = vld [vmem:[#allocation5 + $0x64c] ss:$16 sps:$4 sm:$0xff]   ;;  %v5646_v62 = vld [vmem:[#allocation5 + $0x720] ss:$16 sps:$4 sm:$0xff]  }
 0x1e8   : > { %v1666_v28 = vpack.c.bf16 %v1538_v43, %v1538_v43  ;;  %v1674_v18 = vpack.c.bf16 %v1546_v41, %v1546_v41  ;;  %v1682_v44 = vpack.c.bf16 %v1554_v12, %v1554_v12  ;;  %v1690_v11 = vpack.c.bf16 %v1562_v55, %v1562_v55  ;;  %v5758_v39 = vld [vmem:[#allocation5 + $0x648] ss:$16 sps:$4 sm:$0xff]   ;;  %4009 = vmatprep.subr.bf16.mxu1 %v5760_v59  ;;  %v5660_v55 = vld [vmem:[#allocation5 + $0x764] ss:$16 sps:$4 sm:$0xff]  }
 0x1e9   : > { %3850 = vmatpush1.bf16.msra.mxu0 %v5640_v30  ;;  %v1698_v14 = vpack.c.bf16 %v1570_v29, %v1570_v29  ;;  %v1706_v21 = vpack.c.bf16 %v1578_v37, %v1578_v37  ;;  %v1714_v22 = vpack.c.bf16 %v1586_v24, %v1586_v24  ;;  %v1722_v27 = vpack.c.bf16 %v1594_v5, %v1594_v5  ;;  %v5666_v59 = vld [vmem:[#allocation5 + $0x784] ss:$16 sps:$4 sm:$0xff]  }
 0x1ea   : > { %3851 = vmatprep.subr.bf16.mxu0 %v5648_v7  ;;  %v1730_v26 = vpack.c.bf16 %v1602_v56, %v1602_v56  ;;  %v1738_v45 = vpack.c.bf16 %v1610_v13, %v1610_v13  ;;  %v1746_v20 = vpack.c.bf16 %v1618_v4, %v1618_v4  ;;  %v1754_v16 = vpack.c.bf16 %v1626_v23, %v1626_v23 }
 0x1eb   : > { %v2168_v38 = vunpack.c.l.b16 %v1634_v15  ;;  %v2176_v2 = vunpack.c.l.b16 %v1642_v52  ;;  %v2184_v53 = vunpack.c.l.b16 %v1650_v61  ;;  %v2192_v57 = vunpack.c.l.b16 %v1658_v54  ;;  %4010 = vmatpush1.bf16.msra.mxu1 %v5758_v39  ;;  %v5761_v15 = vld [vmem:[#allocation5 + $0x668] ss:$16 sps:$4 sm:$0xff]  }
 0x1ec   : > { %v2200_v17 = vunpack.c.l.b16 %v1666_v28  ;;  %v2208_v3 = vunpack.c.l.b16 %v1674_v18  ;;  %v2216_v30 = vunpack.c.l.b16 %v1682_v44  ;;  %v2224_v35 = vunpack.c.l.b16 %v1690_v11  ;;  %4011 = vmatprep.subr.bf16.mxu1 %v5763_v36  ;;  %v5766_v28 = vld [vmem:[#allocation5 + $0x68c] ss:$16 sps:$4 sm:$0xff]   ;;  %v5658_v18 = vld [vmem:[#allocation5 + $0x760] ss:$16 sps:$4 sm:$0xff]   ;;  %v5672_v36 = vld [vmem:[#allocation5 + $0x7a4] ss:$16 sps:$4 sm:$0xff]  }
 0x1ed   : > { %3852 = vmatpush1.bf16.msra.mxu0 %v5646_v62  ;;  %v2232_v7 = vunpack.c.l.b16 %v1698_v14  ;;  %v2240_v43 = vunpack.c.l.b16 %v1706_v21  ;;  %v2248_v41 = vunpack.c.l.b16 %v1714_v22  ;;  %v2256_v12 = vunpack.c.l.b16 %v1722_v27 }
 0x1ee   : > { %3853 = vmatprep.subr.bf16.mxu0 %v5654_v49  ;;  %v2264_v29 = vunpack.c.l.b16 %v1730_v26  ;;  %v2272_v37 = vunpack.c.l.b16 %v1738_v45  ;;  %v2280_v24 = vunpack.c.l.b16 %v1746_v20  ;;  %v2288_v5 = vunpack.c.l.b16 %v1754_v16  ;;  %v5764_v20 = vld [vmem:[#allocation5 + $0x688] ss:$16 sps:$4 sm:$0xff]  }
 0x1ef   : > { %v2345_v56 = vsel %vm2289_vm1, %v2176_v2, %v2168_v38  ;;  %v2401_v13 = vsel %vm2289_vm1, %v2240_v43, %v2232_v7  ;;  %v644_v4 = vsel %vm601_vm0, %v7017_v6, 0.0  ;;  %v700_v23 = vsel %vm601_vm0, %v7020_v58, 0.0  ;;  %4012 = vmatpush1.bf16.msra.mxu1 %v5761_v15  ;;  %v5769_v2 = vld [vmem:[#allocation5 + $0x6ac] ss:$16 sps:$4 sm:$0xff]  }
 0x1f0   : > { %v2346_v52 = vsel %vm2291_vm2, %v2184_v53, %v2345_v56  ;;  %v2402_v61 = vsel %vm2291_vm2, %v2248_v41, %v2401_v13  ;;  %v645_v54 = vrot.slane %v644_v4, 4  ;;  %v701_v40 = vrot.slane %v700_v23, 4  ;;  %4013 = vmatprep.subr.bf16.mxu1 %v5766_v28  ;;  %v5664_v53 = vld [vmem:[#allocation5 + $0x780] ss:$16 sps:$4 sm:$0xff]   ;;  %v5772_v56 = vld [vmem:[#allocation5 + $0x6cc] ss:$16 sps:$4 sm:$0xff]  }
 0x1f1   : > { %3854 = vmatpush1.bf16.msra.mxu0 %v5652_v60  ;;  %v2347_v44 = vsel %vm2293_vm3, %v2192_v57, %v2346_v52  ;;  %v2403_v11 = vsel %vm2293_vm3, %v2256_v12, %v2402_v61  ;;  %v756_v6 = vsel %vm601_vm0, %v7023_v63, 0.0  ;;  %v812_v58 = vsel %vm601_vm0, %v7026_v10, 0.0  ;;  %v5670_v13 = vld [vmem:[#allocation5 + $0x7a0] ss:$16 sps:$4 sm:$0xff]   ;;  %v5678_v52 = vld [vmem:[#allocation5 + $0x7c4] ss:$16 sps:$4 sm:$0xff]  }
 0x1f2   : > { %3855 = vmatprep.subr.bf16.mxu0 %v5660_v55  ;;  %v2348_v62 = vsel %vm2295_vm4, %v2200_v17, %v2347_v44  ;;  %v2404_v14 = vsel %vm2295_vm4, %v2264_v29, %v2403_v11  ;;  %v646_v21 = vadd.f32 %v645_v54, %v644_v4  ;;  %v702_v22 = vadd.f32 %v701_v40, %v700_v23 }
 0x1f3   : > { %v2349_v27 = vsel %vm2297_vm5, %v2208_v3, %v2348_v62  ;;  %v2405_v49 = vsel %vm2297_vm5, %v2272_v37, %v2404_v14  ;;  %v757_v26 = vrot.slane %v756_v6, 4  ;;  %v813_v45 = vrot.slane %v812_v58, 4  ;;  %4014 = vmatpush1.bf16.msra.mxu1 %v5764_v20 }
 0x1f4   : > { %v2350_v63 = vsel %vm2299_vm6, %v2216_v30, %v2349_v27  ;;  %v2406_v10 = vsel %vm2299_vm6, %v2280_v24, %v2405_v49  ;;  %v647_v16 = vrot.slane %v646_v21, 2  ;;  %v703_v38 = vrot.slane %v702_v22, 2  ;;  %4015 = vmatprep.subr.bf16.mxu1 %v5769_v2 }
 0x1f5   : > { %3856 = vmatpush1.bf16.msra.mxu0 %v5658_v18  ;;  %v2351_v57 = vsel %vm2301_vm7, %v2224_v35, %v2350_v63  ;;  %v2407_v39 = vsel %vm2301_vm7, %v2288_v5, %v2406_v10  ;;  %v758_v17 = vadd.f32 %v757_v26, %v756_v6  ;;  %v814_v3 = vadd.f32 %v813_v45, %v812_v58  ;;  %v5767_v35 = vld [vmem:[#allocation5 + $0x6a8] ss:$16 sps:$4 sm:$0xff]   ;;  %v5775_v58 = vld [vmem:[#allocation5 + $0x6ec] ss:$16 sps:$4 sm:$0xff]  }
 0x1f6   : > { %3857 = vmatprep.subr.bf16.mxu0 %v5666_v59  ;;  %v2415_v60 = vpack.c.b16 %v2407_v39, %v2351_v57  ;;  %v648_v7 = vadd.f32 %v647_v16, %v646_v21  ;;  %v704_v43 = vadd.f32 %v703_v38, %v702_v22  ;;  %v868_v30 = vsel %vm601_vm0, %v7029_v34, 0.0  ;;  %v5676_v59 = vld [vmem:[#allocation5 + $0x7c0] ss:$16 sps:$4 sm:$0xff]   ;;  %v5684_v22 = vld [vmem:[#allocation5 + $0x7e4] ss:$16 sps:$4 sm:$0xff]  }
 0x1f7   : > { %v759_v41 = vrot.slane %v758_v17, 2  ;;  %v815_v12 = vrot.slane %v814_v3, 2  ;;  %v869_v55 = vrot.slane %v868_v30, 4  ;;  %v924_v29 = vsel %vm601_vm0, %v7034_v32, 0.0  ;;  %4016 = vmatpush1.bf16.msra.mxu1 %v5767_v35  ;;  %v5773_v10 = vld [vmem:[#allocation5 + $0x6e8] ss:$16 sps:$4 sm:$0xff]  }
 0x1f8   : > { %3865 = vmatprep.mubr.bf16.mxu0 %v2415_v60  ;;  %v649_v37 = vrot.slane %v648_v7, 1  ;;  %v925_v24 = vrot.slane %v924_v29, 4  ;;  %v980_v5 = vsel %vm601_vm0, %v7037_v25, 0.0  ;;  %4037 = vmatprep.mubr.bf16.mxu1 %v2415_v60  ;;  %v1036_v61 = vsel %vm601_vm0, %v7044_v50, 0.0  ;;  %v5770_v25 = vld [vmem:[#allocation5 + $0x6c8] ss:$16 sps:$4 sm:$0xff]  }
 0x1f9   : > { %3858 = vmatpush1.bf16.msra.mxu0 %v5664_v53  ;;  %v760_v4 = vadd.f32 %v759_v41, %v758_v17  ;;  %v816_v34 = vadd.f32 %v815_v12, %v814_v3  ;;  %v870_v23 = vadd.f32 %v869_v55, %v868_v30  ;;  %v981_v15 = vrot.slane %v980_v5, 4  ;;  %4017 = vmatprep.subr.bf16.mxu1 %v5772_v56  ;;  %v5778_v57 = vld [vmem:[#allocation5 + $0x70c] ss:$16 sps:$4 sm:$0xff]   ;;  %v5682_v39 = vld [vmem:[#allocation5 + $0x7e0] ss:$16 sps:$4 sm:$0xff]  }
 0x1fa   : > { %3859 = vmatprep.subr.bf16.mxu0 %v5672_v36  ;;  %v926_v32 = vadd.f32 %v925_v24, %v924_v29  ;;  %v705_v54 = vrot.slane %v704_v43, 1  ;;  %v1037_v44 = vrot.slane %v1036_v61, 4  ;;  %v1092_v11 = vsel %vm601_vm0, %v7047_v0, 0.0  ;;  %v5802_v30 = vld [vmem:[#allocation7 + $0x4] ss:$8 sps:$4 sm:$0xff]  }
 0x1fb   : > { %v871_v40 = vrot.slane %v870_v23, 2  ;;  %v982_v28 = vadd.f32 %v981_v15, %v980_v5  ;;  %v1148_v6 = vsel %vm601_vm0, %v7056_v33, 0.0  ;;  %v7220_v62 = vadd.f32 %v649_v37, %v648_v7  ;;  %4018 = vmatpush1.bf16.msra.mxu1 %v5770_v25  ;;  %v5776_v35 = vld [vmem:[#allocation5 + $0x708] ss:$16 sps:$4 sm:$0xff]  }
 0x1fc   : > { %v927_v18 = vrot.slane %v926_v32, 2  ;;  %v761_v50 = vrot.slane %v760_v4, 1  ;;  %v817_v14 = vrot.slane %v816_v34, 1  ;;  %v1038_v49 = vadd.f32 %v1037_v44, %v1036_v61  ;;  %4019 = vmatprep.subr.bf16.mxu1 %v5775_v58  ;;  %v5784_v58 = vld [vmem:[#allocation5 + $0x74c] ss:$16 sps:$4 sm:$0xff]  }
 0x1fd   : > { %3860 = vmatpush1.bf16.msra.mxu0 %v5670_v13  ;;  %v983_v21 = vrot.slane %v982_v28, 2  ;;  %v872_v27 = vadd.f32 %v871_v40, %v870_v23  ;;  %v1093_v26 = vrot.slane %v1092_v11, 4  ;;  %v1149_v45 = vrot.slane %v1148_v6, 4  ;;  %v5781_v13 = vld [vmem:[#allocation5 + $0x72c] ss:$16 sps:$4 sm:$0xff]  }
 0x1fe   : > { %3861 = vmatprep.subr.bf16.mxu0 %v5678_v52  ;;  %v7222_v20 = vadd.f32 %v705_v54, %v704_v43  ;;  %v928_v0 = vadd.f32 %v927_v18, %v926_v32  ;;  %v1204_v33 = vsel %vm601_vm0, %v7059_v46, 0.0  ;;  %v1260_v63 = vsel %vm601_vm0, %v7068_v51, 0.0  ;;  %v5779_v18 = vld [vmem:[#allocation5 + $0x728] ss:$16 sps:$4 sm:$0xff]  }
 0x1ff   : > { %v984_v16 = vadd.f32 %v983_v21, %v982_v28  ;;  %v1039_v38 = vrot.slane %v1038_v49, 2  ;;  %v1094_v2 = vadd.f32 %v1093_v26, %v1092_v11  ;;  %v1150_v53 = vadd.f32 %v1149_v45, %v1148_v6  ;;  %4020 = vmatpush1.bf16.msra.mxu1 %v5773_v10 }
 0x200   : > { %v7228_v17 = vadd.f32 %v761_v50, %v760_v4  ;;  %v7230_v3 = vadd.f32 %v817_v14, %v816_v34  ;;  %v1205_v36 = vrot.slane %v1204_v33, 4  ;;  %v1261_v60 = vrot.slane %v1260_v63, 4  ;;  %4021 = vmatprep.subr.bf16.mxu1 %v5778_v57 }
 0x201   : > { %3862 = vmatpush1.bf16.msra.mxu0 %v5676_v59  ;;  %v873_v46 = vrot.slane %v872_v27, 1  ;;  %v1040_v7 = vadd.f32 %v1039_v38, %v1038_v49  ;;  %v1095_v51 = vrot.slane %v1094_v2, 2  ;;  %v1151_v43 = vrot.slane %v1150_v53, 2 }
 0x202   : > { %3863 = vmatprep.subr.bf16.mxu0 %v5684_v22  ;;  %v929_v41 = vrot.slane %v928_v0, 1  ;;  %v1206_v12 = vadd.f32 %v1205_v36, %v1204_v33  ;;  %v1262_v55 = vadd.f32 %v1261_v60, %v1260_v63  ;;  %v1316_v29 = vsel %vm601_vm0, %v7071_v47, 0.0 }
 0x203   : > { %v985_v37 = vrot.slane %v984_v16, 1  ;;  %v1096_v24 = vadd.f32 %v1095_v51, %v1094_v2  ;;  %v1152_v5 = vadd.f32 %v1151_v43, %v1150_v53  ;;  %v1317_v56 = vrot.slane %v1316_v29, 4  ;;  %4022 = vmatpush1.bf16.msra.mxu1 %v5776_v35  ;;  %v5787_v53 = vld [vmem:[#allocation5 + $0x76c] ss:$16 sps:$4 sm:$0xff]  }
 0x204   : > { %v1207_v4 = vrot.slane %v1206_v12, 2  ;;  %v1263_v34 = vrot.slane %v1262_v55, 2  ;;  %v1372_v23 = vsel %vm601_vm0, %v7080_v19, 0.0  ;;  %v1428_v15 = vsel %vm601_vm0, %v7083_v1, 0.0  ;;  %4023 = vmatprep.subr.bf16.mxu1 %v5781_v13 }
 0x205   : > { %3864 = vmatpush1.bf16.msra.mxu0 %v5682_v39  ;;  %v1041_v52 = vrot.slane %v1040_v7, 1  ;;  %v1097_v32 = vrot.slane %v1096_v24, 1  ;;  %v1153_v47 = vrot.slane %v1152_v5, 1  ;;  %v1318_v61 = vadd.f32 %v1317_v56, %v1316_v29 }
 0x206   : > { %4456 = vmatprep.subr.bf16.mxu0 %v5802_v30  ;;  %v1208_v54 = vadd.f32 %v1207_v4, %v1206_v12  ;;  %v1264_v40 = vadd.f32 %v1263_v34, %v1262_v55  ;;  %v1373_v28 = vrot.slane %v1372_v23, 4  ;;  %v1429_v25 = vrot.slane %v1428_v15, 4 }
 0x207   : > { %v874_v44 = vadd.f32 %v873_v46, %v872_v27  ;;  %v930_v11 = vadd.f32 %v929_v41, %v928_v0  ;;  %v1319_v6 = vrot.slane %v1318_v61, 2  ;;  %v1484_v19 = vsel %vm601_vm0, %v7086_v9, 0.0  ;;  %4024 = vmatpush1.bf16.msra.mxu1 %v5779_v18  ;;  %v5782_v27 = vld [vmem:[#allocation5 + $0x748] ss:$16 sps:$4 sm:$0xff]  }
 0x208   : > { %v1209_v1 = vrot.slane %v1208_v54, 1  ;;  %v1265_v59 = vrot.slane %v1264_v40, 1  ;;  %v1374_v50 = vadd.f32 %v1373_v28, %v1372_v23  ;;  %v1430_v14 = vadd.f32 %v1429_v25, %v1428_v15  ;;  %4025 = vmatprep.subr.bf16.mxu1 %v5784_v58  ;;  %v5793_v25 = vld [vmem:[#allocation5 + $0x7ac] ss:$16 sps:$4 sm:$0xff]  }
 0x209   : > { %v986_v21 = vadd.f32 %v985_v37, %v984_v16  ;;  %v1042_v22 = vadd.f32 %v1041_v52, %v1040_v7  ;;  %v1320_v49 = vadd.f32 %v1319_v6, %v1318_v61  ;;  %v1485_v26 = vrot.slane %v1484_v19, 4  ;;  %v5790_v37 = vld [vmem:[#allocation5 + $0x78c] ss:$16 sps:$4 sm:$0xff]  }
 0x20a   : > { %v1098_v45 = vadd.f32 %v1097_v32, %v1096_v24  ;;  %v1154_v33 = vadd.f32 %v1153_v47, %v1152_v5  ;;  %v1375_v63 = vrot.slane %v1374_v50, 2  ;;  %v1431_v10 = vrot.slane %v1430_v14, 2  ;;  %v5788_v47 = vld [vmem:[#allocation5 + $0x788] ss:$16 sps:$4 sm:$0xff]  }
 0x20b   : > { %v1321_v0 = vrot.slane %v1320_v49, 1  ;;  %v1486_v38 = vadd.f32 %v1485_v26, %v1484_v19  ;;  %v1505_v9 = vmul.f32 0.25, %v7220_v62  ;;  %v1513_v2 = vmul.f32 0.25, %v7222_v20  ;;  %4026 = vmatpush1.bf16.msra.mxu1 %v5782_v27  ;;  %v5785_v62 = vld [vmem:[#allocation5 + $0x768] ss:$16 sps:$4 sm:$0xff]  }
 0x20c   : > { %v1210_v57 = vadd.f32 %v1209_v1, %v1208_v54  ;;  %v1266_v39 = vadd.f32 %v1265_v59, %v1264_v40  ;;  %v1376_v16 = vadd.f32 %v1375_v63, %v1374_v50  ;;  %v1432_v36 = vadd.f32 %v1431_v10, %v1430_v14  ;;  %4027 = vmatprep.subr.bf16.mxu1 %v5787_v53  ;;  %v5796_v10 = vld [vmem:[#allocation5 + $0x7cc] ss:$16 sps:$4 sm:$0xff]  }
 0x20d   : > { %v1322_v60 = vadd.f32 %v1321_v0, %v1320_v49  ;;  %v1487_v46 = vrot.slane %v1486_v38, 2  ;;  %v1521_v7 = vmul.f32 0.25, %v7228_v17  ;;  %v1529_v51 = vmul.f32 0.25, %v7230_v3  ;;  %v5791_v49 = vld [vmem:[#allocation5 + $0x7a8] ss:$16 sps:$4 sm:$0xff]  }
 0x20e   : > { %v1377_v43 = vrot.slane %v1376_v16, 1  ;;  %v1433_v30 = vrot.slane %v1432_v36, 1  ;;  %v1537_v41 = vmul.f32 0.25, %v874_v44  ;;  %v1545_v12 = vmul.f32 0.25, %v930_v11 }
 0x20f   : > { %v1488_v55 = vadd.f32 %v1487_v46, %v1486_v38  ;;  %v1553_v20 = vmul.f32 0.25, %v986_v21  ;;  %v1569_v29 = vmul.f32 0.25, %v1098_v45  ;;  %v1577_v35 = vmul.f32 0.25, %v1154_v33  ;;  %4028 = vmatpush1.bf16.msra.mxu1 %v5785_v62  ;;  %v5794_v46 = vld [vmem:[#allocation5 + $0x7c8] ss:$16 sps:$4 sm:$0xff]  }
 0x210   : > { %v1378_v24 = vadd.f32 %v1377_v43, %v1376_v16  ;;  %v1434_v5 = vadd.f32 %v1433_v30, %v1432_v36  ;;  %v1585_v56 = vmul.f32 0.25, %v1210_v57  ;;  %v1593_v13 = vmul.f32 0.25, %v1266_v39  ;;  %4029 = vmatprep.subr.bf16.mxu1 %v5790_v37 }
 0x211   : > { %v1489_v4 = vrot.slane %v1488_v55, 1  ;;  %v1601_v17 = vmul.f32 0.25, %v1322_v60  ;;  %v1633_v34 = vpack.c.bf16 %v1505_v9, %v1505_v9  ;;  %v1641_v3 = vpack.c.bf16 %v1513_v2, %v1513_v2 }
 0x212   : > { %v1561_v23 = vmul.f32 0.25, %v1042_v22  ;;  %v1609_v15 = vmul.f32 0.25, %v1378_v24  ;;  %v1649_v52 = vpack.c.bf16 %v1521_v7, %v1521_v7  ;;  %v1657_v32 = vpack.c.bf16 %v1529_v51, %v1529_v51  ;;  %v5797_v24 = vld [vmem:[#allocation5 + $0x7e8] ss:$16 sps:$4 sm:$0xff]  }
 0x213   : > { %v1490_v61 = vadd.f32 %v1489_v4, %v1488_v55  ;;  %v1617_v54 = vmul.f32 0.25, %v1434_v5  ;;  %v1665_v40 = vpack.c.bf16 %v1537_v41, %v1537_v41  ;;  %v1697_v28 = vpack.c.bf16 %v1569_v29, %v1569_v29  ;;  %4030 = vmatpush1.bf16.msra.mxu1 %v5788_v47  ;;  %v5799_v41 = vld [vmem:[#allocation5 + $0x7ec] ss:$16 sps:$4 sm:$0xff]   ;;  %v5800_v4 = vld [vmem:[#allocation7] ss:$8 sps:$4 sm:$0xff]  }
 0x214   : > { %v1673_v18 = vpack.c.bf16 %v1545_v12, %v1545_v12  ;;  %v1705_v44 = vpack.c.bf16 %v1577_v35, %v1577_v35  ;;  %v1713_v11 = vpack.c.bf16 %v1585_v56, %v1585_v56  ;;  %v1721_v6 = vpack.c.bf16 %v1593_v13, %v1593_v13  ;;  %4031 = vmatprep.subr.bf16.mxu1 %v5793_v25  ;;  %v5814_v47 = vld [vmem:[#allocation7 + $0x44] ss:$8 sps:$4 sm:$0xff]   ;;  %v5818_v25 = vld [vmem:[#allocation7 + $0x60] ss:$8 sps:$4 sm:$0xff]  }
 0x215   : > { %v1625_v19 = vmul.f32 0.25, %v1490_v61  ;;  %v1729_v58 = vpack.c.bf16 %v1601_v17, %v1601_v17  ;;  %v2167_v1 = vunpack.c.l.b16 %v1633_v34  ;;  %v2175_v59 = vunpack.c.l.b16 %v1641_v3  ;;  %v5805_v34 = vld [vmem:[#allocation7 + $0x14] ss:$8 sps:$4 sm:$0xff]   ;;  %v5803_v3 = vld [vmem:[#allocation7 + $0x10] ss:$8 sps:$4 sm:$0xff]  }
 0x216   : > { %v1681_v50 = vpack.c.bf16 %v1553_v20, %v1553_v20  ;;  %v1689_v14 = vpack.c.bf16 %v1561_v23, %v1561_v23  ;;  %v1737_v21 = vpack.c.bf16 %v1609_v15, %v1609_v15  ;;  %v2183_v22 = vunpack.c.l.b16 %v1649_v52  ;;  %v5808_v23 = vld [vmem:[#allocation7 + $0x24] ss:$8 sps:$4 sm:$0xff]   ;;  %v5806_v15 = vld [vmem:[#allocation7 + $0x20] ss:$8 sps:$4 sm:$0xff]   ;;  %v5811_v52 = vld [vmem:[#allocation7 + $0x34] ss:$8 sps:$4 sm:$0xff]  }
 0x217   : > { %v1745_v26 = vpack.c.bf16 %v1617_v54, %v1617_v54  ;;  %v2191_v45 = vunpack.c.l.b16 %v1657_v32  ;;  %v2199_v33 = vunpack.c.l.b16 %v1665_v40  ;;  %v2231_v63 = vunpack.c.l.b16 %v1697_v28  ;;  %4032 = vmatpush1.bf16.msra.mxu1 %v5791_v49  ;;  %v5809_v32 = vld [vmem:[#allocation7 + $0x30] ss:$8 sps:$4 sm:$0xff]   ;;  %v5812_v61 = vld [vmem:[#allocation7 + $0x40] ss:$8 sps:$4 sm:$0xff]   ;;  %v5817_v54 = vld [vmem:[#allocation7 + $0x54] ss:$8 sps:$4 sm:$0xff]  }
 0x218   : > { %v1753_v27 = vpack.c.bf16 %v1625_v19, %v1625_v19  ;;  %v2239_v0 = vunpack.c.l.b16 %v1705_v44  ;;  %v2247_v38 = vunpack.c.l.b16 %v1713_v11  ;;  %v2255_v9 = vunpack.c.l.b16 %v1721_v6  ;;  %4033 = vmatprep.subr.bf16.mxu1 %v5796_v10  ;;  %v5815_v40 = vld [vmem:[#allocation7 + $0x50] ss:$8 sps:$4 sm:$0xff]   ;;  %v5820_v28 = vld [vmem:[#allocation7 + $0x64] ss:$8 sps:$4 sm:$0xff]   ;;  %v5824_v6 = vld [vmem:[#allocation7 + $0x80] ss:$8 sps:$4 sm:$0xff]  }
 0x219   : > { %v2207_v2 = vunpack.c.l.b16 %v1673_v18  ;;  %v2263_v53 = vunpack.c.l.b16 %v1729_v58  ;;  %v2338_v57 = vsel %vm2289_vm1, %v2175_v59, %v2167_v1  ;;  %v2215_v39 = vunpack.c.l.b16 %v1681_v50  ;;  %v5823_v18 = vld [vmem:[#allocation7 + $0x74] ss:$8 sps:$4 sm:$0xff]   ;;  %v5821_v44 = vld [vmem:[#allocation7 + $0x70] ss:$8 sps:$4 sm:$0xff]   ;;  %v5826_v11 = vld [vmem:[#allocation7 + $0x84] ss:$8 sps:$4 sm:$0xff]  }
 0x21a   : > { %v2271_v16 = vunpack.c.l.b16 %v1737_v21  ;;  %v2339_v36 = vsel %vm2291_vm2, %v2183_v22, %v2338_v57  ;;  %v2394_v60 = vsel %vm2289_vm1, %v2239_v0, %v2231_v63  ;;  %v2223_v7 = vunpack.c.l.b16 %v1689_v14  ;;  %v5829_v19 = vld [vmem:[#allocation7 + $0x94] ss:$8 sps:$4 sm:$0xff]   ;;  %v5827_v58 = vld [vmem:[#allocation7 + $0x90] ss:$8 sps:$4 sm:$0xff]   ;;  %v5832_v1 = vld [vmem:[#allocation7 + $0xa4] ss:$8 sps:$4 sm:$0xff]  }
 0x21b   : > { %v2279_v51 = vunpack.c.l.b16 %v1745_v26  ;;  %v2340_v43 = vsel %vm2293_vm3, %v2191_v45, %v2339_v36  ;;  %v2395_v30 = vsel %vm2291_vm2, %v2247_v38, %v2394_v60  ;;  %v2287_v12 = vunpack.c.l.b16 %v1753_v27  ;;  %4034 = vmatpush1.bf16.msra.mxu1 %v5794_v46  ;;  %v5830_v59 = vld [vmem:[#allocation7 + $0xa0] ss:$8 sps:$4 sm:$0xff]   ;;  %v5835_v50 = vld [vmem:[#allocation7 + $0xb4] ss:$8 sps:$4 sm:$0xff]   ;;  %v5833_v14 = vld [vmem:[#allocation7 + $0xb0] ss:$8 sps:$4 sm:$0xff]  }
 0x21c   : > { %v2341_v62 = vsel %vm2295_vm4, %v2199_v33, %v2340_v43  ;;  %v2396_v55 = vsel %vm2293_vm3, %v2255_v9, %v2395_v30  ;;  %4035 = vmatprep.subr.bf16.mxu1 %v5799_v41  ;;  %v5838_v21 = vld [vmem:[#allocation7 + $0xc4] ss:$8 sps:$4 sm:$0xff]   ;;  %v5836_v22 = vld [vmem:[#allocation7 + $0xc0] ss:$8 sps:$4 sm:$0xff]   ;;  %v5841_v49 = vld [vmem:[#allocation7 + $0xd4] ss:$8 sps:$4 sm:$0xff]  }
 0x21d   : > { %v2342_v20 = vsel %vm2297_vm5, %v2207_v2, %v2341_v62  ;;  %v2397_v29 = vsel %vm2295_vm4, %v2263_v53, %v2396_v55  ;;  %v5839_v26 = vld [vmem:[#allocation7 + $0xd0] ss:$8 sps:$4 sm:$0xff]   ;;  %v5844_v45 = vld [vmem:[#allocation7 + $0xe4] ss:$8 sps:$4 sm:$0xff]   ;;  %v5842_v33 = vld [vmem:[#allocation7 + $0xe0] ss:$8 sps:$4 sm:$0xff]  }
 0x21e   : > { %v2343_v35 = vsel %vm2299_vm6, %v2215_v39, %v2342_v20  ;;  %v2398_v37 = vsel %vm2297_vm5, %v2271_v16, %v2397_v29  ;;  %v5847_v63 = vld [vmem:[#allocation7 + $0xf4] ss:$8 sps:$4 sm:$0xff]   ;;  %v5845_v10 = vld [vmem:[#allocation7 + $0xf0] ss:$8 sps:$4 sm:$0xff]   ;;  %v5850_v27 = vld [vmem:[#allocation7 + $0x104] ss:$8 sps:$4 sm:$0xff]  }
 0x21f   : > { %v2344_v5 = vsel %vm2301_vm7, %v2223_v7, %v2343_v35  ;;  %v2399_v56 = vsel %vm2299_vm6, %v2279_v51, %v2398_v37  ;;  %4036 = vmatpush1.bf16.msra.mxu1 %v5797_v24  ;;  %v5896_v0 = vld [vmem:[#allocation8 + $0x40] sm:$0xff]   ;;  %v5898_v9 = vld [vmem:[#allocation8 + $0x48] sm:$0xff]   ;;  %v5900_v53 = vld [vmem:[#allocation8 + $0x50] sm:$0xff]   ;;  %v2013_v7 = vlaneseq }
 0x220   : > { %v2400_v13 = vsel %vm2301_vm7, %v2287_v12, %v2399_v56  ;;  %v5897_v38 = vld [vmem:[#allocation8] sm:$0xff]   ;;  %5203 = vmatprep.subr.bf16.mxu1 %v5896_v0  ;;  %v5899_v2 = vld [vmem:[#allocation8 + $0x8] sm:$0xff]   ;;  %v5901_v57 = vld [vmem:[#allocation8 + $0x10] sm:$0xff]  }
 0x221   : > { %v2414_v17 = vpack.c.b16 %v2400_v13, %v2344_v5  ;;  %v5902_v39 = vld [vmem:[#allocation8 + $0x58] sm:$0xff]   ;;  %v5904_v36 = vld [vmem:[#allocation8 + $0x60] sm:$0xff]   ;;  %v5906_v46 = vld [vmem:[#allocation8 + $0x68] sm:$0xff]   ;;  %v7258_v51 = vshrl.u32 %v2013_v7, 7 }
 0x222   : > { %v5903_v16 = vld [vmem:[#allocation8 + $0x18] sm:$0xff]   ;;  %v5905_v60 = vld [vmem:[#allocation8 + $0x20] sm:$0xff]  }
 0x223   : > { %3866 = vmatmul.mubr.bf16.vlgmr.msra.gmra.mrb[0].mxu0 %v2414_v17  ;;  %4038 = vmatmul.mubr.bf16.vlgmr.msra.gmra.mrb[4].mxu1 %v2414_v17  ;;  %v2015_v43 = vsub.s32 0, %v7258_v51  ;;  %v2011_v30 = vld [vmem:[%s7341_s2] sm:$0xf]  ;;  %v2019_v41 = vsub.s32 1, %v7258_v51  ;;  %v2023_v62 = vsub.s32 2, %v7258_v51  ;;  %v2027_v20 = vsub.s32 3, %v7258_v51 }
 0x224   : > { %4457 = vmatpush1.bf16.msra.mxu0 %v5800_v4  ;;  %5204 = vmatpush3.bf16.msra.mxu1 %v5897_v38  ;;  %v5863_v0 = vld [vmem:[#allocation7 + $0x150] ss:$8 sps:$4 sm:$0xff]   ;;  %v5868_v38 = vld [vmem:[#allocation7 + $0x164] ss:$8 sps:$4 sm:$0xff]   ;;  %v5883_v7 = vld [vmem:[#allocation7 + $0x1b4] ss:$8 sps:$4 sm:$0xff]  }
 0x225   : > { %4458 = vmatprep.subr.bf16.mxu0 %v5805_v34  ;;  %5205 = vmatprep.subr.bf16.mxu1 %v5898_v9  ;;  %v2016_v12 = vrot.slane %v2011_v30, %v2015_v43  ;;  %v2020_v55 = vrot.slane %v2011_v30, %v2019_v41  ;;  %v2024_v35 = vrot.slane %v2011_v30, %v2023_v62  ;;  %v5866_v9 = vld [vmem:[#allocation7 + $0x160] ss:$8 sps:$4 sm:$0xff]  }
 0x226   : > { %v2028_v5 = vrot.slane %v2011_v30, %v2027_v20  ;;  %v5881_v30 = vld [vmem:[#allocation7 + $0x1b0] ss:$8 sps:$4 sm:$0xff]   ;;  %v5884_v62 = vld [vmem:[#allocation7 + $0x1c0] ss:$8 sps:$4 sm:$0xff]  }
 0x227   : > { %v3739_v29 = vadd.f32 %v7177_v8, %v2016_v12  ;;  %v3741_v37 = vadd.f32 %v7179_v48, %v2020_v55  ;;  %v3743_v56 = vadd.f32 %v7182_v42, %v2016_v12  ;;  %v3745_v17 = vadd.f32 %v7184_v31, %v2020_v55  ;;  %v5886_v12 = vld [vmem:[#allocation7 + $0x1c4] ss:$8 sps:$4 sm:$0xff]   ;;  %v5889_v55 = vld [vmem:[#allocation7 + $0x1d4] ss:$8 sps:$4 sm:$0xff]   ;;  %v5887_v20 = vld [vmem:[#allocation7 + $0x1d0] ss:$8 sps:$4 sm:$0xff]  }
 0x228   : > { %4459 = vmatpush1.bf16.msra.mxu0 %v5803_v3  ;;  %5206 = vmatpush3.bf16.msra.mxu1 %v5899_v2  ;;  %v5871_v2 = vld [vmem:[#allocation7 + $0x174] ss:$8 sps:$4 sm:$0xff]  }
 0x229   : > { %4460 = vmatprep.subr.bf16.mxu0 %v5808_v23  ;;  %5207 = vmatprep.subr.bf16.mxu1 %v5900_v53  ;;  %v5869_v53 = vld [vmem:[#allocation7 + $0x170] ss:$8 sps:$4 sm:$0xff]  }
 0x22c   : > { %4461 = vmatpush1.bf16.msra.mxu0 %v5806_v15  ;;  %5208 = vmatpush3.bf16.msra.mxu1 %v5901_v57  ;;  %v5874_v57 = vld [vmem:[#allocation7 + $0x184] ss:$8 sps:$4 sm:$0xff]  }
 0x22d   : > { %4462 = vmatprep.subr.bf16.mxu0 %v5811_v52  ;;  %5209 = vmatprep.subr.bf16.mxu1 %v5902_v39  ;;  %v5872_v39 = vld [vmem:[#allocation7 + $0x180] ss:$8 sps:$4 sm:$0xff]  }
 0x230   : > { %4463 = vmatpush1.bf16.msra.mxu0 %v5809_v32  ;;  %5210 = vmatpush3.bf16.msra.mxu1 %v5903_v16  ;;  %v5877_v16 = vld [vmem:[#allocation7 + $0x194] ss:$8 sps:$4 sm:$0xff]  }
 0x231   : > { %4464 = vmatprep.subr.bf16.mxu0 %v5814_v47  ;;  %5211 = vmatprep.subr.bf16.mxu1 %v5904_v36  ;;  %v5875_v36 = vld [vmem:[#allocation7 + $0x190] ss:$8 sps:$4 sm:$0xff]  }
 0x234   : > { %4465 = vmatpush1.bf16.msra.mxu0 %v5812_v61  ;;  %5212 = vmatpush3.bf16.msra.mxu1 %v5905_v60  ;;  %v5880_v60 = vld [vmem:[#allocation7 + $0x1a4] ss:$8 sps:$4 sm:$0xff]  }
 0x235   : > { %4466 = vmatprep.subr.bf16.mxu0 %v5817_v54  ;;  %5213 = vmatprep.subr.bf16.mxu1 %v5906_v46  ;;  %v5878_v46 = vld [vmem:[#allocation7 + $0x1a0] ss:$8 sps:$4 sm:$0xff]  }
 0x238   : > { %4467 = vmatpush1.bf16.msra.mxu0 %v5815_v40 }
 0x239   : > { %4468 = vmatprep.subr.bf16.mxu0 %v5820_v28 }
 0x23c   : > { %4469 = vmatpush1.bf16.msra.mxu0 %v5818_v25 }
 0x23d   : > { %4470 = vmatprep.subr.bf16.mxu0 %v5823_v18 }
 0x240   : > { %4471 = vmatpush1.bf16.msra.mxu0 %v5821_v44 }
 0x241   : > { %4472 = vmatprep.subr.bf16.mxu0 %v5826_v11 }
 0x244   : > { %4473 = vmatpush1.bf16.msra.mxu0 %v5824_v6 }
 0x245   : > { %4474 = vmatprep.subr.bf16.mxu0 %v5829_v19 }
 0x248   : > { %4475 = vmatpush1.bf16.msra.mxu0 %v5827_v58  ;;  %v5848_v58 = vld [vmem:[#allocation7 + $0x100] ss:$8 sps:$4 sm:$0xff]  }
 0x249   : > { %4476 = vmatprep.subr.bf16.mxu0 %v5832_v1 }
 0x24c   : > { %4477 = vmatpush1.bf16.msra.mxu0 %v5830_v59 }
 0x24d   : > { %4478 = vmatprep.subr.bf16.mxu0 %v5835_v50  ;;  %v5853_v50 = vld [vmem:[#allocation7 + $0x114] ss:$8 sps:$4 sm:$0xff]  }
 0x250   : > { %4479 = vmatpush1.bf16.msra.mxu0 %v5833_v14 }
 0x251   : > { %4480 = vmatprep.subr.bf16.mxu0 %v5838_v21 }
 0x254   : > { %4481 = vmatpush1.bf16.msra.mxu0 %v5836_v22  ;;  %v5851_v22 = vld [vmem:[#allocation7 + $0x110] ss:$8 sps:$4 sm:$0xff]  }
 0x255   : > { %4482 = vmatprep.subr.bf16.mxu0 %v5841_v49  ;;  %v5856_v49 = vld [vmem:[#allocation7 + $0x124] ss:$8 sps:$4 sm:$0xff]  }
 0x258   : > { %4483 = vmatpush1.bf16.msra.mxu0 %v5839_v26  ;;  %v5854_v26 = vld [vmem:[#allocation7 + $0x120] ss:$8 sps:$4 sm:$0xff]  }
 0x259   : > { %4484 = vmatprep.subr.bf16.mxu0 %v5844_v45  ;;  %v5859_v45 = vld [vmem:[#allocation7 + $0x134] ss:$8 sps:$4 sm:$0xff]  }
 0x25c   : > { %4485 = vmatpush1.bf16.msra.mxu0 %v5842_v33  ;;  %v5857_v33 = vld [vmem:[#allocation7 + $0x130] ss:$8 sps:$4 sm:$0xff]  }
 0x25d   : > { %4486 = vmatprep.subr.bf16.mxu0 %v5847_v63  ;;  %v5862_v63 = vld [vmem:[#allocation7 + $0x144] ss:$8 sps:$4 sm:$0xff]  }
 0x260   : > { %4487 = vmatpush1.bf16.msra.mxu0 %v5845_v10  ;;  %v5860_v10 = vld [vmem:[#allocation7 + $0x140] ss:$8 sps:$4 sm:$0xff]  }
 0x261   : > { %4499 = vmatprep.subr.bf16.mxu0 %v5850_v27  ;;  %v5865_v27 = vld [vmem:[#allocation7 + $0x154] ss:$8 sps:$4 sm:$0xff]  }
 0x2f6   : > { %v3867_v24 = vpop.f32.mrb[0].mxu0  ;;  %v4039_v23 = vpop.f32.mrb[4].mxu1 }
 0x2f7   : > { %v5226_v13 = vadd.f32 %v3867_v24, %v3739_v29  ;;  %v3869_v4 = vpop.f32.mrb[1].mxu0  ;;  %v5233_v32 = vadd.f32 %v4039_v23, %v2024_v35  ;;  %v4041_v47 = vpop.f32.mrb[5].mxu1  ;;  %v5892_v29 = vld [vmem:[#allocation7 + $0x1e4] ss:$8 sps:$4 sm:$0xff]   ;;  %v5893_v24 = vld [vmem:[#allocation7 + $0x1f0] ss:$8 sps:$4 sm:$0xff]  }
 0x2f8   : > { %v5228_v34 = vadd.f32 %v3869_v4, %v3741_v37  ;;  %v3871_v3 = vpop.f32.mrb[2].mxu0  ;;  %v5234_v8 = vadd.f32 %v4041_v47, %v2028_v5  ;;  %v4043_v54 = vpop.f32.mrb[6].mxu1  ;;  %v5895_v37 = vld [vmem:[#allocation7 + $0x1f4] ss:$8 sps:$4 sm:$0xff]  }
 0x2f9   : > { %v5230_v15 = vadd.f32 %v3871_v3, %v3743_v56  ;;  %v3873_v52 = vpop.f32.mrb[3].mxu0  ;;  %v4048_v40 = vmax.f32 %v5226_v13, 0.0  ;;  %v5235_v28 = vadd.f32 %v4043_v54, %v2024_v35  ;;  %v4045_v25 = vpop.f32.mrb[7].mxu1  ;;  %v4050_v6 = vmax.f32 %v5233_v32, 0.0  ;;  %v5890_v35 = vld [vmem:[#allocation7 + $0x1e0] ss:$8 sps:$4 sm:$0xff]  }
 0x2fa   : > { %v5232_v61 = vadd.f32 %v3873_v52, %v3745_v17  ;;  %v4049_v18 = vmax.f32 %v5228_v34, 0.0  ;;  %v5236_v44 = vadd.f32 %v4045_v25, %v2028_v5  ;;  %v4051_v1 = vmax.f32 %v5234_v8, 0.0  ;;  %v5907_v5 = vld [vmem:[#allocation8 + $0x28] sm:$0xff]   ;;  %v5908_v56 = vld [vmem:[#allocation8 + $0x70] sm:$0xff]   ;;  %v5910_v4 = vld [vmem:[#allocation8 + $0x78] sm:$0xff]  }
 0x2fb   : > { %v4052_v48 = vmax.f32 %v5230_v15, 0.0  ;;  %v4054_v31 = vmax.f32 %v5235_v28, 0.0  ;;  %5214 = vmatpush3.bf16.msra.mxu1 %v5907_v5  ;;  %v5909_v13 = vld [vmem:[#allocation8 + $0x30] sm:$0xff]   ;;  %v5911_v17 = vld [vmem:[#allocation8 + $0x38] sm:$0xff]   ;;  %v4124_v34 = vld [vmem:[%s7343_s4] sm:$0x3] }
 0x2fc   : > { %v4053_v42 = vmax.f32 %v5232_v61, 0.0  ;;  %v4055_v59 = vmax.f32 %v5236_v44, 0.0  ;;  %5215 = vmatprep.subr.bf16.mxu1 %v5908_v56  ;;  %v4129_v3 = vrot.slane %v4124_v34, %v2015_v43  ;;  %v4133_v23 = vrot.slane %v4124_v34, %v2019_v41  ;;  %v5178_v43 = vld [vmem:[%s7345_s6] ss:$0 sm:$0xff] }
 0x2fd   : > { %v4056_v11 = vpack.c.bf16 %v4052_v48, %v4048_v40  ;;  %v7275_v14 = vpack.c.bf16 %v4054_v31, %v4050_v6 }
 0x2fe   : > { %v4057_v19 = vpack.c.bf16 %v4053_v42, %v4049_v18  ;;  %v4059_v21 = vpack.c.bf16 %v4055_v59, %v4051_v1 }
 0x2ff   : > { %5216 = vmatpush3.bf16.msra.mxu1 %v5909_v13 }
 0x300   : > { %4488 = vmatprep.mubr.bf16.mxu0 %v4057_v19  ;;  %5217 = vmatprep.subr.bf16.mxu1 %v5910_v4 }
 0x301   : > { %4489 = vmatmul.mubr.bf16.vlgmr.msra.gmra.mrb[4].mxu0 %v4056_v11 }
 0x302   : > { %4500 = vmatpush1.bf16.msra.mxu0 %v5848_v58  ;;  %4531 = vmatprep.mubr.bf16.mxu0 %v4059_v21 }
 0x303   : > { %4501 = vmatprep.subr.bf16.mxu0 %v5853_v50  ;;  %5218 = vmatpush3.bf16.msra.mxu1 %v5911_v17 }
 0x306   : > { %4502 = vmatpush1.bf16.msra.mxu0 %v5851_v22 }
 0x307   : > { %4503 = vmatprep.subr.bf16.mxu0 %v5856_v49 }
 0x30a   : > { %4504 = vmatpush1.bf16.msra.mxu0 %v5854_v26 }
 0x30b   : > { %4505 = vmatprep.subr.bf16.mxu0 %v5859_v45 }
 0x30e   : > { %4506 = vmatpush1.bf16.msra.mxu0 %v5857_v33 }
 0x30f   : > { %4507 = vmatprep.subr.bf16.mxu0 %v5862_v63 }
 0x312   : > { %4508 = vmatpush1.bf16.msra.mxu0 %v5860_v10 }
 0x313   : > { %4509 = vmatprep.subr.bf16.mxu0 %v5865_v27 }
 0x316   : > { %4510 = vmatpush1.bf16.msra.mxu0 %v5863_v0 }
 0x317   : > { %4511 = vmatprep.subr.bf16.mxu0 %v5868_v38 }
 0x31a   : > { %4512 = vmatpush1.bf16.msra.mxu0 %v5866_v9 }
 0x31b   : > { %4513 = vmatprep.subr.bf16.mxu0 %v5871_v2 }
 0x31e   : > { %4514 = vmatpush1.bf16.msra.mxu0 %v5869_v53 }
 0x31f   : > { %4515 = vmatprep.subr.bf16.mxu0 %v5874_v57 }
 0x322   : > { %4516 = vmatpush1.bf16.msra.mxu0 %v5872_v39 }
 0x323   : > { %4517 = vmatprep.subr.bf16.mxu0 %v5877_v16 }
 0x326   : > { %4518 = vmatpush1.bf16.msra.mxu0 %v5875_v36 }
 0x327   : > { %4519 = vmatprep.subr.bf16.mxu0 %v5880_v60 }
 0x32a   : > { %4520 = vmatpush1.bf16.msra.mxu0 %v5878_v46 }
 0x32b   : > { %4521 = vmatprep.subr.bf16.mxu0 %v5883_v7 }
 0x32e   : > { %4522 = vmatpush1.bf16.msra.mxu0 %v5881_v30 }
 0x32f   : > { %4523 = vmatprep.subr.bf16.mxu0 %v5886_v12 }
 0x332   : > { %4524 = vmatpush1.bf16.msra.mxu0 %v5884_v62 }
 0x333   : > { %4525 = vmatprep.subr.bf16.mxu0 %v5889_v55 }
 0x336   : > { %4526 = vmatpush1.bf16.msra.mxu0 %v5887_v20 }
 0x337   : > { %4527 = vmatprep.subr.bf16.mxu0 %v5892_v29 }
 0x33a   : > { %4528 = vmatpush1.bf16.msra.mxu0 %v5890_v35 }
 0x33b   : > { %4529 = vmatprep.subr.bf16.mxu0 %v5895_v37 }
 0x33e   : > { %4530 = vmatpush1.bf16.msra.mxu0 %v5893_v24 }
 0x341   : > { %4532 = vmatmul.mubr.bf16.vlgmr.msra.gmra.mrb[4].mxu0 %v7275_v14 }
 0x414   : > { %v4533_v15 = vpop.f32.mrb[4].mxu0 }
 0x415   : > { %v5237_v52 = vadd.f32 %v4533_v15, %v4129_v3  ;;  %v4535_v32 = vpop.f32.mrb[5].mxu0 }
 0x416   : > { %v5238_v47 = vadd.f32 %v4535_v32, %v4133_v23  ;;  %v4537_v61 = vpop.f32.mrb[6].mxu0 }
 0x417   : > { %v5239_v8 = vadd.f32 %v4537_v61, %v4129_v3  ;;  %v4539_v54 = vpop.f32.mrb[7].mxu0  ;;  %v4542_v48 = vmax.f32 %v5237_v52, 0.0 }
 0x418   : > { %v5240_v40 = vadd.f32 %v4539_v54, %v4133_v23  ;;  %v4543_v25 = vmax.f32 %v5238_v47, 0.0 }
 0x419   : > { %v4544_v28 = vmax.f32 %v5239_v8, 0.0 }
 0x41a   : > { %v4545_v18 = vmax.f32 %v5240_v40, 0.0 }
 0x41b   : > { %v4546_v42 = vpack.c.bf16 %v4544_v28, %v4542_v48 }
 0x41c   : > { %v4547_v44 = vpack.c.bf16 %v4545_v18, %v4543_v25 }
 0x41e   : > { %4715 = vmatprep.mubr.bf16.mxu1 %v4547_v44 }
 0x41f   : > { %4716 = vmatmul.mubr.bf16.vlgmr.msra.gmra.mrb[8].mxu1 %v4546_v42 }
 0x4f2   : > { %v5219_v51 = vpop.f32.mrb[8].mxu1 }
 0x4f3   : > { %v5220_v41 = vpop.f32.mrb[9].mxu1 }
 0x4f4   : > { %v5221_v11 = vadd.f32 %v5220_v41, %v5219_v51  ;;  %v5222_v6 = vpop.f32.mrb[10].mxu1 }
 0x4f5   : > { %v5223_v31 = vpop.f32.mrb[11].mxu1 }
 0x4f6   : > { %v4718_v19 = vadd.f32 %v5221_v11, %v5178_v43  ;;  %v5224_v58 = vadd.f32 %v5223_v31, %v5222_v6 }
 0x4f8   : > { %4724 = vst [vmem:[%s341_s14] sm:$0xff] %v4718_v19  ;;  %v4721_v1 = vadd.f32 %v5224_v58, %v5178_v43 }
 0x4fa   : > { %4725 = vst [vmem:[%s341_s14 + $0x8] sm:$0xff] %v4721_v1 }
 0x4fb   : > { %6039 = shalt.err (!%p6036_p4)
}
 0x4fc   : > { %s6040_s29 = scalar_lea.hbm %s7295_s22, 256  ;;  %s6044_s23 = scalar_lea.hbm %s7346_s7, 512 }
 0x4fd   : > { %p6041_p9 = scmp.ne.s32.totalorder %s7295_s22, %s6040_s29  ;;  %p6045_p8 = scmp.lt.u32.totalorder %s7295_s22, %s7346_s7 }
 0x4fe   : > { %p6046_p13 = scmp.lt.u32.totalorder %s6044_s23, %s6040_s29  ;;  %p6048_p10 = scmp.lt.u32.totalorder %s6040_s29, %s7295_s22 }
 0x4ff   : > { %p6042_p0 = pnand %p6041_p9, %p6299_p5 }
 0x500   : > { %p6047_p6 = por %p6046_p13, %p6045_p8 }
 0x501   : > { %p6043_p11 = pneg %p6042_p0 }
 0x502   : > { %p6049_p3 = por %p6048_p10, %p6047_p6 }
 0x504   : > { %p6050_p7 = pnand %p6049_p3, %p6043_p11 }
 0x506   : > { %6053 = shalt.err (!%p6050_p7)
}
 0x507   : > { %s6115_s16 = smov 128   ;;  %s6116_s17 = smov 8  }
 0x508   : > { %5279 = dma.vmem_to_hbm [thread:$0]  (%p6299_p5), %s7290_s15, 256, %s7295_s22, %s4727_s12, %s6115_s16, %s6115_s16, %s6116_s17  }
 0x509 PF: > { %s4755_s30 = sand.u32 1, %s6088_s24   ;;  %p7366_p12 = scmp.ne.s32.totalorder %s7352_s8, 0 }
 0x50a   : > { %p7367_p2 = scmp.ge.s32.totalorder %s6100_s27, 2  ;;  %s4756_s28 = scalar_lea.sflag [#allocation4], %s4755_s30 }
 0x50c   : > { %p5296_p1 = pnand %p7367_p2, %p7366_p12 }
 0x50e   : > { %6083 = dma.done.wait (!%p5296_p1), %s4756_s28, 256  }
 0x50f   : > { %6085 = vsyncadd (!%p5296_p1), %s4756_s28, 4294967040  ;;  %p22_p4 = scmp.ge.s32.totalorder %s6285_s13, 4   ;;  %s7368_s24 = smov %s6092_s25 }
 0x510   : > { %s7369_s25 = smov %s6096_s26  ;;  %s7370_s26 = smov %s6295_s18 }
 0x511   : > { %s7371_s27 = smov %s6285_s13  ;;  %24 = sbr.rel (!%p22_p4) target bundleno = 9 (0x9), region = 105 }
 0x518   :  { %4761 = vsyncpa [#allocation3], 1 }
 0x519   :  { %4763 = vsyncpa [#allocation3 + $0x1], 1 }
 0x51a   :  { %4764 = vsyncpa [#allocation6], 1 }
 0x51b   :  { %4765 = vsyncpa [#allocation9], 1 }
 0x51c   :  { %4766 = vsyncpa [#allocation4], 1 }
 0x51d   :  { %4768 = vsyncpa [#allocation4 + $0x1], 1 }

</bundles_post_ra>
